<compile_context>
chip_gen: v7x
topology: tpu7x:2x2x1
jax: 0.10.0
libtpu: 0.0.40
codegen_flags: <defaults>
</compile_context>

<pallas_src>
import functools
import math

import jax
import jax.numpy as jnp
from jax.experimental import pallas as pl
from jax.experimental.pallas import tpu as pltpu


NUM_CLASSES = 3
HEAD_CH = 4 + 1 + NUM_CLASSES            # [reg(4), obj(1), cls(nc)]
FPN_STRIDES = (4.0, 8.0, 16.0)           # P3, P4, P5


# ----------------------------------------------------------------------------
# Pallas kernels
# ----------------------------------------------------------------------------
def _conv_s2_kernel(x_ref, w_ref, b_ref, o_ref, *, rows, w2p):
    """Fused 3x3/stride-2 conv (+bias+SiLU) on a space-to-depth input.

    x_ref: (R_ext, 4*Cin) f32   padded s2d input, flattened (b, hp, wp) row-major
    w_ref: (16*Cin, Cout) bf16  s2d-remapped conv weight
    b_ref: (1, Cout)      f32
    o_ref: (rows, Cout)   f32   'extended' output (throwaway border rows incl.)
    """
    taps = []
    for u in range(2):
        for v in range(2):
            off = u * w2p + v                      # static row offset
            taps.append(x_ref[off:off + rows, :])  # contiguous VMEM slice
    col = jnp.concatenate(taps, axis=-1).astype(jnp.bfloat16)   # (rows, 16*Cin)
    acc = jnp.dot(col, w_ref[...], preferred_element_type=jnp.float32)
    acc = acc + b_ref[...]
    acc = acc * jax.nn.sigmoid(acc)                # SiLU, f32 epilogue
    o_ref[...] = acc.astype(o_ref.dtype)


def _head_kernel(x_ref, w_ref, b_ref, o_ref, *, batch, anchors_per_image,
                 level_starts, level_ws, level_strides):
    """Fused 1x1 head conv (all 3 levels) + YOLOX decode, grid from iota.

    x_ref: (B*A, Ksum) f32   per-anchor features, levels in disjoint channel blocks
    w_ref: (Ksum, 8)   bf16  block-diagonal head weight
    b_ref: (3, 8)      f32   per-level bias
    o_ref: (B*A, 8)    f32   decoded predictions
    """
    x = x_ref[...].astype(jnp.bfloat16)
    logits = jnp.dot(x, w_ref[...], preferred_element_type=jnp.float32)
    m = logits.shape[0]

    r = jax.lax.broadcasted_iota(jnp.int32, (m, 1), 0)
    ra = r                                          # anchor index within image
    for bidx in range(1, batch):
        ra = jnp.where(r >= bidx * anchors_per_image, r - bidx * anchors_per_image, ra)

    in_l1 = ra >= level_starts[1]
    in_l2 = ra >= level_starts[2]
    stride = jnp.where(in_l2, level_strides[2],
                       jnp.where(in_l1, level_strides[1], level_strides[0]))
    local = ra - jnp.where(in_l2, level_starts[2],
                           jnp.where(in_l1, level_starts[1], level_starts[0]))
    shifts = [int(math.log2(w)) for w in level_ws]   # level widths are powers of 2
    gx = jnp.where(in_l2, local & (level_ws[2] - 1),
                   jnp.where(in_l1, local & (level_ws[1] - 1),
                             local & (level_ws[0] - 1)))
    gy = jnp.where(in_l2, local >> shifts[2],
                   jnp.where(in_l1, local >> shifts[1], local >> shifts[0]))
    bias = jnp.where(in_l2, b_ref[2:3, :],
                     jnp.where(in_l1, b_ref[1:2, :], b_ref[0:1, :]))

    p = logits + bias
    col = jax.lax.broadcasted_iota(jnp.int32, p.shape, 1)
    g = jnp.where(col == 0, gx.astype(jnp.float32),
                  jnp.where(col == 1, gy.astype(jnp.float32), 0.0))
    is_xy = col < 2
    is_wh = jnp.logical_and(col >= 2, col < 4)
    xy = (p + g) * stride
    wh = jnp.exp(jnp.where(is_wh, p, 0.0)) * stride   # exp only where needed
    sg = jax.nn.sigmoid(p)
    o_ref[...] = jnp.where(is_xy, xy, jnp.where(is_wh, wh, sg)).astype(o_ref.dtype)


# ----------------------------------------------------------------------------
# Conv wrapper (space-to-depth glue in XLA, conv+bias+SiLU in Pallas)
# ----------------------------------------------------------------------------
def conv3x3_s2_silu(feat, w2_bf16, bias_row):
    """feat: (B, H, W, Cin) NHWC, H and W even. Returns (B, H//2, W//2, Cout)."""
    B, H, W, C = feat.shape
    H2, W2 = H // 2, W // 2
    # space-to-depth: (B, H2, W2, 4C), channel order (row parity, col parity, c)
    xs = feat.reshape(B, H2, 2, W2, 2, C).transpose(0, 1, 3, 2, 4, 5)
    xs = xs.reshape(B, H2, W2, 4 * C)
    # one zero row on top / one zero col on the left = the 3x3 pad=1 halo
    xp = jnp.pad(xs, ((0, 0), (1, 0), (1, 0), (0, 0)))
    rows = B * (H2 + 1) * (W2 + 1)
    x2 = xp.reshape(rows, 4 * C)
    # tail zero rows so the in-kernel shifted-window slices never run off the end
    x2 = jnp.pad(x2, ((0, W2 + 2), (0, 0)))
    cout = w2_bf16.shape[1]

    out = pl.pallas_call(
        functools.partial(_conv_s2_kernel, rows=rows, w2p=W2 + 1),
        out_shape=jax.ShapeDtypeStruct((rows, cout), jnp.float32),
        grid=(1,),
        in_specs=[
            pl.BlockSpec(x2.shape, lambda i: (0, 0)),
            pl.BlockSpec(w2_bf16.shape, lambda i: (0, 0)),
            pl.BlockSpec(bias_row.shape, lambda i: (0, 0)),
        ],
        out_specs=pl.BlockSpec((rows, cout), lambda i: (0, 0)),
        compiler_params=pltpu.CompilerParams(dimension_semantics=("arbitrary",)),
    )(x2, w2_bf16, bias_row)

    out = out.reshape(B, H2 + 1, W2 + 1, cout)[:, :H2, :W2, :]
    return out


# ----------------------------------------------------------------------------
# Parameter construction (weights remapped once at init; bias prebuilt as rows)
# ----------------------------------------------------------------------------
def _remap_conv3x3_s2(w):
    """(Cout, Cin, 3, 3) torch-layout stride-2/pad-1 conv weight -> (16*Cin, Cout)
    weight for the space-to-depth 2x2-window matmul.  Column-block order matches
    the kernel's tap concat: (U, V, row-parity, col-parity, c)."""
    cout, cin = w.shape[0], w.shape[1]
    w2 = jnp.zeros((16 * cin, cout), w.dtype)
    for u in range(2):
        for v in range(2):
            for a in range(2):
                for b in range(2):
                    di = 2 * u + a - 1
                    dj = 2 * v + b - 1
                    if 0 <= di <= 2 and 0 <= dj <= 2:
                        blk = (u * 2 + v) * 4 + (a * 2 + b)
                        w2 = w2.at[blk * cin:(blk + 1) * cin, :].set(w[:, :, di, dj].T)
    return w2


def init_params(key):
    def conv_init(k, cout, cin, kh, kw):
        k1, k2 = jax.random.split(k)
        fan = cin * kh * kw
        w = jax.random.normal(k1, (cout, cin, kh, kw), jnp.float32) / math.sqrt(fan)
        b = 0.01 * jax.random.normal(k2, (cout,), jnp.float32)
        return w, b

    keys = jax.random.split(key, 7)
    raw = {
        "stem":  conv_init(keys[0], 16, 4, 3, 3),
        "c2":    conv_init(keys[1], 32, 16, 3, 3),     # -> P3 (stride 4)
        "c3":    conv_init(keys[2], 64, 32, 3, 3),     # -> P4 (stride 8)
        "c4":    conv_init(keys[3], 128, 64, 3, 3),    # -> P5 (stride 16)
        "head3": conv_init(keys[4], HEAD_CH, 32, 1, 1),
        "head4": conv_init(keys[5], HEAD_CH, 64, 1, 1),
        "head5": conv_init(keys[6], HEAD_CH, 128, 1, 1),
    }
    params = {}
    for name in ("stem", "c2", "c3", "c4"):
        w, b = raw[name]
        params[name + "_w"] = _remap_conv3x3_s2(w).astype(jnp.bfloat16)
        params[name + "_b"] = b.reshape(1, -1)

    # Block-diagonal head weight over the 3 levels' channel blocks + per-level bias.
    cins = (32, 64, 128)
    ksum = sum(cins)
    head_w = jnp.zeros((ksum, HEAD_CH), jnp.float32)
    head_b = []
    off = 0
    for name, cin in zip(("head3", "head4", "head5"), cins):
        w, b = raw[name]
        head_w = head_w.at[off:off + cin, :].set(jnp.transpose(w[:, :, 0, 0]))
        head_b.append(b)
        off += cin
    params["head_w"] = head_w.astype(jnp.bfloat16)
    params["head_b"] = jnp.stack(head_b, axis=0)       # (3, 8)
    return params


# ----------------------------------------------------------------------------
# Model
# ----------------------------------------------------------------------------
def backbone_forward(params, x_nhwc):
    s = conv3x3_s2_silu(x_nhwc, params["stem_w"], params["stem_b"])
    p3 = conv3x3_s2_silu(s,  params["c2_w"], params["c2_b"])
    p4 = conv3x3_s2_silu(p3, params["c3_w"], params["c3_b"])
    p5 = conv3x3_s2_silu(p4, params["c4_w"], params["c4_b"])
    return (p3, p4, p5)


def head_forward(params, fpn_feats):
    """fpn_feats: tuple of (B, H_l, W_l, C_l). Returns (B, sum(H*W), 5+nc)."""
    B = fpn_feats[0].shape[0]
    sizes = [(f.shape[1], f.shape[2], f.shape[3]) for f in fpn_feats]
    for (_, w_, _) in sizes:
        assert w_ & (w_ - 1) == 0, "level widths must be powers of two"
    ksum = sum(c for (_, _, c) in sizes)

    # pack each level's per-pixel features into its own channel block
    blocks = []
    off = 0
    for f, (h, w, c) in zip(fpn_feats, sizes):
        flat = f.reshape(B, h * w, c)
        blocks.append(jnp.pad(flat, ((0, 0), (0, 0), (off, ksum - off - c))))
        off += c
    x = jnp.concatenate(blocks, axis=1)                # (B, A, Ksum)
    A = x.shape[1]
    x2 = x.reshape(B * A, ksum)

    hws = [h * w for (h, w, _) in sizes]
    level_starts = (0, hws[0], hws[0] + hws[1])
    level_ws = tuple(w for (_, w, _) in sizes)

    out = pl.pallas_call(
        functools.partial(_head_kernel, batch=B, anchors_per_image=A,
                          level_starts=level_starts, level_ws=level_ws,
                          level_strides=FPN_STRIDES),
        out_shape=jax.ShapeDtypeStruct((B * A, HEAD_CH), jnp.float32),
        grid=(1,),
        in_specs=[
            pl.BlockSpec((B * A, ksum), lambda i: (0, 0)),
            pl.BlockSpec((ksum, HEAD_CH), lambda i: (0, 0)),
            pl.BlockSpec((3, HEAD_CH), lambda i: (0, 0)),
        ],
        out_specs=pl.BlockSpec((B * A, HEAD_CH), lambda i: (0, 0)),
        compiler_params=pltpu.CompilerParams(dimension_semantics=("arbitrary",)),
    )(x2, params["head_w"], params["head_b"])
    return out.reshape(B, A, HEAD_CH)


@jax.jit
def yolox_forward(params, x_nchw):
    # TODO(synk): NMS / confidence postprocess (nms_thresh) from the PyTorch head is
    # data-dependent sorting + suppression and is not implemented here.
    x_nhwc = jnp.transpose(x_nchw, (0, 2, 3, 1))
    fpn_outs = backbone_forward(params, x_nhwc)
    return head_forward(params, fpn_outs)


if __name__ == "__main__":
    key = jax.random.PRNGKey(0)
    kx, kp = jax.random.split(key)
    x = jax.random.normal(kx, (2, 4, 32, 32), jnp.float32)   # NCHW, like PyTorch
    params = init_params(kp)
    out = yolox_forward(params, x)            # (2, 64+16+4, 8) = (2, 84, 8)
    jax.block_until_ready(out)
    assert out.shape == (2, 84, HEAD_CH)
    assert bool(jnp.all(jnp.isfinite(out)))
    print("KERNEL_OK")
</pallas_src>

<mosaic_0001>
module attributes {stable_mosaic.version = 11 : i64} {
  func.func @_conv_s2_kernel(%arg0: i32, %arg1: memref<596x16xf32, #tpu.memory_space<vmem>>, %arg2: memref<64x16xbf16, #tpu.memory_space<vmem>>, %arg3: memref<1x16xf32, #tpu.memory_space<vmem>>, %arg4: memref<578x16xf32, #tpu.memory_space<vmem>>) attributes {dimension_semantics = [#tpu.dimension_semantics<arbitrary>], iteration_bounds = array<i64: 1>, scalar_prefetch = 0 : i64, scratch_operands = 0 : i64, tpu.core_type = #tpu.core_type<tc>, window_params = [{pipeline_mode = #tpu.pipeline_mode<synchronous>, transform_indices = @transform_0, window_bounds = array<i64: 596, 16>}, {pipeline_mode = #tpu.pipeline_mode<synchronous>, transform_indices = @transform_1, window_bounds = array<i64: 64, 16>}, {pipeline_mode = #tpu.pipeline_mode<synchronous>, transform_indices = @transform_2, window_bounds = array<i64: 1, 16>}, {pipeline_mode = #tpu.pipeline_mode<synchronous>, transform_indices = @transform_3, window_bounds = array<i64: 578, 16>}]} {
    %c0 = arith.constant 0 : index
    %c0_0 = arith.constant 0 : index
    %0 = vector.load %arg1[%c0, %c0_0] : memref<596x16xf32, #tpu.memory_space<vmem>>, vector<578x16xf32>
    %c1 = arith.constant 1 : index
    %c0_1 = arith.constant 0 : index
    %1 = vector.load %arg1[%c1, %c0_1] : memref<596x16xf32, #tpu.memory_space<vmem>>, vector<578x16xf32>
    %c17 = arith.constant 17 : index
    %c0_2 = arith.constant 0 : index
    %2 = vector.load %arg1[%c17, %c0_2] : memref<596x16xf32, #tpu.memory_space<vmem>>, vector<578x16xf32>
    %c18 = arith.constant 18 : index
    %c0_3 = arith.constant 0 : index
    %3 = vector.load %arg1[%c18, %c0_3] : memref<596x16xf32, #tpu.memory_space<vmem>>, vector<578x16xf32>
    %4 = tpu.concatenate %0, %1, %2, %3 in 1 : vector<578x16xf32>, vector<578x16xf32>, vector<578x16xf32>, vector<578x16xf32> -> vector<578x64xf32>
    %5 = arith.truncf %4 : vector<578x64xf32> to vector<578x64xbf16>
    %c0_4 = arith.constant 0 : index
    %c0_5 = arith.constant 0 : index
    %6 = vector.load %arg2[%c0_4, %c0_5] : memref<64x16xbf16, #tpu.memory_space<vmem>>, vector<64x16xbf16>
    %cst = arith.constant dense<0.000000e+00> : vector<578x16xf32>
    %7 = tpu.matmul %5, %6, %cst {dimension_numbers = #tpu.dot_dimension_numbers<[1], [0], [0], [1], [0, 0, 1, 1], [], []>} : vector<578x64xbf16>, vector<64x16xbf16>, vector<578x16xf32> -> vector<578x16xf32>
    %c0_6 = arith.constant 0 : index
    %c0_7 = arith.constant 0 : index
    %8 = vector.load %arg3[%c0_6, %c0_7] : memref<1x16xf32, #tpu.memory_space<vmem>>, vector<1x16xf32>
    %9 = vector.broadcast %8 : vector<1x16xf32> to vector<578x16xf32>
    %10 = arith.addf %7, %9 : vector<578x16xf32>
    %11 = arith.negf %10 : vector<578x16xf32>
    %12 = math.exp %11 : vector<578x16xf32>
    %cst_8 = arith.constant 1.000000e+00 : f32
    %13 = vector.broadcast %cst_8 : f32 to vector<578x16xf32>
    %14 = arith.addf %13, %12 : vector<578x16xf32>
    %15 = arith.divf %13, %14 : vector<578x16xf32>
    %16 = arith.mulf %10, %15 : vector<578x16xf32>
    %c0_9 = arith.constant 0 : index
    %c0_10 = arith.constant 0 : index
    %17 = vector.load %arg4[%c0_9, %c0_10] : memref<578x16xf32, #tpu.memory_space<vmem>>, vector<578x16xf32>
    tpu.vector_store %arg4[%c0_9, %c0_10], %16 {strides = array<i32>} : memref<578x16xf32, #tpu.memory_space<vmem>>, vector<578x16xf32>,
    return
  }
  func.func @transform_0(%arg0: i32) -> (i32, i32) {
    %c0_i32 = arith.constant 0 : i32
    %c0_i32_0 = arith.constant 0 : i32
    %c0_i32_1 = arith.constant 0 : i32
    return %c0_i32, %c0_i32_0 : i32, i32
  }
  func.func @transform_1(%arg0: i32) -> (i32, i32) {
    %c0_i32 = arith.constant 0 : i32
    %c0_i32_0 = arith.constant 0 : i32
    %c0_i32_1 = arith.constant 0 : i32
    return %c0_i32, %c0_i32_0 : i32, i32
  }
  func.func @transform_2(%arg0: i32) -> (i32, i32) {
    %c0_i32 = arith.constant 0 : i32
    %c0_i32_0 = arith.constant 0 : i32
    %c0_i32_1 = arith.constant 0 : i32
    return %c0_i32, %c0_i32_0 : i32, i32
  }
  func.func @transform_3(%arg0: i32) -> (i32, i32) {
    %c0_i32 = arith.constant 0 : i32
    %c0_i32_0 = arith.constant 0 : i32
    %c0_i32_1 = arith.constant 0 : i32
    return %c0_i32, %c0_i32_0 : i32, i32
  }
}

module attributes {stable_mosaic.version = 11 : i64} {
  func.func @_conv_s2_kernel(%arg0: i32, %arg1: memref<172x64xf32, #tpu.memory_space<vmem>>, %arg2: memref<256x32xbf16, #tpu.memory_space<vmem>>, %arg3: memref<1x32xf32, #tpu.memory_space<vmem>>, %arg4: memref<162x32xf32, #tpu.memory_space<vmem>>) attributes {dimension_semantics = [#tpu.dimension_semantics<arbitrary>], iteration_bounds = array<i64: 1>, scalar_prefetch = 0 : i64, scratch_operands = 0 : i64, tpu.core_type = #tpu.core_type<tc>, window_params = [{pipeline_mode = #tpu.pipeline_mode<synchronous>, transform_indices = @transform_0, window_bounds = array<i64: 172, 64>}, {pipeline_mode = #tpu.pipeline_mode<synchronous>, transform_indices = @transform_1, window_bounds = array<i64: 256, 32>}, {pipeline_mode = #tpu.pipeline_mode<synchronous>, transform_indices = @transform_2, window_bounds = array<i64: 1, 32>}, {pipeline_mode = #tpu.pipeline_mode<synchronous>, transform_indices = @transform_3, window_bounds = array<i64: 162, 32>}]} {
    %c0 = arith.constant 0 : index
    %c0_0 = arith.constant 0 : index
    %0 = vector.load %arg1[%c0, %c0_0] : memref<172x64xf32, #tpu.memory_space<vmem>>, vector<162x64xf32>
    %c1 = arith.constant 1 : index
    %c0_1 = arith.constant 0 : index
    %1 = vector.load %arg1[%c1, %c0_1] : memref<172x64xf32, #tpu.memory_space<vmem>>, vector<162x64xf32>
    %c9 = arith.constant 9 : index
    %c0_2 = arith.constant 0 : index
    %2 = vector.load %arg1[%c9, %c0_2] : memref<172x64xf32, #tpu.memory_space<vmem>>, vector<162x64xf32>
    %c10 = arith.constant 10 : index
    %c0_3 = arith.constant 0 : index
    %3 = vector.load %arg1[%c10, %c0_3] : memref<172x64xf32, #tpu.memory_space<vmem>>, vector<162x64xf32>
    %4 = tpu.concatenate %0, %1, %2, %3 in 1 : vector<162x64xf32>, vector<162x64xf32>, vector<162x64xf32>, vector<162x64xf32> -> vector<162x256xf32>
    %5 = arith.truncf %4 : vector<162x256xf32> to vector<162x256xbf16>
    %c0_4 = arith.constant 0 : index
    %c0_5 = arith.constant 0 : index
    %6 = vector.load %arg2[%c0_4, %c0_5] : memref<256x32xbf16, #tpu.memory_space<vmem>>, vector<256x32xbf16>
    %cst = arith.constant dense<0.000000e+00> : vector<162x32xf32>
    %7 = tpu.matmul %5, %6, %cst {dimension_numbers = #tpu.dot_dimension_numbers<[1], [0], [0], [1], [0, 0, 1, 1], [], []>} : vector<162x256xbf16>, vector<256x32xbf16>, vector<162x32xf32> -> vector<162x32xf32>
    %c0_6 = arith.constant 0 : index
    %c0_7 = arith.constant 0 : index
    %8 = vector.load %arg3[%c0_6, %c0_7] : memref<1x32xf32, #tpu.memory_space<vmem>>, vector<1x32xf32>
    %9 = vector.broadcast %8 : vector<1x32xf32> to vector<162x32xf32>
    %10 = arith.addf %7, %9 : vector<162x32xf32>
    %11 = arith.negf %10 : vector<162x32xf32>
    %12 = math.exp %11 : vector<162x32xf32>
    %cst_8 = arith.constant 1.000000e+00 : f32
    %13 = vector.broadcast %cst_8 : f32 to vector<162x32xf32>
    %14 = arith.addf %13, %12 : vector<162x32xf32>
    %15 = arith.divf %13, %14 : vector<162x32xf32>
    %16 = arith.mulf %10, %15 : vector<162x32xf32>
    %c0_9 = arith.constant 0 : index
    %c0_10 = arith.constant 0 : index
    %17 = vector.load %arg4[%c0_9, %c0_10] : memref<162x32xf32, #tpu.memory_space<vmem>>, vector<162x32xf32>
    tpu.vector_store %arg4[%c0_9, %c0_10], %16 {strides = array<i32>} : memref<162x32xf32, #tpu.memory_space<vmem>>, vector<162x32xf32>,
    return
  }
  func.func @transform_0(%arg0: i32) -> (i32, i32) {
    %c0_i32 = arith.constant 0 : i32
    %c0_i32_0 = arith.constant 0 : i32
    %c0_i32_1 = arith.constant 0 : i32
    return %c0_i32, %c0_i32_0 : i32, i32
  }
  func.func @transform_1(%arg0: i32) -> (i32, i32) {
    %c0_i32 = arith.constant 0 : i32
    %c0_i32_0 = arith.constant 0 : i32
    %c0_i32_1 = arith.constant 0 : i32
    return %c0_i32, %c0_i32_0 : i32, i32
  }
  func.func @transform_2(%arg0: i32) -> (i32, i32) {
    %c0_i32 = arith.constant 0 : i32
    %c0_i32_0 = arith.constant 0 : i32
    %c0_i32_1 = arith.constant 0 : i32
    return %c0_i32, %c0_i32_0 : i32, i32
  }
  func.func @transform_3(%arg0: i32) -> (i32, i32) {
    %c0_i32 = arith.constant 0 : i32
    %c0_i32_0 = arith.constant 0 : i32
    %c0_i32_1 = arith.constant 0 : i32
    return %c0_i32, %c0_i32_0 : i32, i32
  }
}

module attributes {stable_mosaic.version = 11 : i64} {
  func.func @_conv_s2_kernel(%arg0: i32, %arg1: memref<56x128xf32, #tpu.memory_space<vmem>>, %arg2: memref<512x64xbf16, #tpu.memory_space<vmem>>, %arg3: memref<1x64xf32, #tpu.memory_space<vmem>>, %arg4: memref<50x64xf32, #tpu.memory_space<vmem>>) attributes {dimension_semantics = [#tpu.dimension_semantics<arbitrary>], iteration_bounds = array<i64: 1>, scalar_prefetch = 0 : i64, scratch_operands = 0 : i64, tpu.core_type = #tpu.core_type<tc>, window_params = [{pipeline_mode = #tpu.pipeline_mode<synchronous>, transform_indices = @transform_0, window_bounds = array<i64: 56, 128>}, {pipeline_mode = #tpu.pipeline_mode<synchronous>, transform_indices = @transform_1, window_bounds = array<i64: 512, 64>}, {pipeline_mode = #tpu.pipeline_mode<synchronous>, transform_indices = @transform_2, window_bounds = array<i64: 1, 64>}, {pipeline_mode = #tpu.pipeline_mode<synchronous>, transform_indices = @transform_3, window_bounds = array<i64: 50, 64>}]} {
    %c0 = arith.constant 0 : index
    %c0_0 = arith.constant 0 : index
    %0 = vector.load %arg1[%c0, %c0_0] : memref<56x128xf32, #tpu.memory_space<vmem>>, vector<50x128xf32>
    %c1 = arith.constant 1 : index
    %c0_1 = arith.constant 0 : index
    %1 = vector.load %arg1[%c1, %c0_1] : memref<56x128xf32, #tpu.memory_space<vmem>>, vector<50x128xf32>
    %c5 = arith.constant 5 : index
    %c0_2 = arith.constant 0 : index
    %2 = vector.load %arg1[%c5, %c0_2] : memref<56x128xf32, #tpu.memory_space<vmem>>, vector<50x128xf32>
    %c6 = arith.constant 6 : index
    %c0_3 = arith.constant 0 : index
    %3 = vector.load %arg1[%c6, %c0_3] : memref<56x128xf32, #tpu.memory_space<vmem>>, vector<50x128xf32>
    %4 = tpu.concatenate %0, %1, %2, %3 in 1 : vector<50x128xf32>, vector<50x128xf32>, vector<50x128xf32>, vector<50x128xf32> -> vector<50x512xf32>
    %5 = arith.truncf %4 : vector<50x512xf32> to vector<50x512xbf16>
    %c0_4 = arith.constant 0 : index
    %c0_5 = arith.constant 0 : index
    %6 = vector.load %arg2[%c0_4, %c0_5] : memref<512x64xbf16, #tpu.memory_space<vmem>>, vector<512x64xbf16>
    %cst = arith.constant dense<0.000000e+00> : vector<50x64xf32>
    %7 = tpu.matmul %5, %6, %cst {dimension_numbers = #tpu.dot_dimension_numbers<[1], [0], [0], [1], [0, 0, 1, 1], [], []>} : vector<50x512xbf16>, vector<512x64xbf16>, vector<50x64xf32> -> vector<50x64xf32>
    %c0_6 = arith.constant 0 : index
    %c0_7 = arith.constant 0 : index
    %8 = vector.load %arg3[%c0_6, %c0_7] : memref<1x64xf32, #tpu.memory_space<vmem>>, vector<1x64xf32>
    %9 = vector.broadcast %8 : vector<1x64xf32> to vector<50x64xf32>
    %10 = arith.addf %7, %9 : vector<50x64xf32>
    %11 = arith.negf %10 : vector<50x64xf32>
    %12 = math.exp %11 : vector<50x64xf32>
    %cst_8 = arith.constant 1.000000e+00 : f32
    %13 = vector.broadcast %cst_8 : f32 to vector<50x64xf32>
    %14 = arith.addf %13, %12 : vector<50x64xf32>
    %15 = arith.divf %13, %14 : vector<50x64xf32>
    %16 = arith.mulf %10, %15 : vector<50x64xf32>
    %c0_9 = arith.constant 0 : index
    %c0_10 = arith.constant 0 : index
    %17 = vector.load %arg4[%c0_9, %c0_10] : memref<50x64xf32, #tpu.memory_space<vmem>>, vector<50x64xf32>
    tpu.vector_store %arg4[%c0_9, %c0_10], %16 {strides = array<i32>} : memref<50x64xf32, #tpu.memory_space<vmem>>, vector<50x64xf32>,
    return
  }
  func.func @transform_0(%arg0: i32) -> (i32, i32) {
    %c0_i32 = arith.constant 0 : i32
    %c0_i32_0 = arith.constant 0 : i32
    %c0_i32_1 = arith.constant 0 : i32
    return %c0_i32, %c0_i32_0 : i32, i32
  }
  func.func @transform_1(%arg0: i32) -> (i32, i32) {
    %c0_i32 = arith.constant 0 : i32
    %c0_i32_0 = arith.constant 0 : i32
    %c0_i32_1 = arith.constant 0 : i32
    return %c0_i32, %c0_i32_0 : i32, i32
  }
  func.func @transform_2(%arg0: i32) -> (i32, i32) {
    %c0_i32 = arith.constant 0 : i32
    %c0_i32_0 = arith.constant 0 : i32
    %c0_i32_1 = arith.constant 0 : i32
    return %c0_i32, %c0_i32_0 : i32, i32
  }
  func.func @transform_3(%arg0: i32) -> (i32, i32) {
    %c0_i32 = arith.constant 0 : i32
    %c0_i32_0 = arith.constant 0 : i32
    %c0_i32_1 = arith.constant 0 : i32
    return %c0_i32, %c0_i32_0 : i32, i32
  }
}

module attributes {stable_mosaic.version = 11 : i64} {
  func.func @_conv_s2_kernel(%arg0: i32, %arg1: memref<22x256xf32, #tpu.memory_space<vmem>>, %arg2: memref<1024x128xbf16, #tpu.memory_space<vmem>>, %arg3: memref<1x128xf32, #tpu.memory_space<vmem>>, %arg4: memref<18x128xf32, #tpu.memory_space<vmem>>) attributes {dimension_semantics = [#tpu.dimension_semantics<arbitrary>], iteration_bounds = array<i64: 1>, scalar_prefetch = 0 : i64, scratch_operands = 0 : i64, tpu.core_type = #tpu.core_type<tc>, window_params = [{pipeline_mode = #tpu.pipeline_mode<synchronous>, transform_indices = @transform_0, window_bounds = array<i64: 22, 256>}, {pipeline_mode = #tpu.pipeline_mode<synchronous>, transform_indices = @transform_1, window_bounds = array<i64: 1024, 128>}, {pipeline_mode = #tpu.pipeline_mode<synchronous>, transform_indices = @transform_2, window_bounds = array<i64: 1, 128>}, {pipeline_mode = #tpu.pipeline_mode<synchronous>, transform_indices = @transform_3, window_bounds = array<i64: 18, 128>}]} {
    %c0 = arith.constant 0 : index
    %c0_0 = arith.constant 0 : index
    %0 = vector.load %arg1[%c0, %c0_0] : memref<22x256xf32, #tpu.memory_space<vmem>>, vector<18x256xf32>
    %c1 = arith.constant 1 : index
    %c0_1 = arith.constant 0 : index
    %1 = vector.load %arg1[%c1, %c0_1] : memref<22x256xf32, #tpu.memory_space<vmem>>, vector<18x256xf32>
    %c3 = arith.constant 3 : index
    %c0_2 = arith.constant 0 : index
    %2 = vector.load %arg1[%c3, %c0_2] : memref<22x256xf32, #tpu.memory_space<vmem>>, vector<18x256xf32>
    %c4 = arith.constant 4 : index
    %c0_3 = arith.constant 0 : index
    %3 = vector.load %arg1[%c4, %c0_3] : memref<22x256xf32, #tpu.memory_space<vmem>>, vector<18x256xf32>
    %4 = tpu.concatenate %0, %1, %2, %3 in 1 : vector<18x256xf32>, vector<18x256xf32>, vector<18x256xf32>, vector<18x256xf32> -> vector<18x1024xf32>
    %5 = arith.truncf %4 : vector<18x1024xf32> to vector<18x1024xbf16>
    %c0_4 = arith.constant 0 : index
    %c0_5 = arith.constant 0 : index
    %6 = vector.load %arg2[%c0_4, %c0_5] : memref<1024x128xbf16, #tpu.memory_space<vmem>>, vector<1024x128xbf16>
    %cst = arith.constant dense<0.000000e+00> : vector<18x128xf32>
    %7 = tpu.matmul %5, %6, %cst {dimension_numbers = #tpu.dot_dimension_numbers<[1], [0], [0], [1], [0, 0, 1, 1], [], []>} : vector<18x1024xbf16>, vector<1024x128xbf16>, vector<18x128xf32> -> vector<18x128xf32>
    %c0_6 = arith.constant 0 : index
    %c0_7 = arith.constant 0 : index
    %8 = vector.load %arg3[%c0_6, %c0_7] : memref<1x128xf32, #tpu.memory_space<vmem>>, vector<1x128xf32>
    %9 = vector.broadcast %8 : vector<1x128xf32> to vector<18x128xf32>
    %10 = arith.addf %7, %9 : vector<18x128xf32>
    %11 = arith.negf %10 : vector<18x128xf32>
    %12 = math.exp %11 : vector<18x128xf32>
    %cst_8 = arith.constant 1.000000e+00 : f32
    %13 = vector.broadcast %cst_8 : f32 to vector<18x128xf32>
    %14 = arith.addf %13, %12 : vector<18x128xf32>
    %15 = arith.divf %13, %14 : vector<18x128xf32>
    %16 = arith.mulf %10, %15 : vector<18x128xf32>
    %c0_9 = arith.constant 0 : index
    %c0_10 = arith.constant 0 : index
    %17 = vector.load %arg4[%c0_9, %c0_10] : memref<18x128xf32, #tpu.memory_space<vmem>>, vector<18x128xf32>
    tpu.vector_store %arg4[%c0_9, %c0_10], %16 {strides = array<i32>} : memref<18x128xf32, #tpu.memory_space<vmem>>, vector<18x128xf32>,
    return
  }
  func.func @transform_0(%arg0: i32) -> (i32, i32) {
    %c0_i32 = arith.constant 0 : i32
    %c0_i32_0 = arith.constant 0 : i32
    %c0_i32_1 = arith.constant 0 : i32
    return %c0_i32, %c0_i32_0 : i32, i32
  }
  func.func @transform_1(%arg0: i32) -> (i32, i32) {
    %c0_i32 = arith.constant 0 : i32
    %c0_i32_0 = arith.constant 0 : i32
    %c0_i32_1 = arith.constant 0 : i32
    return %c0_i32, %c0_i32_0 : i32, i32
  }
  func.func @transform_2(%arg0: i32) -> (i32, i32) {
    %c0_i32 = arith.constant 0 : i32
    %c0_i32_0 = arith.constant 0 : i32
    %c0_i32_1 = arith.constant 0 : i32
    return %c0_i32, %c0_i32_0 : i32, i32
  }
  func.func @transform_3(%arg0: i32) -> (i32, i32) {
    %c0_i32 = arith.constant 0 : i32
    %c0_i32_0 = arith.constant 0 : i32
    %c0_i32_1 = arith.constant 0 : i32
    return %c0_i32, %c0_i32_0 : i32, i32
  }
}

module attributes {stable_mosaic.version = 11 : i64} {
  func.func @_head_kernel(%arg0: i32, %arg1: memref<168x224xf32, #tpu.memory_space<vmem>>, %arg2: memref<224x8xbf16, #tpu.memory_space<vmem>>, %arg3: memref<3x8xf32, #tpu.memory_space<vmem>>, %arg4: memref<168x8xf32, #tpu.memory_space<vmem>>) attributes {dimension_semantics = [#tpu.dimension_semantics<arbitrary>], iteration_bounds = array<i64: 1>, scalar_prefetch = 0 : i64, scratch_operands = 0 : i64, tpu.core_type = #tpu.core_type<tc>, window_params = [{pipeline_mode = #tpu.pipeline_mode<synchronous>, transform_indices = @transform_0, window_bounds = array<i64: 168, 224>}, {pipeline_mode = #tpu.pipeline_mode<synchronous>, transform_indices = @transform_1, window_bounds = array<i64: 224, 8>}, {pipeline_mode = #tpu.pipeline_mode<synchronous>, transform_indices = @transform_2, window_bounds = array<i64: 3, 8>}, {pipeline_mode = #tpu.pipeline_mode<synchronous>, transform_indices = @transform_3, window_bounds = array<i64: 168, 8>}]} {
    %c0 = arith.constant 0 : index
    %c0_0 = arith.constant 0 : index
    %0 = vector.load %arg1[%c0, %c0_0] : memref<168x224xf32, #tpu.memory_space<vmem>>, vector<168x224xf32>
    %1 = arith.truncf %0 : vector<168x224xf32> to vector<168x224xbf16>
    %c0_1 = arith.constant 0 : index
    %c0_2 = arith.constant 0 : index
    %2 = vector.load %arg2[%c0_1, %c0_2] : memref<224x8xbf16, #tpu.memory_space<vmem>>, vector<224x8xbf16>
    %cst = arith.constant dense<0.000000e+00> : vector<168x8xf32>
    %3 = tpu.matmul %1, %2, %cst {dimension_numbers = #tpu.dot_dimension_numbers<[1], [0], [0], [1], [0, 0, 1, 1], [], []>} : vector<168x224xbf16>, vector<224x8xbf16>, vector<168x8xf32> -> vector<168x8xf32>
    %4 = tpu.iota {dimensions = array<i32: 0>} : vector<168x1xi32>
    %c84_i32 = arith.constant 84 : i32
    %5 = vector.broadcast %c84_i32 : i32 to vector<168x1xi32>
    %6 = arith.cmpi sge, %4, %5 : vector<168x1xi32>
    %c84_i32_3 = arith.constant 84 : i32
    %7 = vector.broadcast %c84_i32_3 : i32 to vector<168x1xi32>
    %8 = arith.subi %4, %7 : vector<168x1xi32>
    %9 = arith.select %6, %8, %4 : vector<168x1xi1>, vector<168x1xi32>
    %c64_i32 = arith.constant 64 : i32
    %10 = vector.broadcast %c64_i32 : i32 to vector<168x1xi32>
    %11 = arith.cmpi sge, %9, %10 : vector<168x1xi32>
    %c80_i32 = arith.constant 80 : i32
    %12 = vector.broadcast %c80_i32 : i32 to vector<168x1xi32>
    %13 = arith.cmpi sge, %9, %12 : vector<168x1xi32>
    %cst_4 = arith.constant 8.000000e+00 : f32
    %cst_5 = arith.constant 4.000000e+00 : f32
    %14 = vector.broadcast %cst_4 : f32 to vector<168x1xf32>
    %15 = vector.broadcast %cst_5 : f32 to vector<168x1xf32>
    %16 = arith.select %11, %14, %15 : vector<168x1xi1>, vector<168x1xf32>
    %cst_6 = arith.constant 1.600000e+01 : f32
    %17 = vector.broadcast %cst_6 : f32 to vector<168x1xf32>
    %18 = arith.select %13, %17, %16 : vector<168x1xi1>, vector<168x1xf32>
    %c64_i32_7 = arith.constant 64 : i32
    %c0_i32 = arith.constant 0 : i32
    %19 = vector.broadcast %c64_i32_7 : i32 to vector<168x1xi32>
    %20 = vector.broadcast %c0_i32 : i32 to vector<168x1xi32>
    %21 = arith.select %11, %19, %20 : vector<168x1xi1>, vector<168x1xi32>
    %c80_i32_8 = arith.constant 80 : i32
    %22 = vector.broadcast %c80_i32_8 : i32 to vector<168x1xi32>
    %23 = arith.select %13, %22, %21 : vector<168x1xi1>, vector<168x1xi32>
    %24 = arith.subi %9, %23 : vector<168x1xi32>
    %c1_i32 = arith.constant 1 : i32
    %25 = vector.broadcast %c1_i32 : i32 to vector<168x1xi32>
    %26 = arith.andi %24, %25 : vector<168x1xi32>
    %c3_i32 = arith.constant 3 : i32
    %27 = vector.broadcast %c3_i32 : i32 to vector<168x1xi32>
    %28 = arith.andi %24, %27 : vector<168x1xi32>
    %c7_i32 = arith.constant 7 : i32
    %29 = vector.broadcast %c7_i32 : i32 to vector<168x1xi32>
    %30 = arith.andi %24, %29 : vector<168x1xi32>
    %31 = arith.select %11, %28, %30 : vector<168x1xi1>, vector<168x1xi32>
    %32 = arith.select %13, %26, %31 : vector<168x1xi1>, vector<168x1xi32>
    %c1_i32_9 = arith.constant 1 : i32
    %33 = vector.broadcast %c1_i32_9 : i32 to vector<168x1xi32>
    %34 = arith.shrsi %24, %33 : vector<168x1xi32>
    %c2_i32 = arith.constant 2 : i32
    %35 = vector.broadcast %c2_i32 : i32 to vector<168x1xi32>
    %36 = arith.shrsi %24, %35 : vector<168x1xi32>
    %c3_i32_10 = arith.constant 3 : i32
    %37 = vector.broadcast %c3_i32_10 : i32 to vector<168x1xi32>
    %38 = arith.shrsi %24, %37 : vector<168x1xi32>
    %39 = arith.select %11, %36, %38 : vector<168x1xi1>, vector<168x1xi32>
    %40 = arith.select %13, %34, %39 : vector<168x1xi1>, vector<168x1xi32>
    %c2 = arith.constant 2 : index
    %c0_11 = arith.constant 0 : index
    %41 = vector.load %arg3[%c2, %c0_11] : memref<3x8xf32, #tpu.memory_space<vmem>>, vector<1x8xf32>
    %c1 = arith.constant 1 : index
    %c0_12 = arith.constant 0 : index
    %42 = vector.load %arg3[%c1, %c0_12] : memref<3x8xf32, #tpu.memory_space<vmem>>, vector<1x8xf32>
    %c0_13 = arith.constant 0 : index
    %c0_14 = arith.constant 0 : index
    %43 = vector.load %arg3[%c0_13, %c0_14] : memref<3x8xf32, #tpu.memory_space<vmem>>, vector<1x8xf32>
    %44 = vector.shape_cast %11 : vector<168x1xi1> to vector<168x1xi1>
    %45 = vector.broadcast %44 : vector<168x1xi1> to vector<168x8xi1>
    %46 = vector.shape_cast %42 : vector<1x8xf32> to vector<1x8xf32>
    %47 = vector.broadcast %46 : vector<1x8xf32> to vector<168x8xf32>
    %48 = vector.shape_cast %43 : vector<1x8xf32> to vector<1x8xf32>
    %49 = vector.broadcast %48 : vector<1x8xf32> to vector<168x8xf32>
    %50 = arith.select %45, %47, %49 : vector<168x8xi1>, vector<168x8xf32>
    %51 = vector.shape_cast %13 : vector<168x1xi1> to vector<168x1xi1>
    %52 = vector.broadcast %51 : vector<168x1xi1> to vector<168x8xi1>
    %53 = vector.shape_cast %41 : vector<1x8xf32> to vector<1x8xf32>
    %54 = vector.broadcast %53 : vector<1x8xf32> to vector<168x8xf32>
    %55 = arith.select %52, %54, %50 : vector<168x8xi1>, vector<168x8xf32>
    %56 = arith.addf %3, %55 : vector<168x8xf32>
    %57 = tpu.iota {dimensions = array<i32: 1>} : vector<168x8xi32>
    %c0_i32_15 = arith.constant 0 : i32
    %58 = vector.broadcast %c0_i32_15 : i32 to vector<168x8xi32>
    %59 = arith.cmpi eq, %57, %58 : vector<168x8xi32>
    %60 = arith.sitofp %32 : vector<168x1xi32> to vector<168x1xf32>
    %c1_i32_16 = arith.constant 1 : i32
    %61 = vector.broadcast %c1_i32_16 : i32 to vector<168x8xi32>
    %62 = arith.cmpi eq, %57, %61 : vector<168x8xi32>
    %63 = arith.sitofp %40 : vector<168x1xi32> to vector<168x1xf32>
    %cst_17 = arith.constant 0.000000e+00 : f32
    %64 = vector.shape_cast %63 : vector<168x1xf32> to vector<168x1xf32>
    %65 = vector.broadcast %64 : vector<168x1xf32> to vector<168x8xf32>
    %66 = vector.broadcast %cst_17 : f32 to vector<168x8xf32>
    %67 = arith.select %62, %65, %66 : vector<168x8xi1>, vector<168x8xf32>
    %68 = vector.shape_cast %60 : vector<168x1xf32> to vector<168x1xf32>
    %69 = vector.broadcast %68 : vector<168x1xf32> to vector<168x8xf32>
    %70 = arith.select %59, %69, %67 : vector<168x8xi1>, vector<168x8xf32>
    %c2_i32_18 = arith.constant 2 : i32
    %71 = vector.broadcast %c2_i32_18 : i32 to vector<168x8xi32>
    %72 = arith.cmpi slt, %57, %71 : vector<168x8xi32>
    %c2_i32_19 = arith.constant 2 : i32
    %73 = vector.broadcast %c2_i32_19 : i32 to vector<168x8xi32>
    %74 = arith.cmpi sge, %57, %73 : vector<168x8xi32>
    %c4_i32 = arith.constant 4 : i32
    %75 = vector.broadcast %c4_i32 : i32 to vector<168x8xi32>
    %76 = arith.cmpi slt, %57, %75 : vector<168x8xi32>
    %77 = arith.andi %74, %76 : vector<168x8xi1>
    %78 = arith.addf %56, %70 : vector<168x8xf32>
    %79 = vector.broadcast %18 : vector<168x1xf32> to vector<168x8xf32>
    %80 = arith.mulf %78, %79 : vector<168x8xf32>
    %cst_20 = arith.constant 0.000000e+00 : f32
    %81 = vector.broadcast %cst_20 : f32 to vector<168x8xf32>
    %82 = arith.select %77, %56, %81 : vector<168x8xi1>, vector<168x8xf32>
    %83 = math.exp %82 : vector<168x8xf32>
    %84 = vector.broadcast %18 : vector<168x1xf32> to vector<168x8xf32>
    %85 = arith.mulf %83, %84 : vector<168x8xf32>
    %86 = arith.negf %56 : vector<168x8xf32>
    %87 = math.exp %86 : vector<168x8xf32>
    %cst_21 = arith.constant 1.000000e+00 : f32
    %88 = vector.broadcast %cst_21 : f32 to vector<168x8xf32>
    %89 = arith.addf %88, %87 : vector<168x8xf32>
    %90 = arith.divf %88, %89 : vector<168x8xf32>
    %91 = arith.select %77, %85, %90 : vector<168x8xi1>, vector<168x8xf32>
    %92 = arith.select %72, %80, %91 : vector<168x8xi1>, vector<168x8xf32>
    %c0_22 = arith.constant 0 : index
    %c0_23 = arith.constant 0 : index
    %93 = vector.load %arg4[%c0_22, %c0_23] : memref<168x8xf32, #tpu.memory_space<vmem>>, vector<168x8xf32>
    tpu.vector_store %arg4[%c0_22, %c0_23], %92 {strides = array<i32>} : memref<168x8xf32, #tpu.memory_space<vmem>>, vector<168x8xf32>,
    return
  }
  func.func @transform_0(%arg0: i32) -> (i32, i32) {
    %c0_i32 = arith.constant 0 : i32
    %c0_i32_0 = arith.constant 0 : i32
    %c0_i32_1 = arith.constant 0 : i32
    return %c0_i32, %c0_i32_0 : i32, i32
  }
  func.func @transform_1(%arg0: i32) -> (i32, i32) {
    %c0_i32 = arith.constant 0 : i32
    %c0_i32_0 = arith.constant 0 : i32
    %c0_i32_1 = arith.constant 0 : i32
    return %c0_i32, %c0_i32_0 : i32, i32
  }
  func.func @transform_2(%arg0: i32) -> (i32, i32) {
    %c0_i32 = arith.constant 0 : i32
    %c0_i32_0 = arith.constant 0 : i32
    %c0_i32_1 = arith.constant 0 : i32
    return %c0_i32, %c0_i32_0 : i32, i32
  }
  func.func @transform_3(%arg0: i32) -> (i32, i32) {
    %c0_i32 = arith.constant 0 : i32
    %c0_i32_0 = arith.constant 0 : i32
    %c0_i32_1 = arith.constant 0 : i32
    return %c0_i32, %c0_i32_0 : i32, i32
  }
}

</mosaic_0001>

<bundles_post_ra>
// kernel: yolox_forward.5
= control target key start
LH: loop header
LB: loop body
LE: loop exit
PB: predicated region body
PF: predicated region fallthrough
CT: control target
= control target key end

     0   :  { %v3532_v3 = vmov 0.0   ;;  %vm3533_vm0 = vmmov 0   ;;  %s3534_s28 = smov 48   ;;  %s3535_s29 = smov 16   ;;  %vm1043_vm1 = vcmask 130048   ;;  %vm1117_vm2 = vcmask 261120   ;;  %s5342_s0 = inlined_call_operand.vmem [shape: f32[596,16], index: 0, kind: input, shape index: {}]   ;;  %s5343_s1 = inlined_call_operand.vmem [shape: bf16[64,16], index: 1, kind: input, shape index: {}]   ;;  %s5344_s2 = inlined_call_operand.vmem [shape: f32[1,16], index: 2, kind: input, shape index: {}]   ;;  %s5345_s3 = inlined_call_operand.vmem [shape: f32[578,16], index: 3, kind: output, shape index: {}]  }
   0x1   :  { %v164_v0 = vld [vmem:[%s5342_s0 + $0x12] sm:$0xff]  ;;  %v165_v1 = vld [vmem:[%s5342_s0 + $0x1a] sm:$0xff]  ;;  %2526 = vmatprep.subr.bf16.mxu0 %v3532_v3  ;;  %2682 = vmatprep.subr.bf16.mxu1 %v3532_v3  ;;  %v89_v5 = vld [vmem:[%s5342_s0 + $0x9] sm:$0xff]  ;;  %s3536_s7 = smov 32   ;;  %vm1191_vm3 = vcmask 392192   ;;  %vm1341_vm4 = vcmask 523264  }
   0x2   :  { %v88_v2 = vld [vmem:[%s5342_s0 + $0x1] sm:$0xff]  ;;  %v2705_v4 = vpack.i.bf16 %v165_v1, %v164_v0  ;;  %v90_v6 = vld [vmem:[%s5342_s0 + $0x11] sm:$0xff]  ;;  %v91_v7 = vld [vmem:[%s5342_s0 + $0x19] sm:$0xff]  ;;  %2534 = vmatprep.mubr.msk.bf16.mxu0 %vm3533_vm0, %v3532_v3  ;;  %2610 = vmatprep.mubr.msk.bf16.mxu1 %vm3533_vm0, %v3532_v3  ;;  %vm2364_vm5 = vcmask 123904  }
   0x3   :  { %v2695_v8 = vpack.i.bf16 %v89_v5, %v88_v2  ;;  %v126_v9 = vld [vmem:[%s5342_s0 + $0x131] sm:$0xff]  ;;  %v127_v10 = vld [vmem:[%s5342_s0 + $0x139] sm:$0xff]  ;;  %v2710_v11 = vpack.i.bf16 %v91_v7, %v90_v6  ;;  %v92_v13 = vld [vmem:[%s5342_s0 + $0x21] sm:$0xff] }
   0x4   :  { %2706 = vrot.lane.b32.xlu1 %v2705_v4, %s3534_s28  ;;  %v3588_v12 = vpack.i.bf16 %v127_v10, %v126_v9  ;;  %v93_v14 = vld [vmem:[%s5342_s0 + $0x29] sm:$0xff]  ;;  %v128_v16 = vld [vmem:[%s5342_s0 + $0x141] sm:$0xff]  ;;  %v94_v25 = vld [vmem:[%s5342_s0 + $0x31] sm:$0xff] }
   0x5   :  { %2696 = vrot.lane.b32.xlu0 %v2695_v8, %s3535_s29  ;;  %v2715_v15 = vpack.i.bf16 %v93_v14, %v92_v13  ;;  %v129_v17 = vld [vmem:[%s5342_s0 + $0x149] sm:$0xff]  ;;  %v95_v26 = vld [vmem:[%s5342_s0 + $0x39] sm:$0xff]  ;;  %v130_v28 = vld [vmem:[%s5342_s0 + $0x151] sm:$0xff] }
   0x6   :  { %v166_v18 = vld [vmem:[%s5342_s0 + $0x22] sm:$0xff]  ;;  %v167_v19 = vld [vmem:[%s5342_s0 + $0x2a] sm:$0xff]  ;;  %v2730_v20 = vpack.i.bf16 %v129_v17, %v128_v16  ;;  %v2745_v27 = vpack.i.bf16 %v95_v26, %v94_v25  ;;  %v131_v29 = vld [vmem:[%s5342_s0 + $0x159] sm:$0xff] }
   0x7   :  { %v2725_v21 = vpack.i.bf16 %v167_v19, %v166_v18  ;;  %v202_v22 = vld [vmem:[%s5342_s0 + $0x142] sm:$0xff]  ;;  %v203_v23 = vld [vmem:[%s5342_s0 + $0x14a] sm:$0xff]  ;;  %v168_v30 = vld [vmem:[%s5342_s0 + $0x32] sm:$0xff]  ;;  %v2760_v32 = vpack.i.bf16 %v131_v29, %v130_v28 }
   0x8   :  { %2711 = vrot.lane.b32.xlu1 %v2710_v11, %s3535_s29  ;;  %v2735_v24 = vpack.i.bf16 %v203_v23, %v202_v22  ;;  %v169_v31 = vld [vmem:[%s5342_s0 + $0x3a] sm:$0xff]  ;;  %v204_v34 = vld [vmem:[%s5342_s0 + $0x152] sm:$0xff]  ;;  %v3236_v38 = vld [vmem:[%s5343_s1 + $0x8] sm:$0xff]  }
   0x9   :  { %2701 = vrot.lane.b32.xlu0 %v2710_v11, %s3536_s7  ;;  %v2755_v33 = vpack.i.bf16 %v169_v31, %v168_v30  ;;  %v205_v35 = vld [vmem:[%s5342_s0 + $0x15a] sm:$0xff]  ;;  %v97_v40 = vld [vmem:[%s5342_s0 + $0x49] sm:$0xff]  ;;  %v98_v53 = vld [vmem:[%s5342_s0 + $0x51] sm:$0xff] }
   0xa   :  { %v3235_v36 = vld [vmem:[%s5343_s1] sm:$0xff]   ;;  %v2765_v37 = vpack.i.bf16 %v205_v35, %v204_v34  ;;  %v133_v43 = vld [vmem:[%s5342_s0 + $0x169] sm:$0xff]  ;;  %v3238_v49 = vld [vmem:[%s5343_s1 + $0x18] sm:$0xff]  }
   0xb   :  { %2527 = vmatpush3.bf16.msra.mxu0 %v3235_v36  ;;  %v96_v39 = vld [vmem:[%s5342_s0 + $0x41] sm:$0xff]  ;;  %2686 = vmatpush3.bf16.msra.mxu1 %v3235_v36  ;;  %v3237_v45 = vld [vmem:[%s5343_s1 + $0x10] sm:$0xff]   ;;  %v99_v54 = vld [vmem:[%s5342_s0 + $0x59] sm:$0xff] }
   0xc   :  { %2721 = vrot.lane.b32.xlu1 %v3588_v12, %s3535_s29  ;;  %2528 = vmatprep.subr.bf16.mxu0 %v3532_v3  ;;  %v132_v41 = vld [vmem:[%s5342_s0 + $0x161] sm:$0xff]  ;;  %v2775_v42 = vpack.i.bf16 %v97_v40, %v96_v39  ;;  %v171_v46 = vld [vmem:[%s5342_s0 + $0x4a] sm:$0xff]  ;;  %v2805_v55 = vpack.i.bf16 %v99_v54, %v98_v53  ;;  %v135_v57 = vld [vmem:[%s5342_s0 + $0x179] sm:$0xff] }
   0xd   :  { %2716 = vrot.lane.b32.xlu0 %v2715_v15, %s3536_s7  ;;  %2683 = vmatprep.subr.bf16.mxu1 %v3532_v3  ;;  %v170_v44 = vld [vmem:[%s5342_s0 + $0x42] sm:$0xff]  ;;  %v2790_v47 = vpack.i.bf16 %v133_v43, %v132_v41  ;;  %v207_v51 = vld [vmem:[%s5342_s0 + $0x16a] sm:$0xff]  ;;  %v172_v58 = vld [vmem:[%s5342_s0 + $0x52] sm:$0xff] }
   0xe   :  { %v2785_v48 = vpack.i.bf16 %v171_v46, %v170_v44  ;;  %v206_v50 = vld [vmem:[%s5342_s0 + $0x162] sm:$0xff]  ;;  %v134_v56 = vld [vmem:[%s5342_s0 + $0x171] sm:$0xff]  ;;  %v173_v59 = vld [vmem:[%s5342_s0 + $0x5a] sm:$0xff] }
   0xf   :  { %2529 = vmatpush3.bf16.msra.mxu0 %v3236_v38  ;;  %2687 = vmatpush3.bf16.msra.mxu1 %v3236_v38  ;;  %v2795_v52 = vpack.i.bf16 %v207_v51, %v206_v50  ;;  %v2820_v60 = vpack.i.bf16 %v135_v57, %v134_v56  ;;  %v2815_v61 = vpack.i.bf16 %v173_v59, %v172_v58  ;;  %v208_v62 = vld [vmem:[%s5342_s0 + $0x172] sm:$0xff]  ;;  %v209_v63 = vld [vmem:[%s5342_s0 + $0x17a] sm:$0xff]  ;;  %v101_v2 = vld [vmem:[%s5342_s0 + $0x69] sm:$0xff] }
  0x10   :  { %2731 = vrot.lane.b32.xlu1 %v2730_v20, %s3536_s7  ;;  %2530 = vmatprep.subr.bf16.mxu0 %v3532_v3  ;;  %v2825_v0 = vpack.i.bf16 %v209_v63, %v208_v62  ;;  %v100_v1 = vld [vmem:[%s5342_s0 + $0x61] sm:$0xff]  ;;  %v137_v6 = vld [vmem:[%s5342_s0 + $0x189] sm:$0xff]  ;;  %v103_v16 = vld [vmem:[%s5342_s0 + $0x79] sm:$0xff] }
  0x11   :  { %2726 = vrot.lane.b32.xlu0 %v2725_v21, %s3534_s28  ;;  %2684 = vmatprep.subr.bf16.mxu1 %v3532_v3  ;;  %v2835_v4 = vpack.i.bf16 %v101_v2, %v100_v1  ;;  %v136_v5 = vld [vmem:[%s5342_s0 + $0x181] sm:$0xff]  ;;  %v175_v8 = vld [vmem:[%s5342_s0 + $0x6a] sm:$0xff]  ;;  %v139_v19 = vld [vmem:[%s5342_s0 + $0x199] sm:$0xff] }
  0x12   :  { %v174_v7 = vld [vmem:[%s5342_s0 + $0x62] sm:$0xff]  ;;  %v2850_v9 = vpack.i.bf16 %v137_v6, %v136_v5  ;;  %v211_v13 = vld [vmem:[%s5342_s0 + $0x18a] sm:$0xff]  ;;  %v177_v21 = vld [vmem:[%s5342_s0 + $0x7a] sm:$0xff] }
  0x13   :  { %2531 = vmatpush3.bf16.msra.mxu0 %v3237_v45  ;;  %2688 = vmatpush3.bf16.msra.mxu1 %v3237_v45  ;;  %v2845_v10 = vpack.i.bf16 %v175_v8, %v174_v7  ;;  %v210_v11 = vld [vmem:[%s5342_s0 + $0x182] sm:$0xff]  ;;  %v138_v18 = vld [vmem:[%s5342_s0 + $0x191] sm:$0xff]  ;;  %v213_v25 = vld [vmem:[%s5342_s0 + $0x19a] sm:$0xff] }
  0x14   :  { %2741 = vrot.lane.b32.xlu1 %v2715_v15, %s3535_s29  ;;  %2532 = vmatprep.subr.bf16.mxu0 %v3532_v3  ;;  %v2855_v14 = vpack.i.bf16 %v211_v13, %v210_v11  ;;  %v102_v15 = vld [vmem:[%s5342_s0 + $0x71] sm:$0xff]  ;;  %v2880_v22 = vpack.i.bf16 %v139_v19, %v138_v18  ;;  %v105_v28 = vld [vmem:[%s5342_s0 + $0x89] sm:$0xff]  ;;  %v140_v30 = vld [vmem:[%s5342_s0 + $0x1a1] sm:$0xff] }
  0x15   :  { %2736 = vrot.lane.b32.xlu0 %v2735_v24, %s3534_s28  ;;  %2685 = vmatprep.subr.bf16.mxu1 %v3532_v3  ;;  %v2865_v17 = vpack.i.bf16 %v103_v16, %v102_v15  ;;  %v212_v24 = vld [vmem:[%s5342_s0 + $0x192] sm:$0xff]  ;;  %v141_v31 = vld [vmem:[%s5342_s0 + $0x1a9] sm:$0xff]  ;;  %v181_v45 = vld [vmem:[%s5342_s0 + $0x9a] sm:$0xff] }
  0x16   :  { %v2885_v26 = vpack.i.bf16 %v213_v25, %v212_v24  ;;  %v2910_v34 = vpack.i.bf16 %v141_v31, %v140_v30  ;;  %v214_v36 = vld [vmem:[%s5342_s0 + $0x1a2] sm:$0xff]  ;;  %v106_v39 = vld [vmem:[%s5342_s0 + $0x91] sm:$0xff]  ;;  %v107_v40 = vld [vmem:[%s5342_s0 + $0x99] sm:$0xff] }
  0x17   :  { %2533 = vmatpush3.bf16.msra.mxu0 %v3238_v49  ;;  %2689 = vmatpush3.bf16.msra.mxu1 %v3238_v49  ;;  %v2925_v41 = vpack.i.bf16 %v107_v40, %v106_v39  ;;  %v143_v43 = vld [vmem:[%s5342_s0 + $0x1b9] sm:$0xff]  ;;  %v108_v51 = vld [vmem:[%s5342_s0 + $0xa1] sm:$0xff]  ;;  %v183_v57 = vld [vmem:[%s5342_s0 + $0xaa] sm:$0xff] }
  0x18   :  { %2751 = vrot.lane.b32.xlu1 %v2730_v20, %s3535_s29  ;;  %v176_v20 = vld [vmem:[%s5342_s0 + $0x72] sm:$0xff]  ;;  %v217_v49 = vld [vmem:[%s5342_s0 + $0x1ba] sm:$0xff]  ;;  %v182_v56 = vld [vmem:[%s5342_s0 + $0xa2] sm:$0xff] }
  0x19   :  { %2746 = vrot.lane.b32.xlu0 %v2745_v27, %s3536_s7  ;;  %v2875_v23 = vpack.i.bf16 %v177_v21, %v176_v20  ;;  %v180_v44 = vld [vmem:[%s5342_s0 + $0x92] sm:$0xff]  ;;  %v144_v54 = vld [vmem:[%s5342_s0 + $0x1c1] sm:$0xff]  ;;  %v2965_v59 = vpack.i.bf16 %v183_v57, %v182_v56 }
  0x1a   :  { %v110_v63 = vld [vmem:[%s5342_s0 + $0xb1] sm:$0xff]  ;;  %v185_v7 = vld [vmem:[%s5342_s0 + $0xba] sm:$0xff] }
  0x1b   :  { %v146_v2 = vld [vmem:[%s5342_s0 + $0x1d1] sm:$0xff]  ;;  %v221_v15 = vld [vmem:[%s5342_s0 + $0x1da] sm:$0xff] }
  0x1c   :  { %2761 = vrot.lane.b32.xlu1 %v2760_v32, %s3536_s7  ;;  %v184_v6 = vld [vmem:[%s5342_s0 + $0xb2] sm:$0xff]  ;;  %v15_v16 = vld [vmem:[%s5342_s0] sm:$0xff] }
  0x1d   :  { %2756 = vrot.lane.b32.xlu0 %v2755_v33, %s3534_s28  ;;  %v179_v33 = vld [vmem:[%s5342_s0 + $0x8a] sm:$0xff]  ;;  %v2995_v13 = vpack.i.bf16 %v185_v7, %v184_v6  ;;  %v148_v40 = vld [vmem:[%s5342_s0 + $0x1e1] sm:$0xff] }
  0x1e   :  { %v223_v6 = vld [vmem:[%s5342_s0 + $0x1ea] sm:$0xff] }
  0x20   :  { %2771 = vrot.lane.b32.xlu1 %v2745_v27, %s3535_s29  ;;  %v104_v27 = vld [vmem:[%s5342_s0 + $0x81] sm:$0xff] }
  0x21   :  { %2766 = vrot.lane.b32.xlu0 %v2765_v37, %s3534_s28  ;;  %v2895_v29 = vpack.i.bf16 %v105_v28, %v104_v27  ;;  %v215_v37 = vld [vmem:[%s5342_s0 + $0x1aa] sm:$0xff] }
  0x22   :  { %v2915_v38 = vpack.i.bf16 %v215_v37, %v214_v36 }
  0x24   :  { %2781 = vrot.lane.b32.xlu1 %v2760_v32, %s3535_s29  ;;  %v178_v32 = vld [vmem:[%s5342_s0 + $0x82] sm:$0xff] }
  0x25   :  { %2776 = vrot.lane.b32.xlu0 %v2775_v42, %s3536_s7  ;;  %v2905_v35 = vpack.i.bf16 %v179_v33, %v178_v32  ;;  %v112_v32 = vld [vmem:[%s5342_s0 + $0xc1] sm:$0xff]  ;;  %v113_v33 = vld [vmem:[%s5342_s0 + $0xc9] sm:$0xff] }
  0x28   :  { %2791 = vrot.lane.b32.xlu1 %v2790_v47, %s3536_s7 }
  0x29   :  { %2786 = vrot.lane.b32.xlu0 %v2785_v48, %s3534_s28  ;;  %v216_v48 = vld [vmem:[%s5342_s0 + $0x1b2] sm:$0xff] }
  0x2a   :  { %v2945_v50 = vpack.i.bf16 %v217_v49, %v216_v48 }
  0x2c   :  { %2801 = vrot.lane.b32.xlu1 %v2775_v42, %s3535_s29  ;;  %v142_v42 = vld [vmem:[%s5342_s0 + $0x1b1] sm:$0xff] }
  0x2d   :  { %2796 = vrot.lane.b32.xlu0 %v2795_v52, %s3534_s28  ;;  %v2940_v46 = vpack.i.bf16 %v143_v43, %v142_v42  ;;  %v109_v52 = vld [vmem:[%s5342_s0 + $0xa9] sm:$0xff]  ;;  %v3015_v43 = vpack.i.bf16 %v113_v33, %v112_v32  ;;  %v189_v32 = vld [vmem:[%s5342_s0 + $0xda] sm:$0xff] }
  0x2e   :  { %v2955_v53 = vpack.i.bf16 %v109_v52, %v108_v51  ;;  %v53_v52 = vld [vmem:[%s5342_s0 + $0x130] sm:$0xff] }
  0x30   :  { %2811 = vrot.lane.b32.xlu1 %v2790_v47, %s3535_s29  ;;  %v2935_v47 = vpack.i.bf16 %v181_v45, %v180_v44  ;;  %v149_v44 = vld [vmem:[%s5342_s0 + $0x1e9] sm:$0xff] }
  0x31   :  { %2806 = vrot.lane.b32.xlu0 %v2805_v55, %s3536_s7  ;;  %v186_v45 = vld [vmem:[%s5342_s0 + $0xc2] sm:$0xff]  ;;  %v3030_v57 = vpack.i.bf16 %v149_v44, %v148_v40 }
  0x34   :  { %2821 = vrot.lane.b32.xlu1 %v2820_v60, %s3536_s7 }
  0x35   :  { %2816 = vrot.lane.b32.xlu0 %v2815_v61, %s3534_s28  ;;  %v219_v61 = vld [vmem:[%s5342_s0 + $0x1ca] sm:$0xff] }
  0x38   :  { %2831 = vrot.lane.b32.xlu1 %v2805_v55, %s3535_s29  ;;  %v145_v55 = vld [vmem:[%s5342_s0 + $0x1c9] sm:$0xff] }
  0x39   :  { %2826 = vrot.lane.b32.xlu0 %v2825_v0, %s3534_s28  ;;  %v2970_v58 = vpack.i.bf16 %v145_v55, %v144_v54  ;;  %v111_v0 = vld [vmem:[%s5342_s0 + $0xb9] sm:$0xff] }
  0x3a   :  { %v2985_v1 = vpack.i.bf16 %v111_v0, %v110_v63 }
  0x3c   :  { %2841 = vrot.lane.b32.xlu1 %v2820_v60, %s3535_s29  ;;  %v218_v60 = vld [vmem:[%s5342_s0 + $0x1c2] sm:$0xff] }
  0x3d   :  { %2836 = vrot.lane.b32.xlu0 %v2835_v4, %s3536_s7  ;;  %v2975_v62 = vpack.i.bf16 %v219_v61, %v218_v60 }
  0x40   :  { %2851 = vrot.lane.b32.xlu1 %v2850_v9, %s3536_s7 }
  0x41   :  { %2846 = vrot.lane.b32.xlu0 %v2845_v10, %s3534_s28 }
  0x44   :  { %2861 = vrot.lane.b32.xlu1 %v2835_v4, %s3535_s29  ;;  %v147_v4 = vld [vmem:[%s5342_s0 + $0x1d9] sm:$0xff] }
  0x45   :  { %2856 = vrot.lane.b32.xlu0 %v2855_v14, %s3534_s28  ;;  %v220_v14 = vld [vmem:[%s5342_s0 + $0x1d2] sm:$0xff] }
  0x48   :  { %2871 = vrot.lane.b32.xlu1 %v2850_v9, %s3535_s29  ;;  %v3000_v9 = vpack.i.bf16 %v147_v4, %v146_v2 }
  0x49   :  { %2866 = vrot.lane.b32.xlu0 %v2865_v17, %s3536_s7 }
  0x4c   :  { %2881 = vrot.lane.b32.xlu1 %v2880_v22, %s3536_s7 }
  0x4d   :  { %2876 = vrot.lane.b32.xlu0 %v2875_v23, %s3534_s28 }
  0x50   :  { %2891 = vrot.lane.b32.xlu1 %v2865_v17, %s3535_s29  ;;  %v16_v17 = vld [vmem:[%s5342_s0 + $0x8] sm:$0xff] }
  0x51   :  { %2886 = vrot.lane.b32.xlu0 %v2885_v26, %s3534_s28 }
  0x54   :  { %2901 = vrot.lane.b32.xlu1 %v2880_v22, %s3535_s29  ;;  %v3005_v22 = vpack.i.bf16 %v221_v15, %v220_v14 }
  0x55   :  { %2896 = vrot.lane.b32.xlu0 %v2895_v29, %s3536_s7 }
  0x58   :  { %2911 = vrot.lane.b32.xlu1 %v2910_v34, %s3536_s7 }
  0x59   :  { %2906 = vrot.lane.b32.xlu0 %v2905_v35, %s3534_s28  ;;  %v18_v35 = vld [vmem:[%s5342_s0 + $0x18] sm:$0xff] }
  0x5c   :  { %2921 = vrot.lane.b32.xlu1 %v2895_v29, %s3535_s29 }
  0x5d   :  { %2916 = vrot.lane.b32.xlu0 %v2915_v38, %s3534_s28 }
  0x60   :  { %2931 = vrot.lane.b32.xlu1 %v2910_v34, %s3535_s29  ;;  %v17_v34 = vld [vmem:[%s5342_s0 + $0x10] sm:$0xff] }
  0x61   :  { %2926 = vrot.lane.b32.xlu0 %v2925_v41, %s3536_s7 }
  0x64   :  { %2941 = vrot.lane.b32.xlu1 %v2940_v46, %s3536_s7 }
  0x65   :  { %2936 = vrot.lane.b32.xlu0 %v2935_v47, %s3534_s28 }
  0x68   :  { %2951 = vrot.lane.b32.xlu1 %v2925_v41, %s3535_s29 }
  0x69   :  { %2946 = vrot.lane.b32.xlu0 %v2945_v50, %s3534_s28 }
  0x6c   :  { %2961 = vrot.lane.b32.xlu1 %v2940_v46, %s3535_s29  ;;  %v187_v46 = vld [vmem:[%s5342_s0 + $0xca] sm:$0xff] }
  0x6d   :  { %2956 = vrot.lane.b32.xlu0 %v2955_v53, %s3536_s7 }
  0x70   :  { %2971 = vrot.lane.b32.xlu1 %v2970_v58, %s3536_s7 }
  0x71   :  { %2966 = vrot.lane.b32.xlu0 %v2965_v59, %s3534_s28 }
  0x74   :  { %2981 = vrot.lane.b32.xlu1 %v2955_v53, %s3535_s29  ;;  %v54_v53 = vld [vmem:[%s5342_s0 + $0x138] sm:$0xff] }
  0x75   :  { %2976 = vrot.lane.b32.xlu0 %v2975_v62, %s3534_s28 }
  0x76   :  { %v2707_v5 = vpop.permute.xlu1 %2706 }
  0x77   :  { %v2697_v8 = vpop.permute.xlu0 %2696  ;;  %v2709_v23 = vunpack.i.h.bf16 %v2707_v5  ;;  %v2708_v24 = vunpack.i.l.bf16 %v2707_v5  ;;  %v222_v5 = vld [vmem:[%s5342_s0 + $0x1e2] sm:$0xff] }
  0x78   :  { %2991 = vrot.lane.b32.xlu1 %v2970_v58, %s3535_s29  ;;  %v2699_v10 = vunpack.i.h.bf16 %v2697_v8  ;;  %v2698_v11 = vunpack.i.l.bf16 %v2697_v8  ;;  %v3025_v58 = vpack.i.bf16 %v187_v46, %v186_v45  ;;  %v3035_v14 = vpack.i.bf16 %v223_v6, %v222_v5  ;;  %v116_v5 = vld [vmem:[%s5342_s0 + $0xe1] sm:$0xff]  ;;  %v117_v6 = vld [vmem:[%s5342_s0 + $0xe9] sm:$0xff] }
  0x79   :  { %2986 = vrot.lane.b32.xlu0 %v2985_v1, %s3536_s7 }
  0x7a   :  { %v2712_v18 = vpop.permute.xlu1 %2711  ;;  %v1044_v25 = vsel %vm1043_vm1, %v15_v16, %v2698_v11  ;;  %v1045_v26 = vsel %vm1043_vm1, %v16_v17, %v2699_v10 }
  0x7b   :  { %v2702_v19 = vpop.permute.xlu0 %2701  ;;  %v2714_v27 = vunpack.i.h.bf16 %v2712_v18  ;;  %v2713_v28 = vunpack.i.l.bf16 %v2712_v18 }
  0x7c   :  { %v2704_v20 = vunpack.i.h.bf16 %v2702_v19  ;;  %v2703_v21 = vunpack.i.l.bf16 %v2702_v19  ;;  %3001 = vrot.lane.b32.xlu1 %v3000_v9, %s3536_s7 }
  0x7d   :  { %2996 = vrot.lane.b32.xlu0 %v2995_v13, %s3534_s28  ;;  %v1046_v47 = vsel %vm1043_vm1, %v17_v34, %v2713_v28  ;;  %v1047_v48 = vsel %vm1043_vm1, %v18_v35, %v2714_v27 }
  0x7e   :  { %v1118_v29 = vsel %vm1117_vm2, %v1044_v25, %v2703_v21  ;;  %v1119_v30 = vsel %vm1117_vm2, %v1045_v26, %v2704_v20  ;;  %v2722_v31 = vpop.permute.xlu1 %2721  ;;  %v114_v20 = vld [vmem:[%s5342_s0 + $0xd1] sm:$0xff]  ;;  %v115_v21 = vld [vmem:[%s5342_s0 + $0xd9] sm:$0xff] }
  0x7f   :  { %v2717_v36 = vpop.permute.xlu0 %2716  ;;  %v1192_v37 = vsel %vm1191_vm3, %v1118_v29, %v2708_v24  ;;  %v1193_v38 = vsel %vm1191_vm3, %v1119_v30, %v2709_v23  ;;  %v2724_v49 = vunpack.i.h.bf16 %v2722_v31  ;;  %v2723_v50 = vunpack.i.l.bf16 %v2722_v31  ;;  %v20_v23 = vld [vmem:[%s5342_s0 + $0x28] sm:$0xff]  ;;  %v150_v26 = vld [vmem:[%s5342_s0 + $0x1f1] sm:$0xff]  ;;  %v151_v30 = vld [vmem:[%s5342_s0 + $0x1f9] sm:$0xff] }
  0x80   :  { %3011 = vrot.lane.b32.xlu1 %v2985_v1, %s3535_s29  ;;  %v1265_v39 = vpack.c.bf16 %v1193_v38, %v1192_v37  ;;  %v2719_v41 = vunpack.i.h.bf16 %v2717_v36  ;;  %v2718_v42 = vunpack.i.l.bf16 %v2717_v36  ;;  %v3045_v29 = vpack.i.bf16 %v115_v21, %v114_v20  ;;  %v188_v31 = vld [vmem:[%s5342_s0 + $0xd2] sm:$0xff]  ;;  %v55_v38 = vld [vmem:[%s5342_s0 + $0x140] sm:$0xff] }
  0x81   :  { %3006 = vrot.lane.b32.xlu0 %v3005_v22, %s3534_s28  ;;  %v1082_v63 = vsel %vm1043_vm1, %v53_v52, %v2723_v50  ;;  %v1083_v0 = vsel %vm1043_vm1, %v54_v53, %v2724_v49  ;;  %v19_v22 = vld [vmem:[%s5342_s0 + $0x20] sm:$0xff]  ;;  %v3055_v44 = vpack.i.bf16 %v189_v32, %v188_v31 }
  0x82   :  { %2535 = vmatmul.mubr.msk.bf16.vlgmr.msra.gmra.mrb[0].mxu0 %vm1341_vm4, %v1265_v39  ;;  %v2732_v51 = vpop.permute.xlu1 %2731  ;;  %v1120_v59 = vsel %vm1117_vm2, %v1046_v47, %v2718_v42  ;;  %v1121_v60 = vsel %vm1117_vm2, %v1047_v48, %v2719_v41  ;;  %v56_v39 = vld [vmem:[%s5342_s0 + $0x148] sm:$0xff] }
  0x83   :  { %v2727_v54 = vpop.permute.xlu0 %2726  ;;  %2538 = vmatprep.mubr.msk.bf16.mxu0 %vm3533_vm0, %v3532_v3  ;;  %v2734_v61 = vunpack.i.h.bf16 %v2732_v51  ;;  %v2733_v62 = vunpack.i.l.bf16 %v2732_v51 }
  0x84   :  { %v2729_v55 = vunpack.i.h.bf16 %v2727_v54  ;;  %v2728_v56 = vunpack.i.l.bf16 %v2727_v54  ;;  %3021 = vrot.lane.b32.xlu1 %v3000_v9, %s3535_s29  ;;  %v224_v54 = vld [vmem:[%s5342_s0 + $0x1f2] sm:$0xff] }
  0x85   :  { %3016 = vrot.lane.b32.xlu0 %v3015_v43, %s3536_s7  ;;  %v1156_v11 = vsel %vm1117_vm2, %v1082_v63, %v2733_v62  ;;  %v1157_v13 = vsel %vm1117_vm2, %v1083_v0, %v2734_v61 }
  0x86   :  { %v1194_v1 = vsel %vm1191_vm3, %v1120_v59, %v2728_v56  ;;  %v1195_v2 = vsel %vm1191_vm3, %v1121_v60, %v2729_v55  ;;  %v2742_v4 = vpop.permute.xlu1 %2741  ;;  %v225_v55 = vld [vmem:[%s5342_s0 + $0x1fa] sm:$0xff] }
  0x87   :  { %v2737_v7 = vpop.permute.xlu0 %2736  ;;  %v1266_v8 = vpack.c.bf16 %v1195_v2, %v1194_v1  ;;  %v2744_v15 = vunpack.i.h.bf16 %v2742_v4  ;;  %v2743_v16 = vunpack.i.l.bf16 %v2742_v4  ;;  %v3065_v62 = vpack.i.bf16 %v225_v55, %v224_v54  ;;  %v118_v54 = vld [vmem:[%s5342_s0 + $0xf1] sm:$0xff]  ;;  %v119_v55 = vld [vmem:[%s5342_s0 + $0xf9] sm:$0xff] }
  0x88   :  { %v2739_v9 = vunpack.i.h.bf16 %v2737_v7  ;;  %v2738_v10 = vunpack.i.l.bf16 %v2737_v7  ;;  %3031 = vrot.lane.b32.xlu1 %v3030_v57, %s3536_s7  ;;  %v21_v7 = vld [vmem:[%s5342_s0 + $0x30] sm:$0xff] }
  0x89   :  { %3026 = vrot.lane.b32.xlu0 %v3025_v58, %s3534_s28  ;;  %v1048_v33 = vsel %vm1043_vm1, %v19_v22, %v2743_v16  ;;  %v1049_v34 = vsel %vm1043_vm1, %v20_v23, %v2744_v15  ;;  %v3075_v15 = vpack.i.bf16 %v117_v6, %v116_v5  ;;  %v153_v16 = vld [vmem:[%s5342_s0 + $0x209] sm:$0xff] }
  0x8a   :  { %v1230_v17 = vsel %vm1191_vm3, %v1156_v11, %v2738_v10  ;;  %v1231_v18 = vsel %vm1191_vm3, %v1157_v13, %v2739_v9  ;;  %2539 = vmatmul.mubr.msk.bf16.gmra.mrb[4].mxu0 %vm1341_vm4, %v1266_v8  ;;  %v2752_v19 = vpop.permute.xlu1 %2751  ;;  %v22_v8 = vld [vmem:[%s5342_s0 + $0x38] sm:$0xff]  ;;  %v152_v11 = vld [vmem:[%s5342_s0 + $0x201] sm:$0xff] }
  0x8b   :  { %v2747_v24 = vpop.permute.xlu0 %2746  ;;  %v1284_v25 = vpack.c.bf16 %v1231_v18, %v1230_v17  ;;  %2542 = vmatprep.mubr.msk.bf16.mxu0 %vm3533_vm0, %v3532_v3  ;;  %v2754_v35 = vunpack.i.h.bf16 %v2752_v19  ;;  %v2753_v36 = vunpack.i.l.bf16 %v2752_v19  ;;  %v190_v17 = vld [vmem:[%s5342_s0 + $0xe2] sm:$0xff]  ;;  %v191_v18 = vld [vmem:[%s5342_s0 + $0xea] sm:$0xff] }
  0x8c   :  { %3041 = vrot.lane.b32.xlu1 %v3015_v43, %s3535_s29  ;;  %v2749_v27 = vunpack.i.h.bf16 %v2747_v24  ;;  %v2748_v28 = vunpack.i.l.bf16 %v2747_v24  ;;  %v3060_v43 = vpack.i.bf16 %v151_v30, %v150_v26  ;;  %v57_v24 = vld [vmem:[%s5342_s0 + $0x150] sm:$0xff]  ;;  %v3085_v30 = vpack.i.bf16 %v191_v18, %v190_v17 }
  0x8d   :  { %3036 = vrot.lane.b32.xlu0 %v3035_v14, %s3534_s28  ;;  %2611 = vmatmul.mubr.msk.bf16.vlgmr.msra.gmra.mrb[0].mxu1 %vm1341_vm4, %v1284_v25  ;;  %v1084_v49 = vsel %vm1043_vm1, %v55_v38, %v2753_v36  ;;  %v1085_v50 = vsel %vm1043_vm1, %v56_v39, %v2754_v35  ;;  %v58_v25 = vld [vmem:[%s5342_s0 + $0x158] sm:$0xff] }
  0x8e   :  { %v2762_v37 = vpop.permute.xlu1 %2761  ;;  %2614 = vmatprep.mubr.msk.bf16.mxu1 %vm3533_vm0, %v3532_v3  ;;  %v1122_v45 = vsel %vm1117_vm2, %v1048_v33, %v2748_v28  ;;  %v1123_v46 = vsel %vm1117_vm2, %v1049_v34, %v2749_v27 }
  0x8f   :  { %v2757_v40 = vpop.permute.xlu0 %2756  ;;  %v2764_v47 = vunpack.i.h.bf16 %v2762_v37  ;;  %v2763_v48 = vunpack.i.l.bf16 %v2762_v37 }
  0x90   :  { %v2759_v41 = vunpack.i.h.bf16 %v2757_v40  ;;  %v2758_v42 = vunpack.i.l.bf16 %v2757_v40  ;;  %3051 = vrot.lane.b32.xlu1 %v3030_v57, %s3535_s29  ;;  %v226_v40 = vld [vmem:[%s5342_s0 + $0x202] sm:$0xff] }
  0x91   :  { %3046 = vrot.lane.b32.xlu0 %v3045_v29, %s3536_s7  ;;  %v1158_v60 = vsel %vm1117_vm2, %v1084_v49, %v2763_v48  ;;  %v1159_v61 = vsel %vm1117_vm2, %v1085_v50, %v2764_v47 }
  0x92   :  { %v1196_v51 = vsel %vm1191_vm3, %v1122_v45, %v2758_v42  ;;  %v1197_v52 = vsel %vm1191_vm3, %v1123_v46, %v2759_v41  ;;  %v2772_v53 = vpop.permute.xlu1 %2771  ;;  %v227_v41 = vld [vmem:[%s5342_s0 + $0x20a] sm:$0xff] }
  0x93   :  { %v2767_v56 = vpop.permute.xlu0 %2766  ;;  %v1267_v57 = vpack.c.bf16 %v1197_v52, %v1196_v51  ;;  %v2774_v63 = vunpack.i.h.bf16 %v2772_v53  ;;  %v2773_v0 = vunpack.i.l.bf16 %v2772_v53  ;;  %v3095_v48 = vpack.i.bf16 %v227_v41, %v226_v40  ;;  %v120_v40 = vld [vmem:[%s5342_s0 + $0x101] sm:$0xff]  ;;  %v121_v41 = vld [vmem:[%s5342_s0 + $0x109] sm:$0xff] }
  0x94   :  { %v2769_v58 = vunpack.i.h.bf16 %v2767_v56  ;;  %v2768_v59 = vunpack.i.l.bf16 %v2767_v56  ;;  %3061 = vrot.lane.b32.xlu1 %v3060_v43, %s3536_s7  ;;  %v23_v56 = vld [vmem:[%s5342_s0 + $0x40] sm:$0xff] }
  0x95   :  { %3056 = vrot.lane.b32.xlu0 %v3055_v44, %s3534_s28  ;;  %2543 = vmatmul.mubr.msk.bf16.gmra.mrb[8].mxu0 %vm1341_vm4, %v1267_v57  ;;  %v1050_v19 = vsel %vm1043_vm1, %v21_v7, %v2773_v0  ;;  %v1051_v20 = vsel %vm1043_vm1, %v22_v8, %v2774_v63  ;;  %v24_v57 = vld [vmem:[%s5342_s0 + $0x48] sm:$0xff]  ;;  %v3105_v63 = vpack.i.bf16 %v119_v55, %v118_v54  ;;  %v155_v0 = vld [vmem:[%s5342_s0 + $0x219] sm:$0xff] }
  0x96   :  { %v1232_v1 = vsel %vm1191_vm3, %v1158_v60, %v2768_v59  ;;  %v1233_v2 = vsel %vm1191_vm3, %v1159_v61, %v2769_v58  ;;  %v2782_v4 = vpop.permute.xlu1 %2781  ;;  %2546 = vmatprep.mubr.msk.bf16.mxu0 %vm3533_vm0, %v3532_v3  ;;  %v154_v60 = vld [vmem:[%s5342_s0 + $0x211] sm:$0xff] }
  0x97   :  { %v1285_v9 = vpack.c.bf16 %v1233_v2, %v1232_v1  ;;  %v2777_v10 = vpop.permute.xlu0 %2776  ;;  %v2784_v21 = vunpack.i.h.bf16 %v2782_v4  ;;  %v2783_v22 = vunpack.i.l.bf16 %v2782_v4  ;;  %v192_v1 = vld [vmem:[%s5342_s0 + $0xf2] sm:$0xff]  ;;  %v193_v2 = vld [vmem:[%s5342_s0 + $0xfa] sm:$0xff] }
  0x98   :  { %3071 = vrot.lane.b32.xlu1 %v3045_v29, %s3535_s29  ;;  %v2779_v13 = vunpack.i.h.bf16 %v2777_v10  ;;  %v2778_v14 = vunpack.i.l.bf16 %v2777_v10  ;;  %v3090_v29 = vpack.i.bf16 %v153_v16, %v152_v11  ;;  %v60_v10 = vld [vmem:[%s5342_s0 + $0x168] sm:$0xff]  ;;  %v3115_v16 = vpack.i.bf16 %v193_v2, %v192_v1 }
  0x99   :  { %3066 = vrot.lane.b32.xlu0 %v3065_v62, %s3534_s28  ;;  %2615 = vmatmul.mubr.msk.bf16.gmra.mrb[4].mxu1 %vm1341_vm4, %v1285_v9  ;;  %v1086_v35 = vsel %vm1043_vm1, %v57_v24, %v2783_v22  ;;  %v1087_v36 = vsel %vm1043_vm1, %v58_v25, %v2784_v21  ;;  %v59_v9 = vld [vmem:[%s5342_s0 + $0x160] sm:$0xff] }
  0x9a   :  { %v2792_v23 = vpop.permute.xlu1 %2791  ;;  %2618 = vmatprep.mubr.msk.bf16.mxu1 %vm3533_vm0, %v3532_v3  ;;  %v1124_v31 = vsel %vm1117_vm2, %v1050_v19, %v2778_v14  ;;  %v1125_v32 = vsel %vm1117_vm2, %v1051_v20, %v2779_v13 }
  0x9b   :  { %v2787_v26 = vpop.permute.xlu0 %2786  ;;  %v2794_v33 = vunpack.i.h.bf16 %v2792_v23  ;;  %v2793_v34 = vunpack.i.l.bf16 %v2792_v23 }
  0x9c   :  { %v2789_v27 = vunpack.i.h.bf16 %v2787_v26  ;;  %v2788_v28 = vunpack.i.l.bf16 %v2787_v26  ;;  %3081 = vrot.lane.b32.xlu1 %v3060_v43, %s3535_s29  ;;  %v228_v26 = vld [vmem:[%s5342_s0 + $0x212] sm:$0xff] }
  0x9d   :  { %3076 = vrot.lane.b32.xlu0 %v3075_v15, %s3536_s7  ;;  %v1160_v46 = vsel %vm1117_vm2, %v1086_v35, %v2793_v34  ;;  %v1161_v47 = vsel %vm1117_vm2, %v1087_v36, %v2794_v33 }
  0x9e   :  { %v1198_v37 = vsel %vm1191_vm3, %v1124_v31, %v2788_v28  ;;  %v1199_v38 = vsel %vm1191_vm3, %v1125_v32, %v2789_v27  ;;  %v2802_v39 = vpop.permute.xlu1 %2801  ;;  %v229_v27 = vld [vmem:[%s5342_s0 + $0x21a] sm:$0xff] }
  0x9f   :  { %v1268_v42 = vpack.c.bf16 %v1199_v38, %v1198_v37  ;;  %v2797_v43 = vpop.permute.xlu0 %2796  ;;  %v2804_v49 = vunpack.i.h.bf16 %v2802_v39  ;;  %v2803_v50 = vunpack.i.l.bf16 %v2802_v39  ;;  %v3125_v34 = vpack.i.bf16 %v229_v27, %v228_v26  ;;  %v122_v26 = vld [vmem:[%s5342_s0 + $0x111] sm:$0xff]  ;;  %v123_v27 = vld [vmem:[%s5342_s0 + $0x119] sm:$0xff] }
  0xa0   :  { %v2799_v44 = vunpack.i.h.bf16 %v2797_v43  ;;  %v2798_v45 = vunpack.i.l.bf16 %v2797_v43  ;;  %3091 = vrot.lane.b32.xlu1 %v3090_v29, %s3536_s7  ;;  %v26_v43 = vld [vmem:[%s5342_s0 + $0x58] sm:$0xff] }
  0xa1   :  { %3086 = vrot.lane.b32.xlu0 %v3085_v30, %s3534_s28  ;;  %2547 = vmatmul.mubr.msk.bf16.gmra.mrb[12].mxu0 %vm1341_vm4, %v1268_v42  ;;  %v1052_v4 = vsel %vm1043_vm1, %v23_v56, %v2803_v50  ;;  %v1053_v5 = vsel %vm1043_vm1, %v24_v57, %v2804_v49  ;;  %v25_v42 = vld [vmem:[%s5342_s0 + $0x50] sm:$0xff]  ;;  %v3135_v49 = vpack.i.bf16 %v121_v41, %v120_v40 }
  0xa2   :  { %v1234_v51 = vsel %vm1191_vm3, %v1160_v46, %v2798_v45  ;;  %v1235_v52 = vsel %vm1191_vm3, %v1161_v47, %v2799_v44  ;;  %v2812_v53 = vpop.permute.xlu1 %2811  ;;  %2550 = vmatprep.mubr.msk.bf16.mxu0 %vm3533_vm0, %v3532_v3  ;;  %v156_v46 = vld [vmem:[%s5342_s0 + $0x221] sm:$0xff]  ;;  %v157_v50 = vld [vmem:[%s5342_s0 + $0x229] sm:$0xff] }
  0xa3   :  { %v1286_v58 = vpack.c.bf16 %v1235_v52, %v1234_v51  ;;  %v2807_v59 = vpop.permute.xlu0 %2806  ;;  %v2814_v6 = vunpack.i.h.bf16 %v2812_v53  ;;  %v2813_v7 = vunpack.i.l.bf16 %v2812_v53  ;;  %v194_v51 = vld [vmem:[%s5342_s0 + $0x102] sm:$0xff]  ;;  %v195_v52 = vld [vmem:[%s5342_s0 + $0x10a] sm:$0xff] }
  0xa4   :  { %3101 = vrot.lane.b32.xlu1 %v3075_v15, %s3535_s29  ;;  %v2809_v61 = vunpack.i.h.bf16 %v2807_v59  ;;  %v2808_v62 = vunpack.i.l.bf16 %v2807_v59  ;;  %v3120_v15 = vpack.i.bf16 %v155_v0, %v154_v60  ;;  %v62_v59 = vld [vmem:[%s5342_s0 + $0x178] sm:$0xff]  ;;  %v3145_v0 = vpack.i.bf16 %v195_v52, %v194_v51 }
  0xa5   :  { %3096 = vrot.lane.b32.xlu0 %v3095_v48, %s3534_s28  ;;  %2619 = vmatmul.mubr.msk.bf16.gmra.mrb[8].mxu1 %vm1341_vm4, %v1286_v58  ;;  %v1088_v21 = vsel %vm1043_vm1, %v59_v9, %v2813_v7  ;;  %v1089_v22 = vsel %vm1043_vm1, %v60_v10, %v2814_v6  ;;  %v61_v58 = vld [vmem:[%s5342_s0 + $0x170] sm:$0xff] }
  0xa6   :  { %v2822_v8 = vpop.permute.xlu1 %2821  ;;  %2622 = vmatprep.mubr.msk.bf16.mxu1 %vm3533_vm0, %v3532_v3  ;;  %v1126_v17 = vsel %vm1117_vm2, %v1052_v4, %v2808_v62  ;;  %v1127_v18 = vsel %vm1117_vm2, %v1053_v5, %v2809_v61 }
  0xa7   :  { %v2817_v11 = vpop.permute.xlu0 %2816  ;;  %v2824_v19 = vunpack.i.h.bf16 %v2822_v8  ;;  %v2823_v20 = vunpack.i.l.bf16 %v2822_v8 }
  0xa8   :  { %v2819_v13 = vunpack.i.h.bf16 %v2817_v11  ;;  %v2818_v14 = vunpack.i.l.bf16 %v2817_v11  ;;  %3111 = vrot.lane.b32.xlu1 %v3090_v29, %s3535_s29  ;;  %v230_v11 = vld [vmem:[%s5342_s0 + $0x222] sm:$0xff] }
  0xa9   :  { %3106 = vrot.lane.b32.xlu0 %v3105_v63, %s3536_s7  ;;  %v1162_v32 = vsel %vm1117_vm2, %v1088_v21, %v2823_v20  ;;  %v1163_v33 = vsel %vm1117_vm2, %v1089_v22, %v2824_v19 }
  0xaa   :  { %v1200_v23 = vsel %vm1191_vm3, %v1126_v17, %v2818_v14  ;;  %v1201_v24 = vsel %vm1191_vm3, %v1127_v18, %v2819_v13  ;;  %v2832_v25 = vpop.permute.xlu1 %2831  ;;  %v231_v13 = vld [vmem:[%s5342_s0 + $0x22a] sm:$0xff] }
  0xab   :  { %v1269_v28 = vpack.c.bf16 %v1201_v24, %v1200_v23  ;;  %v2827_v29 = vpop.permute.xlu0 %2826  ;;  %v2834_v35 = vunpack.i.h.bf16 %v2832_v25  ;;  %v2833_v36 = vunpack.i.l.bf16 %v2832_v25  ;;  %v3155_v20 = vpack.i.bf16 %v231_v13, %v230_v11  ;;  %v124_v11 = vld [vmem:[%s5342_s0 + $0x121] sm:$0xff]  ;;  %v125_v13 = vld [vmem:[%s5342_s0 + $0x129] sm:$0xff] }
  0xac   :  { %v2829_v30 = vunpack.i.h.bf16 %v2827_v29  ;;  %v2828_v31 = vunpack.i.l.bf16 %v2827_v29  ;;  %3121 = vrot.lane.b32.xlu1 %v3120_v15, %s3536_s7  ;;  %v28_v29 = vld [vmem:[%s5342_s0 + $0x68] sm:$0xff] }
  0xad   :  { %3116 = vrot.lane.b32.xlu0 %v3115_v16, %s3534_s28  ;;  %2551 = vmatmul.mubr.msk.bf16.gmra.mrb[16].mxu0 %vm1341_vm4, %v1269_v28  ;;  %v1054_v53 = vsel %vm1043_vm1, %v25_v42, %v2833_v36  ;;  %v1055_v54 = vsel %vm1043_vm1, %v26_v43, %v2834_v35  ;;  %v27_v28 = vld [vmem:[%s5342_s0 + $0x60] sm:$0xff]  ;;  %v3165_v35 = vpack.i.bf16 %v123_v27, %v122_v26 }
  0xae   :  { %v1236_v37 = vsel %vm1191_vm3, %v1162_v32, %v2828_v31  ;;  %v1237_v38 = vsel %vm1191_vm3, %v1163_v33, %v2829_v30  ;;  %v2842_v39 = vpop.permute.xlu1 %2841  ;;  %2554 = vmatprep.mubr.msk.bf16.mxu0 %vm3533_vm0, %v3532_v3  ;;  %v158_v32 = vld [vmem:[%s5342_s0 + $0x231] sm:$0xff]  ;;  %v159_v36 = vld [vmem:[%s5342_s0 + $0x239] sm:$0xff] }
  0xaf   :  { %v1287_v44 = vpack.c.bf16 %v1237_v38, %v1236_v37  ;;  %v2837_v45 = vpop.permute.xlu0 %2836  ;;  %v2844_v55 = vunpack.i.h.bf16 %v2842_v39  ;;  %v2843_v56 = vunpack.i.l.bf16 %v2842_v39  ;;  %v196_v37 = vld [vmem:[%s5342_s0 + $0x112] sm:$0xff]  ;;  %v197_v38 = vld [vmem:[%s5342_s0 + $0x11a] sm:$0xff] }
  0xb0   :  { %3131 = vrot.lane.b32.xlu1 %v3105_v63, %s3535_s29  ;;  %v2839_v47 = vunpack.i.h.bf16 %v2837_v45  ;;  %v2838_v48 = vunpack.i.l.bf16 %v2837_v45  ;;  %v3150_v63 = vpack.i.bf16 %v157_v50, %v156_v46  ;;  %v64_v45 = vld [vmem:[%s5342_s0 + $0x188] sm:$0xff]  ;;  %v3175_v50 = vpack.i.bf16 %v197_v38, %v196_v37 }
  0xb1   :  { %3126 = vrot.lane.b32.xlu0 %v3125_v34, %s3534_s28  ;;  %2623 = vmatmul.mubr.msk.bf16.gmra.mrb[12].mxu1 %vm1341_vm4, %v1287_v44  ;;  %v1090_v6 = vsel %vm1043_vm1, %v61_v58, %v2843_v56  ;;  %v1091_v7 = vsel %vm1043_vm1, %v62_v59, %v2844_v55  ;;  %v63_v44 = vld [vmem:[%s5342_s0 + $0x180] sm:$0xff] }
  0xb2   :  { %v2852_v57 = vpop.permute.xlu1 %2851  ;;  %2626 = vmatprep.mubr.msk.bf16.mxu1 %vm3533_vm0, %v3532_v3  ;;  %v1128_v1 = vsel %vm1117_vm2, %v1054_v53, %v2838_v48  ;;  %v1129_v2 = vsel %vm1117_vm2, %v1055_v54, %v2839_v47 }
  0xb3   :  { %v2847_v60 = vpop.permute.xlu0 %2846  ;;  %v2854_v4 = vunpack.i.h.bf16 %v2852_v57  ;;  %v2853_v5 = vunpack.i.l.bf16 %v2852_v57 }
  0xb4   :  { %v2849_v61 = vunpack.i.h.bf16 %v2847_v60  ;;  %v2848_v62 = vunpack.i.l.bf16 %v2847_v60  ;;  %3141 = vrot.lane.b32.xlu1 %v3120_v15, %s3535_s29  ;;  %v232_v60 = vld [vmem:[%s5342_s0 + $0x232] sm:$0xff] }
  0xb5   :  { %3136 = vrot.lane.b32.xlu0 %v3135_v49, %s3536_s7  ;;  %v1164_v18 = vsel %vm1117_vm2, %v1090_v6, %v2853_v5  ;;  %v1165_v19 = vsel %vm1117_vm2, %v1091_v7, %v2854_v4 }
  0xb6   :  { %v1202_v8 = vsel %vm1191_vm3, %v1128_v1, %v2848_v62  ;;  %v1203_v9 = vsel %vm1191_vm3, %v1129_v2, %v2849_v61  ;;  %v2862_v10 = vpop.permute.xlu1 %2861  ;;  %v233_v61 = vld [vmem:[%s5342_s0 + $0x23a] sm:$0xff] }
  0xb7   :  { %v1270_v14 = vpack.c.bf16 %v1203_v9, %v1202_v8  ;;  %v2857_v15 = vpop.permute.xlu0 %2856  ;;  %v2864_v21 = vunpack.i.h.bf16 %v2862_v10  ;;  %v2863_v22 = vunpack.i.l.bf16 %v2862_v10  ;;  %v3185_v5 = vpack.i.bf16 %v233_v61, %v232_v60  ;;  %v31_v60 = vld [vmem:[%s5342_s0 + $0x80] sm:$0xff]  ;;  %v32_v61 = vld [vmem:[%s5342_s0 + $0x88] sm:$0xff] }
  0xb8   :  { %v2859_v16 = vunpack.i.h.bf16 %v2857_v15  ;;  %v2858_v17 = vunpack.i.l.bf16 %v2857_v15  ;;  %3151 = vrot.lane.b32.xlu1 %v3150_v63, %s3536_s7  ;;  %v30_v15 = vld [vmem:[%s5342_s0 + $0x78] sm:$0xff] }
  0xb9   :  { %3146 = vrot.lane.b32.xlu0 %v3145_v0, %s3534_s28  ;;  %2555 = vmatmul.mubr.msk.bf16.gmra.mrb[20].mxu0 %vm1341_vm4, %v1270_v14  ;;  %v1056_v39 = vsel %vm1043_vm1, %v27_v28, %v2863_v22  ;;  %v1057_v40 = vsel %vm1043_vm1, %v28_v29, %v2864_v21  ;;  %v29_v14 = vld [vmem:[%s5342_s0 + $0x70] sm:$0xff]  ;;  %v3195_v21 = vpack.i.bf16 %v125_v13, %v124_v11  ;;  %v67_v11 = vld [vmem:[%s5342_s0 + $0x1a0] sm:$0xff]  ;;  %v68_v13 = vld [vmem:[%s5342_s0 + $0x1a8] sm:$0xff] }
  0xba   :  { %v1238_v23 = vsel %vm1191_vm3, %v1164_v18, %v2858_v17  ;;  %v1239_v24 = vsel %vm1191_vm3, %v1165_v19, %v2859_v16  ;;  %v2872_v25 = vpop.permute.xlu1 %2871  ;;  %2558 = vmatprep.mubr.msk.bf16.mxu0 %vm3533_vm0, %v3532_v3  ;;  %v161_v18 = vld [vmem:[%s5342_s0 + $0x241] sm:$0xff]  ;;  %v162_v22 = vld [vmem:[%s5342_s0 + $0x249] sm:$0xff] }
  0xbb   :  { %v1288_v30 = vpack.c.bf16 %v1239_v24, %v1238_v23  ;;  %v2867_v31 = vpop.permute.xlu0 %2866  ;;  %v2874_v41 = vunpack.i.h.bf16 %v2872_v25  ;;  %v2873_v42 = vunpack.i.l.bf16 %v2872_v25  ;;  %v198_v23 = vld [vmem:[%s5342_s0 + $0x122] sm:$0xff]  ;;  %v199_v24 = vld [vmem:[%s5342_s0 + $0x12a] sm:$0xff] }
  0xbc   :  { %3161 = vrot.lane.b32.xlu1 %v3135_v49, %s3535_s29  ;;  %v2869_v33 = vunpack.i.h.bf16 %v2867_v31  ;;  %v2868_v34 = vunpack.i.l.bf16 %v2867_v31  ;;  %v3180_v49 = vpack.i.bf16 %v159_v36, %v158_v32  ;;  %v66_v31 = vld [vmem:[%s5342_s0 + $0x198] sm:$0xff]  ;;  %v3205_v36 = vpack.i.bf16 %v199_v24, %v198_v23 }
  0xbd   :  { %3156 = vrot.lane.b32.xlu0 %v3155_v20, %s3534_s28  ;;  %2627 = vmatmul.mubr.msk.bf16.gmra.mrb[16].mxu1 %vm1341_vm4, %v1288_v30  ;;  %v1092_v55 = vsel %vm1043_vm1, %v63_v44, %v2873_v42  ;;  %v1093_v56 = vsel %vm1043_vm1, %v64_v45, %v2874_v41  ;;  %v65_v30 = vld [vmem:[%s5342_s0 + $0x190] sm:$0xff] }
  0xbe   :  { %v2882_v43 = vpop.permute.xlu1 %2881  ;;  %2630 = vmatprep.mubr.msk.bf16.mxu1 %vm3533_vm0, %v3532_v3  ;;  %v1130_v51 = vsel %vm1117_vm2, %v1056_v39, %v2868_v34  ;;  %v1131_v52 = vsel %vm1117_vm2, %v1057_v40, %v2869_v33 }
  0xbf   :  { %v2877_v46 = vpop.permute.xlu0 %2876  ;;  %v2884_v53 = vunpack.i.h.bf16 %v2882_v43  ;;  %v2883_v54 = vunpack.i.l.bf16 %v2882_v43 }
  0xc0   :  { %v2879_v47 = vunpack.i.h.bf16 %v2877_v46  ;;  %v2878_v48 = vunpack.i.l.bf16 %v2877_v46  ;;  %3171 = vrot.lane.b32.xlu1 %v3150_v63, %s3535_s29  ;;  %v234_v46 = vld [vmem:[%s5342_s0 + $0x242] sm:$0xff] }
  0xc1   :  { %3166 = vrot.lane.b32.xlu0 %v3165_v35, %s3536_s7  ;;  %v1166_v2 = vsel %vm1117_vm2, %v1092_v55, %v2883_v54  ;;  %v1167_v4 = vsel %vm1117_vm2, %v1093_v56, %v2884_v53 }
  0xc2   :  { %v1204_v57 = vsel %vm1191_vm3, %v1130_v51, %v2878_v48  ;;  %v1205_v58 = vsel %vm1191_vm3, %v1131_v52, %v2879_v47  ;;  %v2892_v59 = vpop.permute.xlu1 %2891  ;;  %v235_v47 = vld [vmem:[%s5342_s0 + $0x24a] sm:$0xff] }
  0xc3   :  { %v1271_v62 = vpack.c.bf16 %v1205_v58, %v1204_v57  ;;  %v2887_v63 = vpop.permute.xlu0 %2886  ;;  %v2894_v6 = vunpack.i.h.bf16 %v2892_v59  ;;  %v2893_v7 = vunpack.i.l.bf16 %v2892_v59  ;;  %v3215_v54 = vpack.i.bf16 %v235_v47, %v234_v46 }
  0xc4   :  { %v2889_v0 = vunpack.i.h.bf16 %v2887_v63  ;;  %v2888_v1 = vunpack.i.l.bf16 %v2887_v63  ;;  %3181 = vrot.lane.b32.xlu1 %v3180_v49, %s3536_s7 }
  0xc5   :  { %3176 = vrot.lane.b32.xlu0 %v3175_v50, %s3534_s28  ;;  %2559 = vmatmul.mubr.msk.bf16.gmra.mrb[24].mxu0 %vm1341_vm4, %v1271_v62  ;;  %v1058_v25 = vsel %vm1043_vm1, %v29_v14, %v2893_v7  ;;  %v1059_v26 = vsel %vm1043_vm1, %v30_v15, %v2894_v6 }
  0xc6   :  { %v1240_v8 = vsel %vm1191_vm3, %v1166_v2, %v2888_v1  ;;  %v1241_v9 = vsel %vm1191_vm3, %v1167_v4, %v2889_v0  ;;  %v2902_v10 = vpop.permute.xlu1 %2901  ;;  %2562 = vmatprep.mubr.msk.bf16.mxu0 %vm3533_vm0, %v3532_v3  ;;  %v160_v2 = vld [vmem:[%s5342_s0 + $0x241] sm:$0x3]  ;;  %v200_v4 = vld [vmem:[%s5342_s0 + $0x132] sm:$0xff] }
  0xc7   :  { %v1289_v16 = vpack.c.bf16 %v1241_v9, %v1240_v8  ;;  %v2897_v17 = vpop.permute.xlu0 %2896  ;;  %v2904_v27 = vunpack.i.h.bf16 %v2902_v10  ;;  %v2903_v28 = vunpack.i.l.bf16 %v2902_v10 }
  0xc8   :  { %3191 = vrot.lane.b32.xlu1 %v3165_v35, %s3535_s29  ;;  %v2899_v19 = vunpack.i.h.bf16 %v2897_v17  ;;  %v2898_v20 = vunpack.i.l.bf16 %v2897_v17  ;;  %v3210_v35 = vpack.i.bf16 %v162_v22, %v161_v18  ;;  %v163_v22 = vld [vmem:[%s5342_s0 + $0x251] sm:$0x3] }
  0xc9   :  { %3186 = vrot.lane.b32.xlu0 %v3185_v5, %s3534_s28  ;;  %2631 = vmatmul.mubr.msk.bf16.gmra.mrb[20].mxu1 %vm1341_vm4, %v1289_v16  ;;  %v1094_v41 = vsel %vm1043_vm1, %v65_v30, %v2903_v28  ;;  %v1095_v42 = vsel %vm1043_vm1, %v66_v31, %v2904_v27  ;;  %v201_v5 = vld [vmem:[%s5342_s0 + $0x13a] sm:$0xff] }
  0xca   :  { %v2912_v29 = vpop.permute.xlu1 %2911  ;;  %2634 = vmatprep.mubr.msk.bf16.mxu1 %vm3533_vm0, %v3532_v3  ;;  %v1132_v37 = vsel %vm1117_vm2, %v1058_v25, %v2898_v20  ;;  %v1133_v38 = vsel %vm1117_vm2, %v1059_v26, %v2899_v19  ;;  %v3230_v17 = vpack.i.bf16 %v201_v5, %v200_v4 }
  0xcb   :  { %v2907_v32 = vpop.permute.xlu0 %2906  ;;  %v2914_v39 = vunpack.i.h.bf16 %v2912_v29  ;;  %v2913_v40 = vunpack.i.l.bf16 %v2912_v29 }
  0xcc   :  { %v2909_v33 = vunpack.i.h.bf16 %v2907_v32  ;;  %v2908_v34 = vunpack.i.l.bf16 %v2907_v32  ;;  %3201 = vrot.lane.b32.xlu1 %v3180_v49, %s3535_s29 }
  0xcd   :  { %3196 = vrot.lane.b32.xlu0 %v3195_v21, %s3536_s7  ;;  %v1168_v52 = vsel %vm1117_vm2, %v1094_v41, %v2913_v40  ;;  %v1169_v53 = vsel %vm1117_vm2, %v1095_v42, %v2914_v39  ;;  %v33_v39 = vld [vmem:[%s5342_s0 + $0x90] sm:$0xff]  ;;  %v34_v40 = vld [vmem:[%s5342_s0 + $0x98] sm:$0xff] }
  0xce   :  { %v1206_v43 = vsel %vm1191_vm3, %v1132_v37, %v2908_v34  ;;  %v1207_v44 = vsel %vm1191_vm3, %v1133_v38, %v2909_v33  ;;  %v2922_v45 = vpop.permute.xlu1 %2921  ;;  %v236_v38 = vld [vmem:[%s5342_s0 + $0x252] sm:$0x3] }
  0xcf   :  { %v1272_v48 = vpack.c.bf16 %v1207_v44, %v1206_v43  ;;  %v2917_v49 = vpop.permute.xlu0 %2916  ;;  %v2924_v55 = vunpack.i.h.bf16 %v2922_v45  ;;  %v2923_v56 = vunpack.i.l.bf16 %v2922_v45 }
  0xd0   :  { %v2919_v50 = vunpack.i.h.bf16 %v2917_v49  ;;  %v2918_v51 = vunpack.i.l.bf16 %v2917_v49  ;;  %3211 = vrot.lane.b32.xlu1 %v3210_v35, %s3536_s7 }
  0xd1   :  { %3206 = vrot.lane.b32.xlu0 %v3205_v36, %s3534_s28  ;;  %2563 = vmatmul.mubr.msk.bf16.gmra.mrb[28].mxu0 %vm1341_vm4, %v1272_v48  ;;  %v1060_v6 = vsel %vm1043_vm1, %v31_v60, %v2923_v56  ;;  %v1061_v7 = vsel %vm1043_vm1, %v32_v61, %v2924_v55 }
  0xd2   :  { %v1242_v57 = vsel %vm1191_vm3, %v1168_v52, %v2918_v51  ;;  %v1243_v58 = vsel %vm1191_vm3, %v1169_v53, %v2919_v50  ;;  %v2932_v59 = vpop.permute.xlu1 %2931  ;;  %2566 = vmatprep.mubr.msk.bf16.mxu0 %vm3533_vm0, %v3532_v3  ;;  %v69_v50 = vld [vmem:[%s5342_s0 + $0x1b0] sm:$0xff]  ;;  %v70_v51 = vld [vmem:[%s5342_s0 + $0x1b8] sm:$0xff] }
  0xd3   :  { %v1290_v62 = vpack.c.bf16 %v1243_v58, %v1242_v57  ;;  %v2927_v63 = vpop.permute.xlu0 %2926  ;;  %v2934_v8 = vunpack.i.h.bf16 %v2932_v59  ;;  %v2933_v9 = vunpack.i.l.bf16 %v2932_v59 }
  0xd4   :  { %3221 = vrot.lane.b32.xlu1 %v3195_v21, %s3535_s29  ;;  %v2929_v0 = vunpack.i.h.bf16 %v2927_v63  ;;  %v2928_v1 = vunpack.i.l.bf16 %v2927_v63 }
  0xd5   :  { %3216 = vrot.lane.b32.xlu0 %v3215_v54, %s3534_s28  ;;  %2635 = vmatmul.mubr.msk.bf16.gmra.mrb[24].mxu1 %vm1341_vm4, %v1290_v62  ;;  %v1096_v23 = vsel %vm1043_vm1, %v67_v11, %v2933_v9  ;;  %v1097_v24 = vsel %vm1043_vm1, %v68_v13, %v2934_v8  ;;  %v35_v13 = vld [vmem:[%s5342_s0 + $0xa0] sm:$0xff] }
  0xd6   :  { %v2942_v10 = vpop.permute.xlu1 %2941  ;;  %2638 = vmatprep.mubr.msk.bf16.mxu1 %vm3533_vm0, %v3532_v3  ;;  %v1134_v18 = vsel %vm1117_vm2, %v1060_v6, %v2928_v1  ;;  %v1135_v19 = vsel %vm1117_vm2, %v1061_v7, %v2929_v0 }
  0xd7   :  { %v2937_v14 = vpop.permute.xlu0 %2936  ;;  %v2944_v20 = vunpack.i.h.bf16 %v2942_v10  ;;  %v2943_v21 = vunpack.i.l.bf16 %v2942_v10 }
  0xd8   :  { %v2939_v15 = vunpack.i.h.bf16 %v2937_v14  ;;  %v2938_v16 = vunpack.i.l.bf16 %v2937_v14  ;;  %454 = vrot.lane.b32.xlu1 %v160_v2, %s3535_s29  ;;  %v36_v14 = vld [vmem:[%s5342_s0 + $0xa8] sm:$0xff] }
  0xd9   :  { %3226 = vrot.lane.b32.xlu0 %v3588_v12, %s3536_s7  ;;  %v1170_v12 = vsel %vm1117_vm2, %v1096_v23, %v2943_v21  ;;  %v1171_v32 = vsel %vm1117_vm2, %v1097_v24, %v2944_v20  ;;  %v71_v24 = vld [vmem:[%s5342_s0 + $0x1c0] sm:$0xff] }
  0xda   :  { %v1208_v25 = vsel %vm1191_vm3, %v1134_v18, %v2938_v16  ;;  %v1209_v26 = vsel %vm1191_vm3, %v1135_v19, %v2939_v15  ;;  %v2952_v27 = vpop.permute.xlu1 %2951 }
  0xdb   :  { %v1273_v28 = vpack.c.bf16 %v1209_v26, %v1208_v25  ;;  %v2947_v29 = vpop.permute.xlu0 %2946  ;;  %v2954_v33 = vunpack.i.h.bf16 %v2952_v27  ;;  %v2953_v34 = vunpack.i.l.bf16 %v2952_v27  ;;  %v72_v25 = vld [vmem:[%s5342_s0 + $0x1c8] sm:$0xff] }
  0xdc   :  { %v2949_v30 = vunpack.i.h.bf16 %v2947_v29  ;;  %v2948_v31 = vunpack.i.l.bf16 %v2947_v29  ;;  %676 = vrot.lane.b32.xlu1 %v163_v22, %s3536_s7 }
  0xdd   :  { %3231 = vrot.lane.b32.xlu0 %v3230_v17, %s3534_s28  ;;  %2567 = vmatmul.mubr.msk.bf16.gmra.mrb[32].mxu0 %vm1341_vm4, %v1273_v28  ;;  %v1062_v45 = vsel %vm1043_vm1, %v33_v39, %v2953_v34  ;;  %v1063_v46 = vsel %vm1043_vm1, %v34_v40, %v2954_v33 }
  0xde   :  { %v1244_v35 = vsel %vm1191_vm3, %v1170_v12, %v2948_v31  ;;  %v1245_v36 = vsel %vm1191_vm3, %v1171_v32, %v2949_v30  ;;  %v2962_v37 = vpop.permute.xlu1 %2961  ;;  %2570 = vmatprep.mubr.msk.bf16.mxu0 %vm3533_vm0, %v3532_v3 }
  0xdf   :  { %v1291_v41 = vpack.c.bf16 %v1245_v36, %v1244_v35  ;;  %v2957_v42 = vpop.permute.xlu0 %2956  ;;  %v2964_v47 = vunpack.i.h.bf16 %v2962_v37  ;;  %v2963_v48 = vunpack.i.l.bf16 %v2962_v37 }
  0xe0   :  { %v2959_v43 = vunpack.i.h.bf16 %v2957_v42  ;;  %v2958_v44 = vunpack.i.l.bf16 %v2957_v42 }
  0xe1   :  { %968 = vrot.lane.b32.xlu0 %v236_v38, %s3534_s28  ;;  %2639 = vmatmul.mubr.msk.bf16.gmra.mrb[28].mxu1 %vm1341_vm4, %v1291_v41  ;;  %v1098_v59 = vsel %vm1043_vm1, %v69_v50, %v2963_v48  ;;  %v1099_v60 = vsel %vm1043_vm1, %v70_v51, %v2964_v47  ;;  %v37_v48 = vld [vmem:[%s5342_s0 + $0xb0] sm:$0xff] }
  0xe2   :  { %v2972_v49 = vpop.permute.xlu1 %2971  ;;  %2642 = vmatprep.mubr.msk.bf16.mxu1 %vm3533_vm0, %v3532_v3  ;;  %v1136_v55 = vsel %vm1117_vm2, %v1062_v45, %v2958_v44  ;;  %v1137_v56 = vsel %vm1117_vm2, %v1063_v46, %v2959_v43 }
  0xe3   :  { %v2967_v52 = vpop.permute.xlu0 %2966  ;;  %v2974_v57 = vunpack.i.h.bf16 %v2972_v49  ;;  %v2973_v58 = vunpack.i.l.bf16 %v2972_v49  ;;  %v38_v49 = vld [vmem:[%s5342_s0 + $0xb8] sm:$0xff] }
  0xe4   :  { %v2969_v53 = vunpack.i.h.bf16 %v2967_v52  ;;  %v2968_v54 = vunpack.i.l.bf16 %v2967_v52 }
  0xe5   :  { %v1172_v5 = vsel %vm1117_vm2, %v1098_v59, %v2973_v58  ;;  %v1173_v6 = vsel %vm1117_vm2, %v1099_v60, %v2974_v57  ;;  %v73_v59 = vld [vmem:[%s5342_s0 + $0x1d0] sm:$0xff]  ;;  %v74_v60 = vld [vmem:[%s5342_s0 + $0x1d8] sm:$0xff] }
  0xe6   :  { %v1210_v61 = vsel %vm1191_vm3, %v1136_v55, %v2968_v54  ;;  %v1211_v62 = vsel %vm1191_vm3, %v1137_v56, %v2969_v53  ;;  %v2982_v63 = vpop.permute.xlu1 %2981 }
  0xe7   :  { %v1274_v0 = vpack.c.bf16 %v1211_v62, %v1210_v61  ;;  %v2977_v1 = vpop.permute.xlu0 %2976  ;;  %v2984_v7 = vunpack.i.h.bf16 %v2982_v63  ;;  %v2983_v8 = vunpack.i.l.bf16 %v2982_v63 }
  0xe8   :  { %v2979_v2 = vunpack.i.h.bf16 %v2977_v1  ;;  %v2978_v4 = vunpack.i.l.bf16 %v2977_v1 }
  0xe9   :  { %2571 = vmatmul.mubr.msk.bf16.gmra.mrb[36].mxu0 %vm1341_vm4, %v1274_v0  ;;  %v1064_v19 = vsel %vm1043_vm1, %v35_v13, %v2983_v8  ;;  %v1065_v20 = vsel %vm1043_vm1, %v36_v14, %v2984_v7 }
  0xea   :  { %v1246_v9 = vsel %vm1191_vm3, %v1172_v5, %v2978_v4  ;;  %v1247_v10 = vsel %vm1191_vm3, %v1173_v6, %v2979_v2  ;;  %v2992_v11 = vpop.permute.xlu1 %2991  ;;  %2574 = vmatprep.mubr.msk.bf16.mxu0 %vm3533_vm0, %v3532_v3 }
  0xeb   :  { %v1292_v15 = vpack.c.bf16 %v1247_v10, %v1246_v9  ;;  %v2987_v16 = vpop.permute.xlu0 %2986  ;;  %v2994_v21 = vunpack.i.h.bf16 %v2992_v11  ;;  %v2993_v22 = vunpack.i.l.bf16 %v2992_v11 }
  0xec   :  { %v2989_v17 = vunpack.i.h.bf16 %v2987_v16  ;;  %v2988_v18 = vunpack.i.l.bf16 %v2987_v16 }
  0xed   :  { %2643 = vmatmul.mubr.msk.bf16.gmra.mrb[32].mxu1 %vm1341_vm4, %v1292_v15  ;;  %v1100_v32 = vsel %vm1043_vm1, %v71_v24, %v2993_v22  ;;  %v1101_v33 = vsel %vm1043_vm1, %v72_v25, %v2994_v21  ;;  %v39_v22 = vld [vmem:[%s5342_s0 + $0xc0] sm:$0xff] }
  0xee   :  { %v3002_v23 = vpop.permute.xlu1 %3001  ;;  %2646 = vmatprep.mubr.msk.bf16.mxu1 %vm3533_vm0, %v3532_v3  ;;  %v1138_v29 = vsel %vm1117_vm2, %v1064_v19, %v2988_v18  ;;  %v1139_v30 = vsel %vm1117_vm2, %v1065_v20, %v2989_v17 }
  0xef   :  { %v2997_v26 = vpop.permute.xlu0 %2996  ;;  %v3004_v31 = vunpack.i.h.bf16 %v3002_v23  ;;  %v3003_v12 = vunpack.i.l.bf16 %v3002_v23  ;;  %v40_v23 = vld [vmem:[%s5342_s0 + $0xc8] sm:$0xff] }
  0xf0   :  { %v2999_v27 = vunpack.i.h.bf16 %v2997_v26  ;;  %v2998_v28 = vunpack.i.l.bf16 %v2997_v26 }
  0xf1   :  { %v1174_v41 = vsel %vm1117_vm2, %v1100_v32, %v3003_v12  ;;  %v1175_v42 = vsel %vm1117_vm2, %v1101_v33, %v3004_v31  ;;  %v75_v32 = vld [vmem:[%s5342_s0 + $0x1e0] sm:$0xff]  ;;  %v76_v33 = vld [vmem:[%s5342_s0 + $0x1e8] sm:$0xff] }
  0xf2   :  { %v1212_v34 = vsel %vm1191_vm3, %v1138_v29, %v2998_v28  ;;  %v1213_v35 = vsel %vm1191_vm3, %v1139_v30, %v2999_v27  ;;  %v3012_v36 = vpop.permute.xlu1 %3011 }
  0xf3   :  { %v1275_v37 = vpack.c.bf16 %v1213_v35, %v1212_v34  ;;  %v3007_v38 = vpop.permute.xlu0 %3006  ;;  %v3014_v43 = vunpack.i.h.bf16 %v3012_v36  ;;  %v3013_v44 = vunpack.i.l.bf16 %v3012_v36 }
  0xf4   :  { %v3009_v39 = vunpack.i.h.bf16 %v3007_v38  ;;  %v3008_v40 = vunpack.i.l.bf16 %v3007_v38 }
  0xf5   :  { %2575 = vmatmul.mubr.msk.bf16.gmra.mrb[40].mxu0 %vm1341_vm4, %v1275_v37  ;;  %v1066_v54 = vsel %vm1043_vm1, %v37_v48, %v3013_v44  ;;  %v1067_v55 = vsel %vm1043_vm1, %v38_v49, %v3014_v43 }
  0xf6   :  { %v1248_v45 = vsel %vm1191_vm3, %v1174_v41, %v3008_v40  ;;  %v1249_v46 = vsel %vm1191_vm3, %v1175_v42, %v3009_v39  ;;  %v3022_v47 = vpop.permute.xlu1 %3021  ;;  %2578 = vmatprep.mubr.msk.bf16.mxu0 %vm3533_vm0, %v3532_v3 }
  0xf7   :  { %v1293_v50 = vpack.c.bf16 %v1249_v46, %v1248_v45  ;;  %v3017_v51 = vpop.permute.xlu0 %3016  ;;  %v3024_v56 = vunpack.i.h.bf16 %v3022_v47  ;;  %v3023_v57 = vunpack.i.l.bf16 %v3022_v47 }
  0xf8   :  { %v3019_v52 = vunpack.i.h.bf16 %v3017_v51  ;;  %v3018_v53 = vunpack.i.l.bf16 %v3017_v51 }
  0xf9   :  { %2647 = vmatmul.mubr.msk.bf16.gmra.mrb[36].mxu1 %vm1341_vm4, %v1293_v50  ;;  %v1102_v5 = vsel %vm1043_vm1, %v73_v59, %v3023_v57  ;;  %v1103_v6 = vsel %vm1043_vm1, %v74_v60, %v3024_v56  ;;  %v41_v57 = vld [vmem:[%s5342_s0 + $0xd0] sm:$0xff] }
  0xfa   :  { %v3032_v58 = vpop.permute.xlu1 %3031  ;;  %2650 = vmatprep.mubr.msk.bf16.mxu1 %vm3533_vm0, %v3532_v3  ;;  %v1140_v0 = vsel %vm1117_vm2, %v1066_v54, %v3018_v53  ;;  %v1141_v1 = vsel %vm1117_vm2, %v1067_v55, %v3019_v52 }
  0xfb   :  { %v3027_v61 = vpop.permute.xlu0 %3026  ;;  %v3034_v2 = vunpack.i.h.bf16 %v3032_v58  ;;  %v3033_v4 = vunpack.i.l.bf16 %v3032_v58  ;;  %v42_v58 = vld [vmem:[%s5342_s0 + $0xd8] sm:$0xff] }
  0xfc   :  { %v3029_v62 = vunpack.i.h.bf16 %v3027_v61  ;;  %v3028_v63 = vunpack.i.l.bf16 %v3027_v61 }
  0xfd   :  { %v1176_v15 = vsel %vm1117_vm2, %v1102_v5, %v3033_v4  ;;  %v1177_v16 = vsel %vm1117_vm2, %v1103_v6, %v3034_v2  ;;  %v77_v5 = vld [vmem:[%s5342_s0 + $0x1f0] sm:$0xff]  ;;  %v78_v6 = vld [vmem:[%s5342_s0 + $0x1f8] sm:$0xff] }
  0xfe   :  { %v1214_v7 = vsel %vm1191_vm3, %v1140_v0, %v3028_v63  ;;  %v1215_v8 = vsel %vm1191_vm3, %v1141_v1, %v3029_v62  ;;  %v3042_v9 = vpop.permute.xlu1 %3041 }
  0xff   :  { %v1276_v10 = vpack.c.bf16 %v1215_v8, %v1214_v7  ;;  %v3037_v11 = vpop.permute.xlu0 %3036  ;;  %v3044_v17 = vunpack.i.h.bf16 %v3042_v9  ;;  %v3043_v18 = vunpack.i.l.bf16 %v3042_v9 }
 0x100   :  { %v3039_v13 = vunpack.i.h.bf16 %v3037_v11  ;;  %v3038_v14 = vunpack.i.l.bf16 %v3037_v11 }
 0x101   :  { %2579 = vmatmul.mubr.msk.bf16.gmra.mrb[44].mxu0 %vm1341_vm4, %v1276_v10  ;;  %v1068_v28 = vsel %vm1043_vm1, %v39_v22, %v3043_v18  ;;  %v1069_v29 = vsel %vm1043_vm1, %v40_v23, %v3044_v17 }
 0x102   :  { %v1250_v19 = vsel %vm1191_vm3, %v1176_v15, %v3038_v14  ;;  %v1251_v20 = vsel %vm1191_vm3, %v1177_v16, %v3039_v13  ;;  %v3052_v21 = vpop.permute.xlu1 %3051  ;;  %2582 = vmatprep.mubr.msk.bf16.mxu0 %vm3533_vm0, %v3532_v3 }
 0x103   :  { %v1294_v24 = vpack.c.bf16 %v1251_v20, %v1250_v19  ;;  %v3047_v25 = vpop.permute.xlu0 %3046  ;;  %v3054_v30 = vunpack.i.h.bf16 %v3052_v21  ;;  %v3053_v31 = vunpack.i.l.bf16 %v3052_v21 }
 0x104   :  { %v3049_v26 = vunpack.i.h.bf16 %v3047_v25  ;;  %v3048_v27 = vunpack.i.l.bf16 %v3047_v25 }
 0x105   :  { %2651 = vmatmul.mubr.msk.bf16.gmra.mrb[40].mxu1 %vm1341_vm4, %v1294_v24  ;;  %v1104_v41 = vsel %vm1043_vm1, %v75_v32, %v3053_v31  ;;  %v1105_v42 = vsel %vm1043_vm1, %v76_v33, %v3054_v30  ;;  %v43_v31 = vld [vmem:[%s5342_s0 + $0xe0] sm:$0xff] }
 0x106   :  { %v3062_v12 = vpop.permute.xlu1 %3061  ;;  %2654 = vmatprep.mubr.msk.bf16.mxu1 %vm3533_vm0, %v3532_v3  ;;  %v1142_v37 = vsel %vm1117_vm2, %v1068_v28, %v3048_v27  ;;  %v1143_v38 = vsel %vm1117_vm2, %v1069_v29, %v3049_v26 }
 0x107   :  { %v3057_v34 = vpop.permute.xlu0 %3056  ;;  %v3064_v39 = vunpack.i.h.bf16 %v3062_v12  ;;  %v3063_v40 = vunpack.i.l.bf16 %v3062_v12  ;;  %v44_v12 = vld [vmem:[%s5342_s0 + $0xe8] sm:$0xff] }
 0x108   :  { %v3059_v35 = vunpack.i.h.bf16 %v3057_v34  ;;  %v3058_v36 = vunpack.i.l.bf16 %v3057_v34 }
 0x109   :  { %v1178_v50 = vsel %vm1117_vm2, %v1104_v41, %v3063_v40  ;;  %v1179_v51 = vsel %vm1117_vm2, %v1105_v42, %v3064_v39  ;;  %v79_v41 = vld [vmem:[%s5342_s0 + $0x200] sm:$0xff]  ;;  %v80_v42 = vld [vmem:[%s5342_s0 + $0x208] sm:$0xff] }
 0x10a   :  { %v1216_v43 = vsel %vm1191_vm3, %v1142_v37, %v3058_v36  ;;  %v1217_v44 = vsel %vm1191_vm3, %v1143_v38, %v3059_v35  ;;  %v3072_v45 = vpop.permute.xlu1 %3071 }
 0x10b   :  { %v1277_v46 = vpack.c.bf16 %v1217_v44, %v1216_v43  ;;  %v3067_v47 = vpop.permute.xlu0 %3066  ;;  %v3074_v52 = vunpack.i.h.bf16 %v3072_v45  ;;  %v3073_v53 = vunpack.i.l.bf16 %v3072_v45 }
 0x10c   :  { %v3069_v48 = vunpack.i.h.bf16 %v3067_v47  ;;  %v3068_v49 = vunpack.i.l.bf16 %v3067_v47 }
 0x10d   :  { %2583 = vmatmul.mubr.msk.bf16.gmra.mrb[48].mxu0 %vm1341_vm4, %v1277_v46  ;;  %v1070_v63 = vsel %vm1043_vm1, %v41_v57, %v3073_v53  ;;  %v1071_v0 = vsel %vm1043_vm1, %v42_v58, %v3074_v52 }
 0x10e   :  { %v1252_v54 = vsel %vm1191_vm3, %v1178_v50, %v3068_v49  ;;  %v1253_v55 = vsel %vm1191_vm3, %v1179_v51, %v3069_v48  ;;  %v3082_v56 = vpop.permute.xlu1 %3081  ;;  %2586 = vmatprep.mubr.msk.bf16.mxu0 %vm3533_vm0, %v3532_v3 }
 0x10f   :  { %v1295_v59 = vpack.c.bf16 %v1253_v55, %v1252_v54  ;;  %v3077_v60 = vpop.permute.xlu0 %3076  ;;  %v3084_v1 = vunpack.i.h.bf16 %v3082_v56  ;;  %v3083_v2 = vunpack.i.l.bf16 %v3082_v56 }
 0x110   :  { %v3079_v61 = vunpack.i.h.bf16 %v3077_v60  ;;  %v3078_v62 = vunpack.i.l.bf16 %v3077_v60 }
 0x111   :  { %2655 = vmatmul.mubr.msk.bf16.gmra.mrb[44].mxu1 %vm1341_vm4, %v1295_v59  ;;  %v1106_v15 = vsel %vm1043_vm1, %v77_v5, %v3083_v2  ;;  %v1107_v16 = vsel %vm1043_vm1, %v78_v6, %v3084_v1  ;;  %v45_v2 = vld [vmem:[%s5342_s0 + $0xf0] sm:$0xff] }
 0x112   :  { %v3092_v4 = vpop.permute.xlu1 %3091  ;;  %2658 = vmatprep.mubr.msk.bf16.mxu1 %vm3533_vm0, %v3532_v3  ;;  %v1144_v10 = vsel %vm1117_vm2, %v1070_v63, %v3078_v62  ;;  %v1145_v11 = vsel %vm1117_vm2, %v1071_v0, %v3079_v61 }
 0x113   :  { %v3087_v7 = vpop.permute.xlu0 %3086  ;;  %v3094_v13 = vunpack.i.h.bf16 %v3092_v4  ;;  %v3093_v14 = vunpack.i.l.bf16 %v3092_v4  ;;  %v46_v4 = vld [vmem:[%s5342_s0 + $0xf8] sm:$0xff] }
 0x114   :  { %v3089_v8 = vunpack.i.h.bf16 %v3087_v7  ;;  %v3088_v9 = vunpack.i.l.bf16 %v3087_v7 }
 0x115   :  { %v1180_v24 = vsel %vm1117_vm2, %v1106_v15, %v3093_v14  ;;  %v1181_v25 = vsel %vm1117_vm2, %v1107_v16, %v3094_v13  ;;  %v81_v15 = vld [vmem:[%s5342_s0 + $0x210] sm:$0xff]  ;;  %v82_v16 = vld [vmem:[%s5342_s0 + $0x218] sm:$0xff] }
 0x116   :  { %v1218_v17 = vsel %vm1191_vm3, %v1144_v10, %v3088_v9  ;;  %v1219_v18 = vsel %vm1191_vm3, %v1145_v11, %v3089_v8  ;;  %v3102_v19 = vpop.permute.xlu1 %3101 }
 0x117   :  { %v1278_v20 = vpack.c.bf16 %v1219_v18, %v1218_v17  ;;  %v3097_v21 = vpop.permute.xlu0 %3096  ;;  %v3104_v26 = vunpack.i.h.bf16 %v3102_v19  ;;  %v3103_v27 = vunpack.i.l.bf16 %v3102_v19 }
 0x118   :  { %v3099_v22 = vunpack.i.h.bf16 %v3097_v21  ;;  %v3098_v23 = vunpack.i.l.bf16 %v3097_v21 }
 0x119   :  { %2587 = vmatmul.mubr.msk.bf16.gmra.mrb[52].mxu0 %vm1341_vm4, %v1278_v20  ;;  %v1072_v36 = vsel %vm1043_vm1, %v43_v31, %v3103_v27  ;;  %v1073_v37 = vsel %vm1043_vm1, %v44_v12, %v3104_v26 }
 0x11a   :  { %v1254_v28 = vsel %vm1191_vm3, %v1180_v24, %v3098_v23  ;;  %v1255_v29 = vsel %vm1191_vm3, %v1181_v25, %v3099_v22  ;;  %v3112_v30 = vpop.permute.xlu1 %3111  ;;  %2590 = vmatprep.mubr.msk.bf16.mxu0 %vm3533_vm0, %v3532_v3 }
 0x11b   :  { %v1296_v32 = vpack.c.bf16 %v1255_v29, %v1254_v28  ;;  %v3107_v33 = vpop.permute.xlu0 %3106  ;;  %v3114_v38 = vunpack.i.h.bf16 %v3112_v30  ;;  %v3113_v39 = vunpack.i.l.bf16 %v3112_v30 }
 0x11c   :  { %v3109_v34 = vunpack.i.h.bf16 %v3107_v33  ;;  %v3108_v35 = vunpack.i.l.bf16 %v3107_v33 }
 0x11d   :  { %2659 = vmatmul.mubr.msk.bf16.gmra.mrb[48].mxu1 %vm1341_vm4, %v1296_v32  ;;  %v1108_v50 = vsel %vm1043_vm1, %v79_v41, %v3113_v39  ;;  %v1109_v51 = vsel %vm1043_vm1, %v80_v42, %v3114_v38  ;;  %v47_v39 = vld [vmem:[%s5342_s0 + $0x100] sm:$0xff] }
 0x11e   :  { %v3122_v40 = vpop.permute.xlu1 %3121  ;;  %2662 = vmatprep.mubr.msk.bf16.mxu1 %vm3533_vm0, %v3532_v3  ;;  %v1146_v46 = vsel %vm1117_vm2, %v1072_v36, %v3108_v35  ;;  %v1147_v47 = vsel %vm1117_vm2, %v1073_v37, %v3109_v34 }
 0x11f   :  { %v3117_v43 = vpop.permute.xlu0 %3116  ;;  %v3124_v48 = vunpack.i.h.bf16 %v3122_v40  ;;  %v3123_v49 = vunpack.i.l.bf16 %v3122_v40  ;;  %v48_v40 = vld [vmem:[%s5342_s0 + $0x108] sm:$0xff] }
 0x120   :  { %v3119_v44 = vunpack.i.h.bf16 %v3117_v43  ;;  %v3118_v45 = vunpack.i.l.bf16 %v3117_v43 }
 0x121   :  { %v1182_v59 = vsel %vm1117_vm2, %v1108_v50, %v3123_v49  ;;  %v1183_v60 = vsel %vm1117_vm2, %v1109_v51, %v3124_v48  ;;  %v83_v50 = vld [vmem:[%s5342_s0 + $0x220] sm:$0xff]  ;;  %v84_v51 = vld [vmem:[%s5342_s0 + $0x228] sm:$0xff] }
 0x122   :  { %v1220_v52 = vsel %vm1191_vm3, %v1146_v46, %v3118_v45  ;;  %v1221_v53 = vsel %vm1191_vm3, %v1147_v47, %v3119_v44  ;;  %v3132_v54 = vpop.permute.xlu1 %3131 }
 0x123   :  { %v1279_v55 = vpack.c.bf16 %v1221_v53, %v1220_v52  ;;  %v3127_v56 = vpop.permute.xlu0 %3126  ;;  %v3134_v61 = vunpack.i.h.bf16 %v3132_v54  ;;  %v3133_v62 = vunpack.i.l.bf16 %v3132_v54 }
 0x124   :  { %v3129_v57 = vunpack.i.h.bf16 %v3127_v56  ;;  %v3128_v58 = vunpack.i.l.bf16 %v3127_v56 }
 0x125   :  { %2591 = vmatmul.mubr.msk.bf16.gmra.mrb[56].mxu0 %vm1341_vm4, %v1279_v55  ;;  %v1074_v9 = vsel %vm1043_vm1, %v45_v2, %v3133_v62  ;;  %v1075_v10 = vsel %vm1043_vm1, %v46_v4, %v3134_v61 }
 0x126   :  { %v1256_v63 = vsel %vm1191_vm3, %v1182_v59, %v3128_v58  ;;  %v1257_v0 = vsel %vm1191_vm3, %v1183_v60, %v3129_v57  ;;  %v3142_v1 = vpop.permute.xlu1 %3141  ;;  %2594 = vmatprep.mubr.msk.bf16.mxu0 %vm3533_vm0, %v3532_v3 }
 0x127   :  { %v1297_v5 = vpack.c.bf16 %v1257_v0, %v1256_v63  ;;  %v3137_v6 = vpop.permute.xlu0 %3136  ;;  %v3144_v11 = vunpack.i.h.bf16 %v3142_v1  ;;  %v3143_v13 = vunpack.i.l.bf16 %v3142_v1 }
 0x128   :  { %v3139_v7 = vunpack.i.h.bf16 %v3137_v6  ;;  %v3138_v8 = vunpack.i.l.bf16 %v3137_v6 }
 0x129   :  { %2663 = vmatmul.mubr.msk.bf16.gmra.mrb[52].mxu1 %vm1341_vm4, %v1297_v5  ;;  %v1110_v24 = vsel %vm1043_vm1, %v81_v15, %v3143_v13  ;;  %v1111_v25 = vsel %vm1043_vm1, %v82_v16, %v3144_v11  ;;  %v49_v13 = vld [vmem:[%s5342_s0 + $0x110] sm:$0xff] }
 0x12a   :  { %v3152_v14 = vpop.permute.xlu1 %3151  ;;  %2666 = vmatprep.mubr.msk.bf16.mxu1 %vm3533_vm0, %v3532_v3  ;;  %v1148_v20 = vsel %vm1117_vm2, %v1074_v9, %v3138_v8  ;;  %v1149_v21 = vsel %vm1117_vm2, %v1075_v10, %v3139_v7 }
 0x12b   :  { %v3147_v17 = vpop.permute.xlu0 %3146  ;;  %v3154_v22 = vunpack.i.h.bf16 %v3152_v14  ;;  %v3153_v23 = vunpack.i.l.bf16 %v3152_v14  ;;  %v50_v14 = vld [vmem:[%s5342_s0 + $0x118] sm:$0xff] }
 0x12c   :  { %v3149_v18 = vunpack.i.h.bf16 %v3147_v17  ;;  %v3148_v19 = vunpack.i.l.bf16 %v3147_v17 }
 0x12d   :  { %v1184_v32 = vsel %vm1117_vm2, %v1110_v24, %v3153_v23  ;;  %v1185_v33 = vsel %vm1117_vm2, %v1111_v25, %v3154_v22  ;;  %v85_v24 = vld [vmem:[%s5342_s0 + $0x230] sm:$0xff]  ;;  %v86_v25 = vld [vmem:[%s5342_s0 + $0x238] sm:$0xff] }
 0x12e   :  { %v1222_v26 = vsel %vm1191_vm3, %v1148_v20, %v3148_v19  ;;  %v1223_v27 = vsel %vm1191_vm3, %v1149_v21, %v3149_v18  ;;  %v3162_v28 = vpop.permute.xlu1 %3161 }
 0x12f   :  { %v1280_v29 = vpack.c.bf16 %v1223_v27, %v1222_v26  ;;  %v3157_v30 = vpop.permute.xlu0 %3156  ;;  %v3164_v34 = vunpack.i.h.bf16 %v3162_v28  ;;  %v3163_v35 = vunpack.i.l.bf16 %v3162_v28 }
 0x130   :  { %v3159_v31 = vunpack.i.h.bf16 %v3157_v30  ;;  %v3158_v12 = vunpack.i.l.bf16 %v3157_v30 }
 0x131   :  { %2595 = vmatmul.mubr.msk.bf16.gmra.mrb[60].mxu0 %vm1341_vm4, %v1280_v29  ;;  %v1076_v45 = vsel %vm1043_vm1, %v47_v39, %v3163_v35  ;;  %v1077_v46 = vsel %vm1043_vm1, %v48_v40, %v3164_v34 }
 0x132   :  { %v1258_v36 = vsel %vm1191_vm3, %v1184_v32, %v3158_v12  ;;  %v1259_v37 = vsel %vm1191_vm3, %v1185_v33, %v3159_v31  ;;  %v3172_v38 = vpop.permute.xlu1 %3171  ;;  %2598 = vmatprep.mubr.msk.bf16.mxu0 %vm3533_vm0, %v3532_v3 }
 0x133   :  { %v1298_v41 = vpack.c.bf16 %v1259_v37, %v1258_v36  ;;  %v3167_v42 = vpop.permute.xlu0 %3166  ;;  %v3174_v47 = vunpack.i.h.bf16 %v3172_v38  ;;  %v3173_v48 = vunpack.i.l.bf16 %v3172_v38 }
 0x134   :  { %v3169_v43 = vunpack.i.h.bf16 %v3167_v42  ;;  %v3168_v44 = vunpack.i.l.bf16 %v3167_v42 }
 0x135   :  { %2667 = vmatmul.mubr.msk.bf16.gmra.mrb[56].mxu1 %vm1341_vm4, %v1298_v41  ;;  %v1112_v59 = vsel %vm1043_vm1, %v83_v50, %v3173_v48  ;;  %v1113_v60 = vsel %vm1043_vm1, %v84_v51, %v3174_v47  ;;  %v51_v48 = vld [vmem:[%s5342_s0 + $0x120] sm:$0xff] }
 0x136   :  { %v3182_v49 = vpop.permute.xlu1 %3181  ;;  %2670 = vmatprep.mubr.msk.bf16.mxu1 %vm3533_vm0, %v3532_v3  ;;  %v1150_v55 = vsel %vm1117_vm2, %v1076_v45, %v3168_v44  ;;  %v1151_v56 = vsel %vm1117_vm2, %v1077_v46, %v3169_v43 }
 0x137   :  { %v3177_v52 = vpop.permute.xlu0 %3176  ;;  %v3184_v57 = vunpack.i.h.bf16 %v3182_v49  ;;  %v3183_v58 = vunpack.i.l.bf16 %v3182_v49  ;;  %v52_v49 = vld [vmem:[%s5342_s0 + $0x128] sm:$0xff] }
 0x138   :  { %v3179_v53 = vunpack.i.h.bf16 %v3177_v52  ;;  %v3178_v54 = vunpack.i.l.bf16 %v3177_v52  ;;  %v87_v52 = vld [vmem:[%s5342_s0 + $0x240] sm:$0x3] }
 0x139   :  { %v1186_v5 = vsel %vm1117_vm2, %v1112_v59, %v3183_v58  ;;  %v1187_v6 = vsel %vm1117_vm2, %v1113_v60, %v3184_v57 }
 0x13a   :  { %v1224_v61 = vsel %vm1191_vm3, %v1150_v55, %v3178_v54  ;;  %v1225_v62 = vsel %vm1191_vm3, %v1151_v56, %v3179_v53  ;;  %v3192_v63 = vpop.permute.xlu1 %3191 }
 0x13b   :  { %v1281_v0 = vpack.c.bf16 %v1225_v62, %v1224_v61  ;;  %v3187_v1 = vpop.permute.xlu0 %3186  ;;  %v3194_v7 = vunpack.i.h.bf16 %v3192_v63  ;;  %v3193_v8 = vunpack.i.l.bf16 %v3192_v63 }
 0x13c   :  { %v3189_v2 = vunpack.i.h.bf16 %v3187_v1  ;;  %v3188_v4 = vunpack.i.l.bf16 %v3187_v1 }
 0x13d   :  { %2599 = vmatmul.mubr.msk.bf16.gmra.mrb[64].mxu0 %vm1341_vm4, %v1281_v0  ;;  %v1078_v19 = vsel %vm1043_vm1, %v49_v13, %v3193_v8  ;;  %v1079_v20 = vsel %vm1043_vm1, %v50_v14, %v3194_v7 }
 0x13e   :  { %v1260_v9 = vsel %vm1191_vm3, %v1186_v5, %v3188_v4  ;;  %v1261_v10 = vsel %vm1191_vm3, %v1187_v6, %v3189_v2  ;;  %v3202_v11 = vpop.permute.xlu1 %3201  ;;  %2602 = vmatprep.mubr.msk.bf16.mxu0 %vm3533_vm0, %v3532_v3 }
 0x13f   :  { %v1299_v15 = vpack.c.bf16 %v1261_v10, %v1260_v9  ;;  %v3197_v16 = vpop.permute.xlu0 %3196  ;;  %v3204_v21 = vunpack.i.h.bf16 %v3202_v11  ;;  %v3203_v22 = vunpack.i.l.bf16 %v3202_v11 }
 0x140   :  { %v3199_v17 = vunpack.i.h.bf16 %v3197_v16  ;;  %v3198_v18 = vunpack.i.l.bf16 %v3197_v16 }
 0x141   :  { %2671 = vmatmul.mubr.msk.bf16.gmra.mrb[60].mxu1 %vm1341_vm4, %v1299_v15  ;;  %v1114_v32 = vsel %vm1043_vm1, %v85_v24, %v3203_v22  ;;  %v1115_v33 = vsel %vm1043_vm1, %v86_v25, %v3204_v21 }
 0x142   :  { %v3212_v23 = vpop.permute.xlu1 %3211  ;;  %2674 = vmatprep.mubr.msk.bf16.mxu1 %vm3533_vm0, %v3532_v3  ;;  %v1152_v29 = vsel %vm1117_vm2, %v1078_v19, %v3198_v18  ;;  %v1153_v30 = vsel %vm1117_vm2, %v1079_v20, %v3199_v17 }
 0x143   :  { %v3207_v26 = vpop.permute.xlu0 %3206  ;;  %v3214_v31 = vunpack.i.h.bf16 %v3212_v23  ;;  %v3213_v12 = vunpack.i.l.bf16 %v3212_v23 }
 0x144   :  { %v3209_v27 = vunpack.i.h.bf16 %v3207_v26  ;;  %v3208_v28 = vunpack.i.l.bf16 %v3207_v26 }
 0x145   :  { %v1188_v41 = vsel %vm1117_vm2, %v1114_v32, %v3213_v12  ;;  %v1189_v42 = vsel %vm1117_vm2, %v1115_v33, %v3214_v31 }
 0x146   :  { %v1226_v34 = vsel %vm1191_vm3, %v1152_v29, %v3208_v28  ;;  %v1227_v35 = vsel %vm1191_vm3, %v1153_v30, %v3209_v27  ;;  %v3222_v36 = vpop.permute.xlu1 %3221 }
 0x147   :  { %v1282_v37 = vpack.c.bf16 %v1227_v35, %v1226_v34  ;;  %v3217_v38 = vpop.permute.xlu0 %3216  ;;  %v3224_v43 = vunpack.i.h.bf16 %v3222_v36  ;;  %v3223_v44 = vunpack.i.l.bf16 %v3222_v36 }
 0x148   :  { %v3219_v39 = vunpack.i.h.bf16 %v3217_v38  ;;  %v3218_v40 = vunpack.i.l.bf16 %v3217_v38 }
 0x149   :  { %2603 = vmatmul.mubr.msk.bf16.gmra.mrb[68].mxu0 %vm1341_vm4, %v1282_v37  ;;  %v1080_v55 = vsel %vm1043_vm1, %v51_v48, %v3223_v44  ;;  %v1081_v56 = vsel %vm1043_vm1, %v52_v49, %v3224_v43 }
 0x14a   :  { %v1262_v45 = vsel %vm1191_vm3, %v1188_v41, %v3218_v40  ;;  %v1263_v46 = vsel %vm1191_vm3, %v1189_v42, %v3219_v39  ;;  %v455_v47 = vpop.permute.xlu1 %454  ;;  %2606 = vmatprep.mubr.msk.bf16.mxu0 %vm3533_vm0, %v3532_v3 }
 0x14b   :  { %v1300_v50 = vpack.c.bf16 %v1263_v46, %v1262_v45  ;;  %v3227_v51 = vpop.permute.xlu0 %3226  ;;  %v1116_v58 = vsel %vm1043_vm1, %v87_v52, %v455_v47 }
 0x14c   :  { %v3229_v53 = vunpack.i.h.bf16 %v3227_v51  ;;  %v3228_v54 = vunpack.i.l.bf16 %v3227_v51 }
 0x14d   :  { %2675 = vmatmul.mubr.msk.bf16.gmra.mrb[64].mxu1 %vm1341_vm4, %v1300_v50 }
 0x14e   :  { %2678 = vmatprep.mubr.msk.bf16.mxu1 %vm3533_vm0, %v3532_v3  ;;  %v677_v59 = vpop.permute.xlu1 %676  ;;  %v1154_v62 = vsel %vm1117_vm2, %v1080_v55, %v3228_v54  ;;  %v1155_v63 = vsel %vm1117_vm2, %v1081_v56, %v3229_v53  ;;  %v4688_v3 = vld [vmem:[%s5344_s2] ss:$0 sm:$0xff] }
 0x14f   :  { %v3232_v57 = vpop.permute.xlu0 %3231  ;;  %v1190_v2 = vsel %vm1117_vm2, %v1116_v58, %v677_v59 }
 0x150   :  { %v3234_v60 = vunpack.i.h.bf16 %v3232_v57  ;;  %v3233_v61 = vunpack.i.l.bf16 %v3232_v57 }
 0x152   :  { %v1228_v0 = vsel %vm1191_vm3, %v1154_v62, %v3233_v61  ;;  %v1229_v1 = vsel %vm1191_vm3, %v1155_v63, %v3234_v60 }
 0x153   :  { %v1283_v4 = vpack.c.bf16 %v1229_v1, %v1228_v0  ;;  %v969_v5 = vpop.permute.xlu0 %968 }
 0x154   :  { %v1264_v6 = vsel %vm1191_vm3, %v1190_v2, %v969_v5 }
 0x155   :  { %v1301_v7 = vpack.c.bf16 %v1264_v6, %v1264_v6  ;;  %v1487_v8 = vpop.f32.mrb[0].mxu0  ;;  %2607 = vmatmul.mubr.msk.bf16.gmra.mrb[72].mxu0 %vm1341_vm4, %v1283_v4 }
 0x156   :  { %v4693_v9 = vadd.f32 %v4688_v3, %v1487_v8  ;;  %v2536_v10 = vpop.f32.mrb[1].mxu0 }
 0x157   :  { %v1490_v11 = vpop.f32.mrb[2].mxu0  ;;  %2679 = vmatmul.mubr.msk.bf16.gmra.mrb[68].mxu1 %vm1341_vm4, %v1301_v7 }
 0x158   :  { %v2412_v13 = vmul.f32 -1.442695, %v4693_v9  ;;  %v4698_v14 = vadd.f32 %v4688_v3, %v1490_v11  ;;  %v2537_v15 = vpop.f32.mrb[3].mxu0 }
 0x15a   :  { %3239 = vpow2.f32 %v2412_v13  ;;  %v2413_v16 = vmul.f32 -1.442695, %v4698_v14 }
 0x15c   :  { %3241 = vpow2.f32 %v2413_v16 }
 0x15d   :  { %v1495_v17 = vpop.f32.mrb[4].mxu0 }
 0x15e   :  { %v4702_v18 = vadd.f32 %v4688_v3, %v1495_v17  ;;  %v2540_v19 = vpop.f32.mrb[5].mxu0 }
 0x15f   :  { %v1498_v20 = vpop.f32.mrb[6].mxu0 }
 0x160   :  { %v2414_v21 = vmul.f32 -1.442695, %v4702_v18  ;;  %v4706_v22 = vadd.f32 %v4688_v3, %v1498_v20  ;;  %v2541_v23 = vpop.f32.mrb[7].mxu0  ;;  %v1639_v24 = vpop.f32.mrb[0].mxu1 }
 0x161   :  { %v4709_v25 = vadd.f32 %v4688_v3, %v1639_v24  ;;  %v2612_v26 = vpop.f32.mrb[1].mxu1 }
 0x162   :  { %3243 = vpow2.f32 %v2414_v21  ;;  %v2415_v27 = vmul.f32 -1.442695, %v4706_v22  ;;  %v1642_v28 = vpop.f32.mrb[2].mxu1 }
 0x163   :  { %v2450_v29 = vmul.f32 -1.442695, %v4709_v25  ;;  %v4714_v30 = vadd.f32 %v4688_v3, %v1642_v28  ;;  %v2613_v31 = vpop.f32.mrb[3].mxu1 }
 0x164   :  { %v3240_v12 = vpop.eup %3239  ;;  %3245 = vpow2.f32 %v2415_v27 }
 0x165   :  { %v2000_v32 = vadd.f32 1.0, %v3240_v12  ;;  %3247 = vpow2.f32 %v2450_v29  ;;  %v2451_v33 = vmul.f32 -1.442695, %v4714_v30 }
 0x166   :  { %v3242_v34 = vpop.eup %3241 }
 0x167   :  { %3249 = vrcp.f32 %v2000_v32  ;;  %v2001_v35 = vadd.f32 1.0, %v3242_v34 }
 0x168   :  { %3251 = vpow2.f32 %v2451_v33  ;;  %v1503_v36 = vpop.f32.mrb[8].mxu0 }
 0x169   :  { %3253 = vrcp.f32 %v2001_v35  ;;  %v4718_v37 = vadd.f32 %v4688_v3, %v1503_v36  ;;  %v2544_v38 = vpop.f32.mrb[9].mxu0 }
 0x16a   :  { %v1506_v39 = vpop.f32.mrb[10].mxu0 }
 0x16b   :  { %v2416_v40 = vmul.f32 -1.442695, %v4718_v37  ;;  %v4722_v41 = vadd.f32 %v4688_v3, %v1506_v39  ;;  %v2545_v42 = vpop.f32.mrb[11].mxu0 }
 0x16c   :  { %v3244_v43 = vpop.eup %3243  ;;  %v1647_v44 = vpop.f32.mrb[4].mxu1 }
 0x16d   :  { %v2002_v45 = vadd.f32 1.0, %v3244_v43  ;;  %3255 = vpow2.f32 %v2416_v40  ;;  %v2417_v46 = vmul.f32 -1.442695, %v4722_v41  ;;  %v4726_v47 = vadd.f32 %v4688_v3, %v1647_v44  ;;  %v2616_v48 = vpop.f32.mrb[5].mxu1 }
 0x16e   :  { %v3246_v49 = vpop.eup %3245  ;;  %v1650_v50 = vpop.f32.mrb[6].mxu1 }
 0x16f   :  { %v3248_v51 = vpop.eup %3247  ;;  %3257 = vrcp.f32 %v2002_v45  ;;  %v2003_v52 = vadd.f32 1.0, %v3246_v49  ;;  %v2452_v53 = vmul.f32 -1.442695, %v4726_v47  ;;  %v4730_v54 = vadd.f32 %v4688_v3, %v1650_v50  ;;  %v2617_v55 = vpop.f32.mrb[7].mxu1 }
 0x170   :  { %v2038_v56 = vadd.f32 1.0, %v3248_v51  ;;  %3259 = vpow2.f32 %v2417_v46 }
 0x171   :  { %v3250_v57 = vpop.eup %3249  ;;  %3261 = vrcp.f32 %v2003_v52  ;;  %v2453_v58 = vmul.f32 -1.442695, %v4730_v54 }
 0x172   :  { %v3252_v59 = vpop.eup %3251  ;;  %v2219_v60 = vmul.f32 %v3250_v57, %v4693_v9  ;;  %3263 = vrcp.f32 %v2038_v56 }
 0x173   :  { %v3254_v61 = vpop.eup %3253  ;;  %v2039_v62 = vadd.f32 1.0, %v3252_v59  ;;  %3265 = vpow2.f32 %v2452_v53 }
 0x174   :  { %2292 = vst.msk [vmem:[%s5345_s3] sm:$0xff] %vm1043_vm1, %v2219_v60  ;;  %v2220_v63 = vmul.f32 %v3254_v61, %v4698_v14  ;;  %3267 = vpow2.f32 %v2453_v58  ;;  %v1511_v0 = vpop.f32.mrb[12].mxu0 }
 0x175   :  { %3269 = vrcp.f32 %v2039_v62  ;;  %v4740_v1 = vadd.f32 %v4688_v3, %v1511_v0  ;;  %v2548_v2 = vpop.f32.mrb[13].mxu0 }
 0x176   :  { %2293 = vst.msk [vmem:[%s5345_s3 + $0x8] sm:$0xff] %vm1043_vm1, %v2220_v63  ;;  %v1514_v4 = vpop.f32.mrb[14].mxu0 }
 0x177   :  { %v3256_v5 = vpop.eup %3255  ;;  %v2418_v6 = vmul.f32 -1.442695, %v4740_v1  ;;  %v4748_v7 = vadd.f32 %v4688_v3, %v1514_v4  ;;  %v2549_v8 = vpop.f32.mrb[15].mxu0 }
 0x178   :  { %v2004_v9 = vadd.f32 1.0, %v3256_v5  ;;  %v1655_v10 = vpop.f32.mrb[8].mxu1 }
 0x179   :  { %v3258_v11 = vpop.eup %3257  ;;  %3271 = vpow2.f32 %v2418_v6  ;;  %v2419_v13 = vmul.f32 -1.442695, %v4748_v7  ;;  %v4752_v14 = vadd.f32 %v4688_v3, %v1655_v10  ;;  %v2620_v15 = vpop.f32.mrb[9].mxu1 }
 0x17a   :  { %v3260_v16 = vpop.eup %3259  ;;  %v2221_v17 = vmul.f32 %v3258_v11, %v4702_v18  ;;  %3273 = vrcp.f32 %v2004_v9  ;;  %v1658_v19 = vpop.f32.mrb[10].mxu1 }
 0x17b   :  { %v3262_v20 = vpop.eup %3261  ;;  %v2005_v21 = vadd.f32 1.0, %v3260_v16  ;;  %3275 = vpow2.f32 %v2419_v13  ;;  %v2454_v23 = vmul.f32 -1.442695, %v4752_v14  ;;  %v4757_v24 = vadd.f32 %v4688_v3, %v1658_v19  ;;  %v2621_v26 = vpop.f32.mrb[11].mxu1 }
 0x17c   :  { %v3264_v27 = vpop.eup %3263  ;;  %2294 = vst.msk [vmem:[%s5345_s3 + $0x10] sm:$0xff] %vm1043_vm1, %v2221_v17  ;;  %v2222_v28 = vmul.f32 %v3262_v20, %v4706_v22 }
 0x17d   :  { %v3266_v18 = vpop.eup %3265  ;;  %v2257_v29 = vmul.f32 %v3264_v27, %v4709_v25  ;;  %3277 = vrcp.f32 %v2005_v21  ;;  %v2455_v31 = vmul.f32 -1.442695, %v4757_v24 }
 0x17e   :  { %v3268_v12 = vpop.eup %3267  ;;  %2295 = vst.msk [vmem:[%s5345_s3 + $0x18] sm:$0xff] %vm1043_vm1, %v2222_v28  ;;  %v2040_v32 = vadd.f32 1.0, %v3266_v18  ;;  %3279 = vpow2.f32 %v2454_v23 }
 0x17f   :  { %v3270_v33 = vpop.eup %3269  ;;  %2330 = vst.msk [vmem:[%s5345_s3 + $0x130] sm:$0xff] %vm1043_vm1, %v2257_v29  ;;  %v2041_v22 = vadd.f32 1.0, %v3268_v12  ;;  %3281 = vpow2.f32 %v2455_v31 }
 0x180   :  { %v2258_v25 = vmul.f32 %v3270_v33, %v4714_v30  ;;  %3283 = vrcp.f32 %v2040_v32  ;;  %v1519_v34 = vpop.f32.mrb[16].mxu0 }
 0x181   :  { %3285 = vrcp.f32 %v2041_v22  ;;  %v4776_v35 = vadd.f32 %v4688_v3, %v1519_v34  ;;  %v2552_v36 = vpop.f32.mrb[17].mxu0 }
 0x182   :  { %2331 = vst.msk [vmem:[%s5345_s3 + $0x138] sm:$0xff] %vm1043_vm1, %v2258_v25  ;;  %v1522_v38 = vpop.f32.mrb[18].mxu0 }
 0x183   :  { %v3272_v39 = vpop.eup %3271  ;;  %v2420_v40 = vmul.f32 -1.442695, %v4776_v35  ;;  %v4784_v42 = vadd.f32 %v4688_v3, %v1522_v38  ;;  %v2553_v30 = vpop.f32.mrb[19].mxu0 }
 0x184   :  { %v3274_v43 = vpop.eup %3273  ;;  %v2006_v44 = vadd.f32 1.0, %v3272_v39  ;;  %v1663_v45 = vpop.f32.mrb[12].mxu1 }
 0x185   :  { %v3276_v46 = vpop.eup %3275  ;;  %v2223_v48 = vmul.f32 %v3274_v43, %v4718_v37  ;;  %3287 = vpow2.f32 %v2420_v40  ;;  %v2421_v49 = vmul.f32 -1.442695, %v4784_v42  ;;  %v4789_v50 = vadd.f32 %v4688_v3, %v1663_v45  ;;  %v2624_v51 = vpop.f32.mrb[13].mxu1 }
 0x186   :  { %3289 = vrcp.f32 %v2006_v44  ;;  %v2007_v52 = vadd.f32 1.0, %v3276_v46  ;;  %v1666_v53 = vpop.f32.mrb[14].mxu1 }
 0x187   :  { %v3278_v55 = vpop.eup %3277  ;;  %2296 = vst.msk [vmem:[%s5345_s3 + $0x20] sm:$0xff] %vm1043_vm1, %v2223_v48  ;;  %3291 = vpow2.f32 %v2421_v49  ;;  %v2456_v56 = vmul.f32 -1.442695, %v4789_v50  ;;  %v4797_v37 = vadd.f32 %v4688_v3, %v1666_v53  ;;  %v2625_v57 = vpop.f32.mrb[15].mxu1 }
 0x188   :  { %v3280_v58 = vpop.eup %3279  ;;  %v2224_v59 = vmul.f32 %v3278_v55, %v4722_v41  ;;  %3293 = vrcp.f32 %v2007_v52 }
 0x189   :  { %v3282_v60 = vpop.eup %3281  ;;  %v2042_v61 = vadd.f32 1.0, %v3280_v58  ;;  %3295 = vpow2.f32 %v2456_v56  ;;  %v2457_v62 = vmul.f32 -1.442695, %v4797_v37 }
 0x18a   :  { %v3284_v63 = vpop.eup %3283  ;;  %2297 = vst.msk [vmem:[%s5345_s3 + $0x28] sm:$0xff] %vm1043_vm1, %v2224_v59  ;;  %v2043_v0 = vadd.f32 1.0, %v3282_v60 }
 0x18b   :  { %v3286_v2 = vpop.eup %3285  ;;  %v2259_v4 = vmul.f32 %v3284_v63, %v4726_v47  ;;  %3297 = vrcp.f32 %v2042_v61 }
 0x18c   :  { %v2260_v5 = vmul.f32 %v3286_v2, %v4730_v54  ;;  %3299 = vrcp.f32 %v2043_v0  ;;  %v1527_v41 = vpop.f32.mrb[20].mxu0 }
 0x18d   :  { %2332 = vst.msk [vmem:[%s5345_s3 + $0x140] sm:$0xff] %vm1043_vm1, %v2259_v4  ;;  %3301 = vpow2.f32 %v2457_v62  ;;  %v4812_v6 = vadd.f32 %v4688_v3, %v1527_v41  ;;  %v2556_v8 = vpop.f32.mrb[21].mxu0 }
 0x18e   :  { %2333 = vst.msk [vmem:[%s5345_s3 + $0x148] sm:$0xff] %vm1043_vm1, %v2260_v5  ;;  %v1530_v47 = vpop.f32.mrb[22].mxu0 }
 0x18f   :  { %v3288_v9 = vpop.eup %3287  ;;  %v2422_v54 = vmul.f32 -1.442695, %v4812_v6  ;;  %v4820_v10 = vadd.f32 %v4688_v3, %v1530_v47  ;;  %v2557_v11 = vpop.f32.mrb[23].mxu0 }
 0x190   :  { %v3290_v13 = vpop.eup %3289  ;;  %v2008_v15 = vadd.f32 1.0, %v3288_v9  ;;  %v1671_v16 = vpop.f32.mrb[16].mxu1 }
 0x191   :  { %v3292_v17 = vpop.eup %3291  ;;  %v2225_v19 = vmul.f32 %v3290_v13, %v4740_v1  ;;  %3303 = vpow2.f32 %v2422_v54  ;;  %v2423_v20 = vmul.f32 -1.442695, %v4820_v10  ;;  %v4825_v21 = vadd.f32 %v4688_v3, %v1671_v16  ;;  %v2628_v23 = vpop.f32.mrb[17].mxu1 }
 0x192   :  { %v3294_v26 = vpop.eup %3293  ;;  %3305 = vrcp.f32 %v2008_v15  ;;  %v2009_v27 = vadd.f32 1.0, %v3292_v17  ;;  %v1674_v28 = vpop.f32.mrb[18].mxu1 }
 0x193   :  { %v3296_v18 = vpop.eup %3295  ;;  %2298 = vst.msk [vmem:[%s5345_s3 + $0x30] sm:$0xff] %vm1043_vm1, %v2225_v19  ;;  %v2226_v29 = vmul.f32 %v3294_v26, %v4748_v7  ;;  %3307 = vpow2.f32 %v2423_v20  ;;  %v2458_v1 = vmul.f32 -1.442695, %v4825_v21  ;;  %v4834_v31 = vadd.f32 %v4688_v3, %v1674_v28  ;;  %v2629_v12 = vpop.f32.mrb[19].mxu1 }
 0x194   :  { %3309 = vrcp.f32 %v2009_v27  ;;  %v2044_v32 = vadd.f32 1.0, %v3296_v18 }
 0x195   :  { %v3298_v33 = vpop.eup %3297  ;;  %2299 = vst.msk [vmem:[%s5345_s3 + $0x38] sm:$0xff] %vm1043_vm1, %v2226_v29  ;;  %3311 = vpow2.f32 %v2458_v1  ;;  %v2459_v22 = vmul.f32 -1.442695, %v4834_v31 }
 0x196   :  { %v3300_v25 = vpop.eup %3299  ;;  %v2261_v7 = vmul.f32 %v3298_v33, %v4752_v14  ;;  %3313 = vrcp.f32 %v2044_v32 }
 0x197   :  { %v3302_v34 = vpop.eup %3301  ;;  %v2262_v36 = vmul.f32 %v3300_v25, %v4757_v24  ;;  %3315 = vpow2.f32 %v2459_v22 }
 0x198   :  { %2334 = vst.msk [vmem:[%s5345_s3 + $0x150] sm:$0xff] %vm1043_vm1, %v2261_v7  ;;  %v2045_v38 = vadd.f32 1.0, %v3302_v34  ;;  %v1535_v39 = vpop.f32.mrb[24].mxu0 }
 0x199   :  { %2335 = vst.msk [vmem:[%s5345_s3 + $0x158] sm:$0xff] %vm1043_vm1, %v2262_v36  ;;  %v4852_v40 = vadd.f32 %v4688_v3, %v1535_v39  ;;  %v2560_v14 = vpop.f32.mrb[25].mxu0 }
 0x19a   :  { %3317 = vrcp.f32 %v2045_v38  ;;  %v1538_v30 = vpop.f32.mrb[26].mxu0 }
 0x19b   :  { %v3304_v24 = vpop.eup %3303  ;;  %v2424_v43 = vmul.f32 -1.442695, %v4852_v40  ;;  %v4856_v44 = vadd.f32 %v4688_v3, %v1538_v30  ;;  %v2561_v45 = vpop.f32.mrb[27].mxu0 }
 0x19c   :  { %v3306_v46 = vpop.eup %3305  ;;  %v2010_v48 = vadd.f32 1.0, %v3304_v24  ;;  %v1679_v49 = vpop.f32.mrb[20].mxu1 }
 0x19d   :  { %v3308_v51 = vpop.eup %3307  ;;  %v2227_v52 = vmul.f32 %v3306_v46, %v4776_v35  ;;  %3319 = vpow2.f32 %v2424_v43  ;;  %v2425_v53 = vmul.f32 -1.442695, %v4856_v44  ;;  %v4861_v55 = vadd.f32 %v4688_v3, %v1679_v49  ;;  %v2632_v56 = vpop.f32.mrb[21].mxu1 }
 0x19e   :  { %v3310_v57 = vpop.eup %3309  ;;  %3321 = vrcp.f32 %v2010_v48  ;;  %v2011_v58 = vadd.f32 1.0, %v3308_v51  ;;  %v1682_v59 = vpop.f32.mrb[22].mxu1 }
 0x19f   :  { %v3312_v60 = vpop.eup %3311  ;;  %2300 = vst.msk [vmem:[%s5345_s3 + $0x40] sm:$0xff] %vm1043_vm1, %v2227_v52  ;;  %v2228_v61 = vmul.f32 %v3310_v57, %v4784_v42  ;;  %3323 = vpow2.f32 %v2425_v53  ;;  %v2460_v35 = vmul.f32 -1.442695, %v4861_v55  ;;  %v4870_v62 = vadd.f32 %v4688_v3, %v1682_v59  ;;  %v2633_v63 = vpop.f32.mrb[23].mxu1 }
 0x1a0   :  { %v3314_v0 = vpop.eup %3313  ;;  %3325 = vrcp.f32 %v2011_v58  ;;  %v2046_v2 = vadd.f32 1.0, %v3312_v60 }
 0x1a1   :  { %v3316_v4 = vpop.eup %3315  ;;  %2301 = vst.msk [vmem:[%s5345_s3 + $0x48] sm:$0xff] %vm1043_vm1, %v2228_v61  ;;  %v2263_v5 = vmul.f32 %v3314_v0, %v4789_v50  ;;  %3327 = vpow2.f32 %v2460_v35  ;;  %v2461_v42 = vmul.f32 -1.442695, %v4870_v62 }
 0x1a2   :  { %3329 = vrcp.f32 %v2046_v2  ;;  %v2047_v41 = vadd.f32 1.0, %v3316_v4 }
 0x1a3   :  { %2336 = vst.msk [vmem:[%s5345_s3 + $0x160] sm:$0xff] %vm1043_vm1, %v2263_v5  ;;  %3331 = vpow2.f32 %v2461_v42 }
 0x1a4   :  { %v3318_v8 = vpop.eup %3317  ;;  %3333 = vrcp.f32 %v2047_v41  ;;  %v1543_v47 = vpop.f32.mrb[28].mxu0 }
 0x1a5   :  { %v2264_v9 = vmul.f32 %v3318_v8, %v4797_v37  ;;  %v4884_v54 = vadd.f32 %v4688_v3, %v1543_v47  ;;  %v2564_v50 = vpop.f32.mrb[29].mxu0 }
 0x1a6   :  { %v1546_v11 = vpop.f32.mrb[30].mxu0 }
 0x1a7   :  { %v3320_v13 = vpop.eup %3319  ;;  %2337 = vst.msk [vmem:[%s5345_s3 + $0x168] sm:$0xff] %vm1043_vm1, %v2264_v9  ;;  %v2426_v15 = vmul.f32 -1.442695, %v4884_v54  ;;  %v4892_v16 = vadd.f32 %v4688_v3, %v1546_v11  ;;  %v2565_v17 = vpop.f32.mrb[31].mxu0 }
 0x1a8   :  { %v3322_v19 = vpop.eup %3321  ;;  %v2012_v20 = vadd.f32 1.0, %v3320_v13  ;;  %v1687_v37 = vpop.f32.mrb[24].mxu1 }
 0x1a9   :  { %v3324_v23 = vpop.eup %3323  ;;  %v2229_v26 = vmul.f32 %v3322_v19, %v4812_v6  ;;  %3335 = vpow2.f32 %v2426_v15  ;;  %v2427_v27 = vmul.f32 -1.442695, %v4892_v16  ;;  %v4897_v28 = vadd.f32 %v4688_v3, %v1687_v37  ;;  %v2636_v18 = vpop.f32.mrb[25].mxu1 }
 0x1aa   :  { %v3326_v29 = vpop.eup %3325  ;;  %3337 = vrcp.f32 %v2012_v20  ;;  %v2013_v1 = vadd.f32 1.0, %v3324_v23  ;;  %v1690_v12 = vpop.f32.mrb[26].mxu1 }
 0x1ab   :  { %v3328_v32 = vpop.eup %3327  ;;  %2302 = vst.msk [vmem:[%s5345_s3 + $0x50] sm:$0xff] %vm1043_vm1, %v2229_v26  ;;  %v2230_v33 = vmul.f32 %v3326_v29, %v4820_v10  ;;  %3339 = vpow2.f32 %v2427_v27  ;;  %v2462_v6 = vmul.f32 -1.442695, %v4897_v28  ;;  %v4906_v22 = vadd.f32 %v4688_v3, %v1690_v12  ;;  %v2637_v25 = vpop.f32.mrb[27].mxu1 }
 0x1ac   :  { %v3330_v7 = vpop.eup %3329  ;;  %3341 = vrcp.f32 %v2013_v1  ;;  %v2048_v34 = vadd.f32 1.0, %v3328_v32 }
 0x1ad   :  { %v3332_v36 = vpop.eup %3331  ;;  %2303 = vst.msk [vmem:[%s5345_s3 + $0x58] sm:$0xff] %vm1043_vm1, %v2230_v33  ;;  %v2265_v38 = vmul.f32 %v3330_v7, %v4825_v21  ;;  %3343 = vpow2.f32 %v2462_v6  ;;  %v2463_v10 = vmul.f32 -1.442695, %v4906_v22 }
 0x1ae   :  { %v3334_v39 = vpop.eup %3333  ;;  %3345 = vrcp.f32 %v2048_v34  ;;  %v2049_v14 = vadd.f32 1.0, %v3332_v36 }
 0x1af   :  { %2338 = vst.msk [vmem:[%s5345_s3 + $0x170] sm:$0xff] %vm1043_vm1, %v2265_v38  ;;  %v2266_v30 = vmul.f32 %v3334_v39, %v4834_v31  ;;  %3347 = vpow2.f32 %v2463_v10 }
 0x1b0   :  { %3349 = vrcp.f32 %v2049_v14  ;;  %v1551_v24 = vpop.f32.mrb[32].mxu0 }
 0x1b1   :  { %2339 = vst.msk [vmem:[%s5345_s3 + $0x178] sm:$0xff] %vm1043_vm1, %v2266_v30  ;;  %v4924_v21 = vadd.f32 %v4688_v3, %v1551_v24  ;;  %v2568_v43 = vpop.f32.mrb[33].mxu0 }
 0x1b2   :  { %v1554_v45 = vpop.f32.mrb[34].mxu0 }
 0x1b3   :  { %v3336_v46 = vpop.eup %3335  ;;  %v2428_v48 = vmul.f32 -1.442695, %v4924_v21  ;;  %v4928_v49 = vadd.f32 %v4688_v3, %v1554_v45  ;;  %v2569_v31 = vpop.f32.mrb[35].mxu0 }
 0x1b4   :  { %v3338_v51 = vpop.eup %3337  ;;  %v2014_v52 = vadd.f32 1.0, %v3336_v46  ;;  %v1695_v53 = vpop.f32.mrb[28].mxu1 }
 0x1b5   :  { %v3340_v56 = vpop.eup %3339  ;;  %v2231_v57 = vmul.f32 %v3338_v51, %v4852_v40  ;;  %3351 = vpow2.f32 %v2428_v48  ;;  %v2429_v58 = vmul.f32 -1.442695, %v4928_v49  ;;  %v4933_v59 = vadd.f32 %v4688_v3, %v1695_v53  ;;  %v2640_v60 = vpop.f32.mrb[29].mxu1 }
 0x1b6   :  { %v3342_v61 = vpop.eup %3341  ;;  %3353 = vrcp.f32 %v2014_v52  ;;  %v2015_v35 = vadd.f32 1.0, %v3340_v56  ;;  %v1698_v63 = vpop.f32.mrb[30].mxu1 }
 0x1b7   :  { %v3344_v0 = vpop.eup %3343  ;;  %2304 = vst.msk [vmem:[%s5345_s3 + $0x60] sm:$0xff] %vm1043_vm1, %v2231_v57  ;;  %v2232_v2 = vmul.f32 %v3342_v61, %v4856_v44  ;;  %3355 = vpow2.f32 %v2429_v58  ;;  %v2464_v40 = vmul.f32 -1.442695, %v4933_v59  ;;  %v4942_v4 = vadd.f32 %v4688_v3, %v1698_v63  ;;  %v2641_v5 = vpop.f32.mrb[31].mxu1 }
 0x1b8   :  { %v3346_v42 = vpop.eup %3345  ;;  %3357 = vrcp.f32 %v2015_v35  ;;  %v2050_v41 = vadd.f32 1.0, %v3344_v0 }
 0x1b9   :  { %v3348_v8 = vpop.eup %3347  ;;  %2305 = vst.msk [vmem:[%s5345_s3 + $0x68] sm:$0xff] %vm1043_vm1, %v2232_v2  ;;  %v2267_v47 = vmul.f32 %v3346_v42, %v4861_v55  ;;  %3359 = vpow2.f32 %v2464_v40  ;;  %v2465_v44 = vmul.f32 -1.442695, %v4942_v4 }
 0x1ba   :  { %v3350_v9 = vpop.eup %3349  ;;  %3361 = vrcp.f32 %v2050_v41  ;;  %v2051_v50 = vadd.f32 1.0, %v3348_v8 }
 0x1bb   :  { %2340 = vst.msk [vmem:[%s5345_s3 + $0x180] sm:$0xff] %vm1043_vm1, %v2267_v47  ;;  %v2268_v11 = vmul.f32 %v3350_v9, %v4870_v62  ;;  %3363 = vpow2.f32 %v2465_v44 }
 0x1bc   :  { %3365 = vrcp.f32 %v2051_v50  ;;  %v1559_v13 = vpop.f32.mrb[36].mxu0 }
 0x1bd   :  { %2341 = vst.msk [vmem:[%s5345_s3 + $0x188] sm:$0xff] %vm1043_vm1, %v2268_v11  ;;  %v4960_v55 = vadd.f32 %v4688_v3, %v1559_v13  ;;  %v2572_v15 = vpop.f32.mrb[37].mxu0 }
 0x1be   :  { %v1562_v17 = vpop.f32.mrb[38].mxu0 }
 0x1bf   :  { %v3352_v19 = vpop.eup %3351  ;;  %v2430_v20 = vmul.f32 -1.442695, %v4960_v55  ;;  %v4964_v37 = vadd.f32 %v4688_v3, %v1562_v17  ;;  %v2573_v62 = vpop.f32.mrb[39].mxu0 }
 0x1c0   :  { %v3354_v23 = vpop.eup %3353  ;;  %v2016_v26 = vadd.f32 1.0, %v3352_v19  ;;  %v1703_v27 = vpop.f32.mrb[32].mxu1 }
 0x1c1   :  { %v3356_v18 = vpop.eup %3355  ;;  %v2233_v29 = vmul.f32 %v3354_v23, %v4884_v54  ;;  %3367 = vpow2.f32 %v2430_v20  ;;  %v2431_v1 = vmul.f32 -1.442695, %v4964_v37  ;;  %v4969_v12 = vadd.f32 %v4688_v3, %v1703_v27  ;;  %v2644_v32 = vpop.f32.mrb[33].mxu1 }
 0x1c2   :  { %v3358_v33 = vpop.eup %3357  ;;  %3369 = vrcp.f32 %v2016_v26  ;;  %v2017_v6 = vadd.f32 1.0, %v3356_v18  ;;  %v1706_v25 = vpop.f32.mrb[34].mxu1 }
 0x1c3   :  { %v3360_v7 = vpop.eup %3359  ;;  %2306 = vst.msk [vmem:[%s5345_s3 + $0x70] sm:$0xff] %vm1043_vm1, %v2233_v29  ;;  %v2234_v34 = vmul.f32 %v3358_v33, %v4892_v16  ;;  %3371 = vpow2.f32 %v2431_v1  ;;  %v2466_v54 = vmul.f32 -1.442695, %v4969_v12  ;;  %v4978_v36 = vadd.f32 %v4688_v3, %v1706_v25  ;;  %v2645_v38 = vpop.f32.mrb[35].mxu1 }
 0x1c4   :  { %v3362_v10 = vpop.eup %3361  ;;  %3373 = vrcp.f32 %v2017_v6  ;;  %v2052_v39 = vadd.f32 1.0, %v3360_v7 }
 0x1c5   :  { %v3364_v14 = vpop.eup %3363  ;;  %2307 = vst.msk [vmem:[%s5345_s3 + $0x78] sm:$0xff] %vm1043_vm1, %v2234_v34  ;;  %v2269_v30 = vmul.f32 %v3362_v10, %v4897_v28  ;;  %3375 = vpow2.f32 %v2466_v54  ;;  %v2467_v16 = vmul.f32 -1.442695, %v4978_v36 }
 0x1c6   :  { %v3366_v24 = vpop.eup %3365  ;;  %3377 = vrcp.f32 %v2052_v39  ;;  %v2053_v43 = vadd.f32 1.0, %v3364_v14 }
 0x1c7   :  { %2342 = vst.msk [vmem:[%s5345_s3 + $0x190] sm:$0xff] %vm1043_vm1, %v2269_v30  ;;  %v2270_v45 = vmul.f32 %v3366_v24, %v4906_v22  ;;  %3379 = vpow2.f32 %v2467_v16 }
 0x1c8   :  { %3381 = vrcp.f32 %v2053_v43  ;;  %v1567_v46 = vpop.f32.mrb[40].mxu0 }
 0x1c9   :  { %2343 = vst.msk [vmem:[%s5345_s3 + $0x198] sm:$0xff] %vm1043_vm1, %v2270_v45  ;;  %v4996_v28 = vadd.f32 %v4688_v3, %v1567_v46  ;;  %v2576_v48 = vpop.f32.mrb[41].mxu0 }
 0x1ca   :  { %v1570_v31 = vpop.f32.mrb[42].mxu0 }
 0x1cb   :  { %v3368_v51 = vpop.eup %3367  ;;  %v2432_v52 = vmul.f32 -1.442695, %v4996_v28  ;;  %v5000_v53 = vadd.f32 %v4688_v3, %v1570_v31  ;;  %v2577_v22 = vpop.f32.mrb[43].mxu0 }
 0x1cc   :  { %v3370_v56 = vpop.eup %3369  ;;  %v2018_v57 = vadd.f32 1.0, %v3368_v51  ;;  %v1711_v58 = vpop.f32.mrb[36].mxu1 }
 0x1cd   :  { %v3372_v60 = vpop.eup %3371  ;;  %v2235_v61 = vmul.f32 %v3370_v56, %v4924_v21  ;;  %3383 = vpow2.f32 %v2432_v52  ;;  %v2433_v35 = vmul.f32 -1.442695, %v5000_v53  ;;  %v5005_v63 = vadd.f32 %v4688_v3, %v1711_v58  ;;  %v2648_v0 = vpop.f32.mrb[37].mxu1 }
 0x1ce   :  { %v3374_v2 = vpop.eup %3373  ;;  %3385 = vrcp.f32 %v2018_v57  ;;  %v2019_v40 = vadd.f32 1.0, %v3372_v60  ;;  %v1714_v5 = vpop.f32.mrb[38].mxu1 }
 0x1cf   :  { %v3376_v42 = vpop.eup %3375  ;;  %2308 = vst.msk [vmem:[%s5345_s3 + $0x80] sm:$0xff] %vm1043_vm1, %v2235_v61  ;;  %v2236_v41 = vmul.f32 %v3374_v2, %v4928_v49  ;;  %3387 = vpow2.f32 %v2433_v35  ;;  %v2468_v21 = vmul.f32 -1.442695, %v5005_v63  ;;  %v5014_v8 = vadd.f32 %v4688_v3, %v1714_v5  ;;  %v2649_v47 = vpop.f32.mrb[39].mxu1 }
 0x1d0   :  { %v3378_v44 = vpop.eup %3377  ;;  %3389 = vrcp.f32 %v2019_v40  ;;  %v2054_v9 = vadd.f32 1.0, %v3376_v42 }
 0x1d1   :  { %v3380_v50 = vpop.eup %3379  ;;  %2309 = vst.msk [vmem:[%s5345_s3 + $0x88] sm:$0xff] %vm1043_vm1, %v2236_v41  ;;  %v2271_v11 = vmul.f32 %v3378_v44, %v4933_v59  ;;  %3391 = vpow2.f32 %v2468_v21  ;;  %v2469_v49 = vmul.f32 -1.442695, %v5014_v8 }
 0x1d2   :  { %v3382_v13 = vpop.eup %3381  ;;  %3393 = vrcp.f32 %v2054_v9  ;;  %v2055_v15 = vadd.f32 1.0, %v3380_v50 }
 0x1d3   :  { %2344 = vst.msk [vmem:[%s5345_s3 + $0x1a0] sm:$0xff] %vm1043_vm1, %v2271_v11  ;;  %v2272_v17 = vmul.f32 %v3382_v13, %v4942_v4  ;;  %3395 = vpow2.f32 %v2469_v49 }
 0x1d4   :  { %3397 = vrcp.f32 %v2055_v15  ;;  %v1575_v19 = vpop.f32.mrb[44].mxu0 }
 0x1d5   :  { %2345 = vst.msk [vmem:[%s5345_s3 + $0x1a8] sm:$0xff] %vm1043_vm1, %v2272_v17  ;;  %v5032_v59 = vadd.f32 %v4688_v3, %v1575_v19  ;;  %v2580_v20 = vpop.f32.mrb[45].mxu0 }
 0x1d6   :  { %v1578_v62 = vpop.f32.mrb[46].mxu0 }
 0x1d7   :  { %v3384_v23 = vpop.eup %3383  ;;  %v2434_v26 = vmul.f32 -1.442695, %v5032_v59  ;;  %v5036_v27 = vadd.f32 %v4688_v3, %v1578_v62  ;;  %v2581_v4 = vpop.f32.mrb[47].mxu0 }
 0x1d8   :  { %v3386_v18 = vpop.eup %3385  ;;  %v2020_v29 = vadd.f32 1.0, %v3384_v23  ;;  %v1719_v1 = vpop.f32.mrb[40].mxu1 }
 0x1d9   :  { %v3388_v32 = vpop.eup %3387  ;;  %v2237_v33 = vmul.f32 %v3386_v18, %v4960_v55  ;;  %3399 = vpow2.f32 %v2434_v26  ;;  %v2435_v6 = vmul.f32 -1.442695, %v5036_v27  ;;  %v5041_v25 = vadd.f32 %v4688_v3, %v1719_v1  ;;  %v2652_v7 = vpop.f32.mrb[41].mxu1 }
 0x1da   :  { %v3390_v34 = vpop.eup %3389  ;;  %3401 = vrcp.f32 %v2020_v29  ;;  %v2021_v54 = vadd.f32 1.0, %v3388_v32  ;;  %v1722_v38 = vpop.f32.mrb[42].mxu1 }
 0x1db   :  { %v3392_v10 = vpop.eup %3391  ;;  %2310 = vst.msk [vmem:[%s5345_s3 + $0x90] sm:$0xff] %vm1043_vm1, %v2237_v33  ;;  %v2238_v39 = vmul.f32 %v3390_v34, %v4964_v37  ;;  %3403 = vpow2.f32 %v2435_v6  ;;  %v2470_v55 = vmul.f32 -1.442695, %v5041_v25  ;;  %v5050_v14 = vadd.f32 %v4688_v3, %v1722_v38  ;;  %v2653_v30 = vpop.f32.mrb[43].mxu1 }
 0x1dc   :  { %v3394_v16 = vpop.eup %3393  ;;  %3405 = vrcp.f32 %v2021_v54  ;;  %v2056_v24 = vadd.f32 1.0, %v3392_v10 }
 0x1dd   :  { %v3396_v43 = vpop.eup %3395  ;;  %2311 = vst.msk [vmem:[%s5345_s3 + $0x98] sm:$0xff] %vm1043_vm1, %v2238_v39  ;;  %v2273_v45 = vmul.f32 %v3394_v16, %v4969_v12  ;;  %3407 = vpow2.f32 %v2470_v55  ;;  %v2471_v37 = vmul.f32 -1.442695, %v5050_v14 }
 0x1de   :  { %v3398_v46 = vpop.eup %3397  ;;  %3409 = vrcp.f32 %v2056_v24  ;;  %v2057_v48 = vadd.f32 1.0, %v3396_v43 }
 0x1df   :  { %2346 = vst.msk [vmem:[%s5345_s3 + $0x1b0] sm:$0xff] %vm1043_vm1, %v2273_v45  ;;  %v2274_v31 = vmul.f32 %v3398_v46, %v4978_v36  ;;  %3411 = vpow2.f32 %v2471_v37 }
 0x1e0   :  { %3413 = vrcp.f32 %v2057_v48  ;;  %v1583_v51 = vpop.f32.mrb[48].mxu0 }
 0x1e1   :  { %2347 = vst.msk [vmem:[%s5345_s3 + $0x1b8] sm:$0xff] %vm1043_vm1, %v2274_v31  ;;  %v5068_v12 = vadd.f32 %v4688_v3, %v1583_v51  ;;  %v2584_v52 = vpop.f32.mrb[49].mxu0 }
 0x1e2   :  { %v1586_v22 = vpop.f32.mrb[50].mxu0 }
 0x1e3   :  { %v3400_v56 = vpop.eup %3399  ;;  %v2436_v57 = vmul.f32 -1.442695, %v5068_v12  ;;  %v5072_v58 = vadd.f32 %v4688_v3, %v1586_v22  ;;  %v2585_v36 = vpop.f32.mrb[51].mxu0 }
 0x1e4   :  { %v3402_v60 = vpop.eup %3401  ;;  %v2022_v61 = vadd.f32 1.0, %v3400_v56  ;;  %v1727_v35 = vpop.f32.mrb[44].mxu1 }
 0x1e5   :  { %v3404_v0 = vpop.eup %3403  ;;  %v2239_v2 = vmul.f32 %v3402_v60, %v4996_v28  ;;  %3415 = vpow2.f32 %v2436_v57  ;;  %v2437_v40 = vmul.f32 -1.442695, %v5072_v58  ;;  %v5077_v5 = vadd.f32 %v4688_v3, %v1727_v35  ;;  %v2656_v42 = vpop.f32.mrb[45].mxu1 }
 0x1e6   :  { %v3406_v41 = vpop.eup %3405  ;;  %3417 = vrcp.f32 %v2022_v61  ;;  %v2023_v21 = vadd.f32 1.0, %v3404_v0  ;;  %v1730_v47 = vpop.f32.mrb[46].mxu1 }
 0x1e7   :  { %v3408_v44 = vpop.eup %3407  ;;  %2312 = vst.msk [vmem:[%s5345_s3 + $0xa0] sm:$0xff] %vm1043_vm1, %v2239_v2  ;;  %v2240_v9 = vmul.f32 %v3406_v41, %v5000_v53  ;;  %3419 = vpow2.f32 %v2437_v40  ;;  %v2472_v28 = vmul.f32 -1.442695, %v5077_v5  ;;  %v5086_v50 = vadd.f32 %v4688_v3, %v1730_v47  ;;  %v2657_v11 = vpop.f32.mrb[47].mxu1 }
 0x1e8   :  { %v3410_v49 = vpop.eup %3409  ;;  %3421 = vrcp.f32 %v2023_v21  ;;  %v2058_v13 = vadd.f32 1.0, %v3408_v44 }
 0x1e9   :  { %v3412_v15 = vpop.eup %3411  ;;  %2313 = vst.msk [vmem:[%s5345_s3 + $0xa8] sm:$0xff] %vm1043_vm1, %v2240_v9  ;;  %v2275_v17 = vmul.f32 %v3410_v49, %v5005_v63  ;;  %3423 = vpow2.f32 %v2472_v28  ;;  %v2473_v53 = vmul.f32 -1.442695, %v5086_v50  ;;  %v5106_v63 = vld [vmem:[%s5344_s2] ss:$0 sm:$0xff] }
 0x1ea   :  { %v3414_v19 = vpop.eup %3413  ;;  %3425 = vrcp.f32 %v2058_v13  ;;  %v2059_v20 = vadd.f32 1.0, %v3412_v15 }
 0x1eb   :  { %2348 = vst.msk [vmem:[%s5345_s3 + $0x1c0] sm:$0xff] %vm1043_vm1, %v2275_v17  ;;  %v2276_v3 = vmul.f32 %v3414_v19, %v5014_v8  ;;  %3427 = vpow2.f32 %v2473_v53 }
 0x1ec   :  { %3429 = vrcp.f32 %v2059_v20  ;;  %v1591_v62 = vpop.f32.mrb[52].mxu0 }
 0x1ed   :  { %2349 = vst.msk [vmem:[%s5345_s3 + $0x1c8] sm:$0xff] %vm1043_vm1, %v2276_v3  ;;  %v5109_v23 = vadd.f32 %v5106_v63, %v1591_v62  ;;  %v2588_v26 = vpop.f32.mrb[53].mxu0 }
 0x1ee   :  { %v1594_v4 = vpop.f32.mrb[54].mxu0 }
 0x1ef   :  { %v3416_v18 = vpop.eup %3415  ;;  %v2438_v8 = vmul.f32 -1.442695, %v5109_v23  ;;  %v5113_v29 = vadd.f32 %v5106_v63, %v1594_v4  ;;  %v2589_v1 = vpop.f32.mrb[55].mxu0 }
 0x1f0   :  { %v3418_v32 = vpop.eup %3417  ;;  %v2024_v33 = vadd.f32 1.0, %v3416_v18  ;;  %v1735_v6 = vpop.f32.mrb[48].mxu1 }
 0x1f1   :  { %v3420_v7 = vpop.eup %3419  ;;  %v2241_v34 = vmul.f32 %v3418_v32, %v5032_v59  ;;  %3431 = vpow2.f32 %v2438_v8  ;;  %v2439_v54 = vmul.f32 -1.442695, %v5113_v29  ;;  %v5118_v38 = vadd.f32 %v5106_v63, %v1735_v6  ;;  %v2660_v10 = vpop.f32.mrb[49].mxu1 }
 0x1f2   :  { %v3422_v39 = vpop.eup %3421  ;;  %3433 = vrcp.f32 %v2024_v33  ;;  %v2025_v55 = vadd.f32 1.0, %v3420_v7  ;;  %v1738_v30 = vpop.f32.mrb[50].mxu1 }
 0x1f3   :  { %v3424_v16 = vpop.eup %3423  ;;  %2314 = vst.msk [vmem:[%s5345_s3 + $0xb0] sm:$0xff] %vm1043_vm1, %v2241_v34  ;;  %v2242_v24 = vmul.f32 %v3422_v39, %v5036_v27  ;;  %3435 = vpow2.f32 %v2439_v54  ;;  %v2474_v59 = vmul.f32 -1.442695, %v5118_v38  ;;  %v5127_v43 = vadd.f32 %v5106_v63, %v1738_v30  ;;  %v2661_v45 = vpop.f32.mrb[51].mxu1 }
 0x1f4   :  { %v3426_v37 = vpop.eup %3425  ;;  %3437 = vrcp.f32 %v2025_v55  ;;  %v2060_v46 = vadd.f32 1.0, %v3424_v16 }
 0x1f5   :  { %v3428_v48 = vpop.eup %3427  ;;  %2315 = vst.msk [vmem:[%s5345_s3 + $0xb8] sm:$0xff] %vm1043_vm1, %v2242_v24  ;;  %v2277_v31 = vmul.f32 %v3426_v37, %v5041_v25  ;;  %3439 = vpow2.f32 %v2474_v59  ;;  %v2475_v27 = vmul.f32 -1.442695, %v5127_v43 }
 0x1f6   :  { %v3430_v51 = vpop.eup %3429  ;;  %3441 = vrcp.f32 %v2060_v46  ;;  %v2061_v52 = vadd.f32 1.0, %v3428_v48 }
 0x1f7   :  { %2350 = vst.msk [vmem:[%s5345_s3 + $0x1d0] sm:$0xff] %vm1043_vm1, %v2277_v31  ;;  %v2278_v22 = vmul.f32 %v3430_v51, %v5050_v14  ;;  %3443 = vpow2.f32 %v2475_v27 }
 0x1f8   :  { %3445 = vrcp.f32 %v2061_v52  ;;  %v1599_v56 = vpop.f32.mrb[56].mxu0 }
 0x1f9   :  { %2351 = vst.msk [vmem:[%s5345_s3 + $0x1d8] sm:$0xff] %vm1043_vm1, %v2278_v22  ;;  %v5145_v25 = vadd.f32 %v5106_v63, %v1599_v56  ;;  %v2592_v57 = vpop.f32.mrb[57].mxu0 }
 0x1fa   :  { %v1602_v36 = vpop.f32.mrb[58].mxu0 }
 0x1fb   :  { %v3432_v60 = vpop.eup %3431  ;;  %v2440_v61 = vmul.f32 -1.442695, %v5145_v25  ;;  %v5149_v35 = vadd.f32 %v5106_v63, %v1602_v36  ;;  %v2593_v14 = vpop.f32.mrb[59].mxu0 }
 0x1fc   :  { %v3434_v0 = vpop.eup %3433  ;;  %v2026_v2 = vadd.f32 1.0, %v3432_v60  ;;  %v1743_v40 = vpop.f32.mrb[52].mxu1 }
 0x1fd   :  { %v3436_v42 = vpop.eup %3435  ;;  %v2243_v41 = vmul.f32 %v3434_v0, %v5068_v12  ;;  %3447 = vpow2.f32 %v2440_v61  ;;  %v2441_v21 = vmul.f32 -1.442695, %v5149_v35  ;;  %v5154_v47 = vadd.f32 %v5106_v63, %v1743_v40  ;;  %v2664_v44 = vpop.f32.mrb[53].mxu1 }
 0x1fe   :  { %v3438_v9 = vpop.eup %3437  ;;  %3449 = vrcp.f32 %v2026_v2  ;;  %v2027_v28 = vadd.f32 1.0, %v3436_v42  ;;  %v1746_v11 = vpop.f32.mrb[54].mxu1 }
 0x1ff   :  { %v3440_v49 = vpop.eup %3439  ;;  %2316 = vst.msk [vmem:[%s5345_s3 + $0xc0] sm:$0xff] %vm1043_vm1, %v2243_v41  ;;  %v2244_v13 = vmul.f32 %v3438_v9, %v5072_v58  ;;  %3451 = vpow2.f32 %v2441_v21  ;;  %v2476_v12 = vmul.f32 -1.442695, %v5154_v47  ;;  %v5163_v15 = vadd.f32 %v5106_v63, %v1746_v11  ;;  %v2665_v17 = vpop.f32.mrb[55].mxu1 }
 0x200   :  { %v3442_v53 = vpop.eup %3441  ;;  %3453 = vrcp.f32 %v2027_v28  ;;  %v2062_v19 = vadd.f32 1.0, %v3440_v49 }
 0x201   :  { %v3444_v20 = vpop.eup %3443  ;;  %2317 = vst.msk [vmem:[%s5345_s3 + $0xc8] sm:$0xff] %vm1043_vm1, %v2244_v13  ;;  %v2279_v3 = vmul.f32 %v3442_v53, %v5077_v5  ;;  %3455 = vpow2.f32 %v2476_v12  ;;  %v2477_v58 = vmul.f32 -1.442695, %v5163_v15 }
 0x202   :  { %v3446_v62 = vpop.eup %3445  ;;  %3457 = vrcp.f32 %v2062_v19  ;;  %v2063_v26 = vadd.f32 1.0, %v3444_v20 }
 0x203   :  { %2352 = vst.msk [vmem:[%s5345_s3 + $0x1e0] sm:$0xff] %vm1043_vm1, %v2279_v3  ;;  %v2280_v4 = vmul.f32 %v3446_v62, %v5086_v50  ;;  %3459 = vpow2.f32 %v2477_v58 }
 0x204   :  { %3461 = vrcp.f32 %v2063_v26  ;;  %v1607_v18 = vpop.f32.mrb[60].mxu0 }
 0x205   :  { %2353 = vst.msk [vmem:[%s5345_s3 + $0x1e8] sm:$0xff] %vm1043_vm1, %v2280_v4  ;;  %v5181_v5 = vadd.f32 %v5106_v63, %v1607_v18  ;;  %v2596_v8 = vpop.f32.mrb[61].mxu0 }
 0x206   :  { %v1610_v1 = vpop.f32.mrb[62].mxu0 }
 0x207   :  { %v3448_v32 = vpop.eup %3447  ;;  %v2442_v33 = vmul.f32 -1.442695, %v5181_v5  ;;  %v5185_v6 = vadd.f32 %v5106_v63, %v1610_v1  ;;  %v2597_v50 = vpop.f32.mrb[63].mxu0 }
 0x208   :  { %v3450_v7 = vpop.eup %3449  ;;  %v2028_v34 = vadd.f32 1.0, %v3448_v32  ;;  %v1751_v54 = vpop.f32.mrb[56].mxu1 }
 0x209   :  { %v3452_v10 = vpop.eup %3451  ;;  %v2245_v39 = vmul.f32 %v3450_v7, %v5109_v23  ;;  %3463 = vpow2.f32 %v2442_v33  ;;  %v2443_v55 = vmul.f32 -1.442695, %v5185_v6  ;;  %v5190_v30 = vadd.f32 %v5106_v63, %v1751_v54  ;;  %v2668_v16 = vpop.f32.mrb[57].mxu1 }
 0x20a   :  { %v3454_v24 = vpop.eup %3453  ;;  %3465 = vrcp.f32 %v2028_v34  ;;  %v2029_v59 = vadd.f32 1.0, %v3452_v10  ;;  %v1754_v45 = vpop.f32.mrb[58].mxu1 }
 0x20b   :  { %v3456_v37 = vpop.eup %3455  ;;  %2318 = vst.msk [vmem:[%s5345_s3 + $0xd0] sm:$0xff] %vm1043_vm1, %v2245_v39  ;;  %v2246_v46 = vmul.f32 %v3454_v24, %v5113_v29  ;;  %3467 = vpow2.f32 %v2443_v55  ;;  %v2478_v23 = vmul.f32 -1.442695, %v5190_v30  ;;  %v5199_v48 = vadd.f32 %v5106_v63, %v1754_v45  ;;  %v2669_v31 = vpop.f32.mrb[59].mxu1 }
 0x20c   :  { %v3458_v27 = vpop.eup %3457  ;;  %3469 = vrcp.f32 %v2029_v59  ;;  %v2064_v51 = vadd.f32 1.0, %v3456_v37 }
 0x20d   :  { %v3460_v52 = vpop.eup %3459  ;;  %2319 = vst.msk [vmem:[%s5345_s3 + $0xd8] sm:$0xff] %vm1043_vm1, %v2246_v46  ;;  %v2281_v22 = vmul.f32 %v3458_v27, %v5118_v38  ;;  %3471 = vpow2.f32 %v2478_v23  ;;  %v2479_v29 = vmul.f32 -1.442695, %v5199_v48 }
 0x20e   :  { %v3462_v56 = vpop.eup %3461  ;;  %3473 = vrcp.f32 %v2064_v51  ;;  %v2065_v57 = vadd.f32 1.0, %v3460_v52 }
 0x20f   :  { %2354 = vst.msk [vmem:[%s5345_s3 + $0x1f0] sm:$0xff] %vm1043_vm1, %v2281_v22  ;;  %v2282_v36 = vmul.f32 %v3462_v56, %v5127_v43  ;;  %3475 = vpow2.f32 %v2479_v29 }
 0x210   :  { %3477 = vrcp.f32 %v2065_v57  ;;  %v1615_v60 = vpop.f32.mrb[64].mxu0 }
 0x211   :  { %2355 = vst.msk [vmem:[%s5345_s3 + $0x1f8] sm:$0xff] %vm1043_vm1, %v2282_v36  ;;  %v5217_v38 = vadd.f32 %v5106_v63, %v1615_v60  ;;  %v2600_v61 = vpop.f32.mrb[65].mxu0 }
 0x212   :  { %v1618_v14 = vpop.f32.mrb[66].mxu0 }
 0x213   :  { %v3464_v0 = vpop.eup %3463  ;;  %v2444_v2 = vmul.f32 -1.442695, %v5217_v38  ;;  %v5221_v40 = vadd.f32 %v5106_v63, %v1618_v14  ;;  %v2601_v43 = vpop.f32.mrb[67].mxu0 }
 0x214   :  { %v3466_v42 = vpop.eup %3465  ;;  %v2030_v41 = vadd.f32 1.0, %v3464_v0  ;;  %v1759_v21 = vpop.f32.mrb[60].mxu1 }
 0x215   :  { %v3468_v44 = vpop.eup %3467  ;;  %v2247_v9 = vmul.f32 %v3466_v42, %v5145_v25  ;;  %3479 = vpow2.f32 %v2444_v2  ;;  %v2445_v28 = vmul.f32 -1.442695, %v5221_v40  ;;  %v5226_v11 = vadd.f32 %v5106_v63, %v1759_v21  ;;  %v2672_v49 = vpop.f32.mrb[61].mxu1 }
 0x216   :  { %v3470_v13 = vpop.eup %3469  ;;  %3481 = vrcp.f32 %v2030_v41  ;;  %v2031_v12 = vadd.f32 1.0, %v3468_v44  ;;  %v1762_v17 = vpop.f32.mrb[62].mxu1 }
 0x217   :  { %v3472_v53 = vpop.eup %3471  ;;  %2320 = vst.msk [vmem:[%s5345_s3 + $0xe0] sm:$0xff] %vm1043_vm1, %v2247_v9  ;;  %v2248_v19 = vmul.f32 %v3470_v13, %v5149_v35  ;;  %3483 = vpow2.f32 %v2445_v28  ;;  %v2480_v25 = vmul.f32 -1.442695, %v5226_v11  ;;  %v5235_v20 = vadd.f32 %v5106_v63, %v1762_v17  ;;  %v2673_v3 = vpop.f32.mrb[63].mxu1 }
 0x218   :  { %v3474_v58 = vpop.eup %3473  ;;  %3485 = vrcp.f32 %v2031_v12  ;;  %v2066_v62 = vadd.f32 1.0, %v3472_v53 }
 0x219   :  { %v3476_v26 = vpop.eup %3475  ;;  %2321 = vst.msk [vmem:[%s5345_s3 + $0xe8] sm:$0xff] %vm1043_vm1, %v2248_v19  ;;  %v2283_v4 = vmul.f32 %v3474_v58, %v5154_v47  ;;  %3487 = vpow2.f32 %v2480_v25  ;;  %v2481_v35 = vmul.f32 -1.442695, %v5235_v20 }
 0x21a   :  { %v3478_v18 = vpop.eup %3477  ;;  %3489 = vrcp.f32 %v2066_v62  ;;  %v2067_v8 = vadd.f32 1.0, %v3476_v26 }
 0x21b   :  { %2356 = vst.msk [vmem:[%s5345_s3 + $0x200] sm:$0xff] %vm1043_vm1, %v2283_v4  ;;  %v2284_v1 = vmul.f32 %v3478_v18, %v5163_v15  ;;  %3491 = vpow2.f32 %v2481_v35 }
 0x21c   :  { %3493 = vrcp.f32 %v2067_v8  ;;  %v1623_v32 = vpop.f32.mrb[68].mxu0 }
 0x21d   :  { %2357 = vst.msk [vmem:[%s5345_s3 + $0x208] sm:$0xff] %vm1043_vm1, %v2284_v1  ;;  %v5253_v47 = vadd.f32 %v5106_v63, %v1623_v32  ;;  %v2604_v33 = vpop.f32.mrb[69].mxu0 }
 0x21e   :  { %v1626_v50 = vpop.f32.mrb[70].mxu0 }
 0x21f   :  { %v3480_v7 = vpop.eup %3479  ;;  %v2446_v34 = vmul.f32 -1.442695, %v5253_v47  ;;  %v5257_v54 = vadd.f32 %v5106_v63, %v1626_v50  ;;  %v2605_v15 = vpop.f32.mrb[71].mxu0 }
 0x220   :  { %v3482_v10 = vpop.eup %3481  ;;  %v2032_v39 = vadd.f32 1.0, %v3480_v7  ;;  %v1767_v55 = vpop.f32.mrb[64].mxu1 }
 0x221   :  { %v3484_v16 = vpop.eup %3483  ;;  %v2249_v24 = vmul.f32 %v3482_v10, %v5181_v5  ;;  %3495 = vpow2.f32 %v2446_v34  ;;  %v2447_v59 = vmul.f32 -1.442695, %v5257_v54  ;;  %v5262_v45 = vadd.f32 %v5106_v63, %v1767_v55  ;;  %v2676_v37 = vpop.f32.mrb[65].mxu1 }
 0x222   :  { %v3486_v46 = vpop.eup %3485  ;;  %3497 = vrcp.f32 %v2032_v39  ;;  %v2033_v23 = vadd.f32 1.0, %v3484_v16  ;;  %v1770_v31 = vpop.f32.mrb[66].mxu1 }
 0x223   :  { %v3488_v27 = vpop.eup %3487  ;;  %2322 = vst.msk [vmem:[%s5345_s3 + $0xf0] sm:$0xff] %vm1043_vm1, %v2249_v24  ;;  %v2250_v51 = vmul.f32 %v3486_v46, %v5185_v6  ;;  %3499 = vpow2.f32 %v2447_v59  ;;  %v2482_v5 = vmul.f32 -1.442695, %v5262_v45  ;;  %v5271_v52 = vadd.f32 %v5106_v63, %v1770_v31  ;;  %v2677_v22 = vpop.f32.mrb[67].mxu1 }
 0x224   :  { %v3490_v29 = vpop.eup %3489  ;;  %3501 = vrcp.f32 %v2033_v23  ;;  %v2068_v56 = vadd.f32 1.0, %v3488_v27 }
 0x225   :  { %v3492_v57 = vpop.eup %3491  ;;  %2323 = vst.msk [vmem:[%s5345_s3 + $0xf8] sm:$0xff] %vm1043_vm1, %v2250_v51  ;;  %v2285_v36 = vmul.f32 %v3490_v29, %v5190_v30  ;;  %3503 = vpow2.f32 %v2482_v5  ;;  %v2483_v6 = vmul.f32 -1.442695, %v5271_v52 }
 0x226   :  { %v3494_v60 = vpop.eup %3493  ;;  %3505 = vrcp.f32 %v2068_v56  ;;  %v2069_v61 = vadd.f32 1.0, %v3492_v57 }
 0x227   :  { %2358 = vst.msk [vmem:[%s5345_s3 + $0x210] sm:$0xff] %vm1043_vm1, %v2285_v36  ;;  %v2286_v14 = vmul.f32 %v3494_v60, %v5199_v48  ;;  %3507 = vpow2.f32 %v2483_v6 }
 0x228   :  { %3509 = vrcp.f32 %v2069_v61  ;;  %v1631_v0 = vpop.f32.mrb[72].mxu0 }
 0x229   :  { %2359 = vst.msk [vmem:[%s5345_s3 + $0x218] sm:$0xff] %vm1043_vm1, %v2286_v14  ;;  %v1632_v30 = vadd.f32 %v5106_v63, %v1631_v0  ;;  %v2608_v2 = vpop.f32.mrb[73].mxu0 }
 0x22a   :  { %v1634_v43 = vpop.f32.mrb[74].mxu0  ;;  %v1775_v42 = vpop.f32.mrb[68].mxu1 }
 0x22b   :  { %v3496_v41 = vpop.eup %3495  ;;  %v2448_v21 = vmul.f32 -1.442695, %v1632_v30  ;;  %v1635_v44 = vadd.f32 %v5106_v63, %v1634_v43  ;;  %v1776_v9 = vadd.f32 %v5106_v63, %v1775_v42  ;;  %v2609_v48 = vpop.f32.mrb[75].mxu0 }
 0x22c   :  { %v2680_v28 = vpop.f32.mrb[69].mxu1  ;;  %v3498_v49 = vpop.eup %3497  ;;  %v2034_v13 = vadd.f32 1.0, %v3496_v41 }
 0x22d   :  { %v1778_v12 = vpop.f32.mrb[70].mxu1  ;;  %v3500_v17 = vpop.eup %3499  ;;  %v2251_v53 = vmul.f32 %v3498_v49, %v5217_v38  ;;  %3511 = vpow2.f32 %v2448_v21  ;;  %v2449_v19 = vmul.f32 -1.442695, %v1635_v44  ;;  %v2484_v25 = vmul.f32 -1.442695, %v1776_v9 }
 0x22e   :  { %v2681_v3 = vpop.f32.mrb[71].mxu1  ;;  %v3502_v58 = vpop.eup %3501  ;;  %3513 = vrcp.f32 %v2034_v13  ;;  %v2035_v62 = vadd.f32 1.0, %v3500_v17 }
 0x22f   :  { %v3504_v26 = vpop.eup %3503  ;;  %2324 = vst.msk [vmem:[%s5345_s3 + $0x100] sm:$0xff] %vm1043_vm1, %v2251_v53  ;;  %v2252_v63 = vmul.f32 %v3502_v58, %v5221_v40  ;;  %3515 = vpow2.f32 %v2449_v19 }
 0x230   :  { %v3506_v4 = vpop.eup %3505  ;;  %3517 = vrcp.f32 %v2035_v62  ;;  %v2070_v35 = vadd.f32 1.0, %v3504_v26 }
 0x231   :  { %v3508_v38 = vpop.eup %3507  ;;  %2325 = vst.msk [vmem:[%s5345_s3 + $0x108] sm:$0xff] %vm1043_vm1, %v2252_v63  ;;  %v2287_v18 = vmul.f32 %v3506_v4, %v5226_v11  ;;  %3519 = vpow2.f32 %v2484_v25 }
 0x232   :  { %v3510_v8 = vpop.eup %3509  ;;  %3521 = vrcp.f32 %v2070_v35  ;;  %v2071_v1 = vadd.f32 1.0, %v3508_v38 }
 0x233   :  { %2360 = vst.msk [vmem:[%s5345_s3 + $0x220] sm:$0xff] %vm1043_vm1, %v2287_v18  ;;  %v2288_v40 = vmul.f32 %v3510_v8, %v5235_v20 }
 0x234   :  { %3523 = vrcp.f32 %v2071_v1 }
 0x235   :  { %2361 = vst.msk [vmem:[%s5345_s3 + $0x228] sm:$0xff] %vm1043_vm1, %v2288_v40 }
 0x237   :  { %v3512_v32 = vpop.eup %3511 }
 0x238   :  { %v3514_v33 = vpop.eup %3513  ;;  %v2036_v11 = vadd.f32 1.0, %v3512_v32 }
 0x239   :  { %v3516_v50 = vpop.eup %3515  ;;  %v2253_v7 = vmul.f32 %v3514_v33, %v5253_v47 }
 0x23a   :  { %v3518_v34 = vpop.eup %3517  ;;  %3525 = vrcp.f32 %v2036_v11  ;;  %v2037_v15 = vadd.f32 1.0, %v3516_v50 }
 0x23b   :  { %v3520_v10 = vpop.eup %3519  ;;  %2326 = vst.msk [vmem:[%s5345_s3 + $0x110] sm:$0xff] %vm1043_vm1, %v2253_v7  ;;  %v2254_v20 = vmul.f32 %v3518_v34, %v5257_v54 }
 0x23c   :  { %v3522_v39 = vpop.eup %3521  ;;  %3527 = vrcp.f32 %v2037_v15  ;;  %v2072_v55 = vadd.f32 1.0, %v3520_v10 }
 0x23d   :  { %2327 = vst.msk [vmem:[%s5345_s3 + $0x118] sm:$0xff] %vm1043_vm1, %v2254_v20  ;;  %v2289_v47 = vmul.f32 %v3522_v39, %v5262_v45 }
 0x23e   :  { %v3524_v16 = vpop.eup %3523  ;;  %3529 = vrcp.f32 %v2072_v55 }
 0x23f   :  { %2362 = vst.msk [vmem:[%s5345_s3 + $0x230] sm:$0xff] %vm1043_vm1, %v2289_v47  ;;  %v2290_v24 = vmul.f32 %v3524_v16, %v5271_v52 }
 0x241   :  { %2363 = vst.msk [vmem:[%s5345_s3 + $0x238] sm:$0xff] %vm1043_vm1, %v2290_v24 }
 0x244   :  { %v3526_v54 = vpop.eup %3525 }
 0x245   :  { %v2255_v59 = vmul.f32 %v3526_v54, %v1632_v30 }
 0x246   :  { %v3528_v37 = vpop.eup %3527 }
 0x247   :  { %2328 = vst.msk [vmem:[%s5345_s3 + $0x120] sm:$0xff] %vm1043_vm1, %v2255_v59  ;;  %v2256_v45 = vmul.f32 %v3528_v37, %v1635_v44 }
 0x248   :  { %v3530_v46 = vpop.eup %3529 }
 0x249   :  { %2329 = vst.msk [vmem:[%s5345_s3 + $0x128] sm:$0xff] %vm1043_vm1, %v2256_v45  ;;  %v2291_v23 = vmul.f32 %v3530_v46, %v1776_v9 }
 0x24b   :  { %2365 = vst.msk [vmem:[%s5345_s3 + $0x240] sm:$0x3] %vm2364_vm5, %v2291_v23 }

// kernel: yolox_forward.6
= control target key start
LH: loop header
LB: loop body
LE: loop exit
PB: predicated region body
PF: predicated region fallthrough
CT: control target
= control target key end

     0   :  { %s1084_s28 = smov 64   ;;  %vm248_vm0 = vcmask 523264   ;;  %vm715_vm1 = vcmask 261120   ;;  %vm736_vm2 = vcmask 254976   ;;  %s1680_s0 = inlined_call_operand.vmem [shape: f32[172,64], index: 0, kind: input, shape index: {}]   ;;  %s1681_s1 = inlined_call_operand.vmem [shape: bf16[256,32], index: 1, kind: input, shape index: {}]   ;;  %s1682_s2 = inlined_call_operand.vmem [shape: f32[1,32], index: 2, kind: input, shape index: {}]   ;;  %s1683_s3 = inlined_call_operand.vmem [shape: f32[162,32], index: 3, kind: output, shape index: {}]  }
   0x1   :  { %v59_v0 = vld [vmem:[%s1680_s0 + $0xa] sm:$0xff]  ;;  %v60_v1 = vld [vmem:[%s1680_s0 + $0x12] sm:$0xff]  ;;  %v61_v2 = vld [vmem:[%s1680_s0 + $0x1a] sm:$0xff] }
   0x2   :  { %v879_v3 = vpack.i.bf16 %v60_v1, %v59_v0  ;;  %v62_v4 = vld [vmem:[%s1680_s0 + $0x22] sm:$0xff]  ;;  %v1128_v8 = vld [vmem:[%s1680_s0 + $0x11] sm:$0xff]  ;;  %v1133_v9 = vld [vmem:[%s1680_s0 + $0x19] sm:$0xff] }
   0x3   :  { %v36_v5 = vld [vmem:[%s1680_s0 + $0x1] sm:$0xff]  ;;  %v1123_v6 = vld [vmem:[%s1680_s0 + $0x9] sm:$0xff]  ;;  %v889_v7 = vpack.i.bf16 %v62_v4, %v61_v2  ;;  %v894_v11 = vpack.i.bf16 %v1133_v9, %v1128_v8  ;;  %v72_v13 = vld [vmem:[%s1680_s0 + $0x72] sm:$0xff] }
   0x4   :  { %880 = vrot.lane.b32.xlu0 %v879_v3, %s1084_s28  ;;  %v884_v10 = vpack.i.bf16 %v1123_v6, %v36_v5  ;;  %v71_v12 = vld [vmem:[%s1680_s0 + $0x6a] sm:$0xff]  ;;  %v1149_v14 = vld [vmem:[%s1680_s0 + $0x61] sm:$0xff]  ;;  %v64_v19 = vld [vmem:[%s1680_s0 + $0x32] sm:$0xff] }
   0x5   :  { %890 = vrot.lane.b32.xlu1 %v889_v7, %s1084_s28  ;;  %v1154_v15 = vld [vmem:[%s1680_s0 + $0x69] sm:$0xff]  ;;  %v899_v16 = vpack.i.bf16 %v72_v13, %v71_v12  ;;  %v1169_v20 = vld [vmem:[%s1680_s0 + $0x21] sm:$0xff]  ;;  %v1189_v26 = vld [vmem:[%s1680_s0 + $0x71] sm:$0xff] }
   0x6   :  { %v904_v17 = vpack.i.bf16 %v1154_v15, %v1149_v14  ;;  %v63_v18 = vld [vmem:[%s1680_s0 + $0x2a] sm:$0xff]  ;;  %v73_v24 = vld [vmem:[%s1680_s0 + $0x7a] sm:$0xff]  ;;  %v74_v25 = vld [vmem:[%s1680_s0 + $0x82] sm:$0xff] }
   0x7   :  { %v1174_v21 = vld [vmem:[%s1680_s0 + $0x29] sm:$0xff]  ;;  %v909_v22 = vpack.i.bf16 %v64_v19, %v63_v18  ;;  %v1194_v27 = vld [vmem:[%s1680_s0 + $0x79] sm:$0xff]  ;;  %v919_v31 = vpack.i.bf16 %v74_v25, %v73_v24  ;;  %v1209_v32 = vld [vmem:[%s1680_s0 + $0x31] sm:$0xff] }
   0x8   :  { %885 = vrot.lane.b32.xlu0 %v884_v10, %s1084_s28  ;;  %v914_v23 = vpack.i.bf16 %v1174_v21, %v1169_v20  ;;  %v65_v28 = vld [vmem:[%s1680_s0 + $0x3a] sm:$0xff]  ;;  %v66_v29 = vld [vmem:[%s1680_s0 + $0x42] sm:$0xff]  ;;  %v924_v35 = vpack.i.bf16 %v1194_v27, %v1189_v26  ;;  %v75_v38 = vld [vmem:[%s1680_s0 + $0x8a] sm:$0xff] }
   0x9   :  { %895 = vrot.lane.b32.xlu1 %v894_v11, %s1084_s28  ;;  %v984_v30 = vld [vmem:[%s1681_s1 + $0x40] sm:$0xff]   ;;  %v986_v36 = vld [vmem:[%s1681_s1 + $0x48] sm:$0xff]   ;;  %v76_v39 = vld [vmem:[%s1680_s0 + $0x92] sm:$0xff]  ;;  %v929_v41 = vpack.i.bf16 %v66_v29, %v65_v28 }
   0xa   :  { %v1214_v33 = vld [vmem:[%s1680_s0 + $0x39] sm:$0xff]  ;;  %780 = vmatprep.subr.bf16.mxu0 %v984_v30  ;;  %862 = vmatprep.subr.bf16.mxu1 %v984_v30  ;;  %v987_v37 = vld [vmem:[%s1681_s1 + $0x8] sm:$0xff]   ;;  %v988_v40 = vld [vmem:[%s1681_s1 + $0x50] sm:$0xff]   ;;  %v939_v49 = vpack.i.bf16 %v76_v39, %v75_v38 }
   0xb   :  { %v985_v34 = vld [vmem:[%s1681_s1] sm:$0xff]   ;;  %v934_v43 = vpack.i.bf16 %v1214_v33, %v1209_v32  ;;  %v1249_v44 = vld [vmem:[%s1680_s0 + $0x89] sm:$0xff]  ;;  %v68_v47 = vld [vmem:[%s1680_s0 + $0x52] sm:$0xff] }
   0xc   :  { %900 = vrot.lane.b32.xlu0 %v899_v16, %s1084_s28  ;;  %781 = vmatpush3.bf16.msra.mxu0 %v985_v34  ;;  %v1241_v42 = vld [vmem:[%s1680_s0 + $0x81] sm:$0xff]  ;;  %v989_v45 = vld [vmem:[%s1681_s1 + $0x10] sm:$0xff]   ;;  %v990_v48 = vld [vmem:[%s1681_s1 + $0x58] sm:$0xff]  }
   0xd   :  { %905 = vrot.lane.b32.xlu1 %v904_v17, %s1084_s28  ;;  %782 = vmatprep.subr.bf16.mxu0 %v986_v36  ;;  %v67_v46 = vld [vmem:[%s1680_s0 + $0x4a] sm:$0xff]  ;;  %v1267_v50 = vld [vmem:[%s1680_s0 + $0x41] sm:$0xff]  ;;  %v944_v51 = vpack.i.bf16 %v1249_v44, %v1241_v42  ;;  %v991_v53 = vld [vmem:[%s1681_s1 + $0x18] sm:$0xff]  }
   0xe   :  { %870 = vmatpush3.bf16.msra.mxu1 %v985_v34  ;;  %v1275_v52 = vld [vmem:[%s1680_s0 + $0x49] sm:$0xff]  ;;  %v77_v54 = vld [vmem:[%s1680_s0 + $0x9a] sm:$0xff]  ;;  %v949_v57 = vpack.i.bf16 %v68_v47, %v67_v46  ;;  %v1293_v58 = vld [vmem:[%s1680_s0 + $0x91] sm:$0xff] }
   0xf   :  { %863 = vmatprep.subr.bf16.mxu1 %v986_v36  ;;  %v78_v55 = vld [vmem:[%s1680_s0 + $0xa2] sm:$0xff]  ;;  %v954_v59 = vpack.i.bf16 %v1275_v52, %v1267_v50  ;;  %v1301_v60 = vld [vmem:[%s1680_s0 + $0x99] sm:$0xff]  ;;  %v1322_v3 = vld [vmem:[%s1680_s0 + $0x51] sm:$0xff] }
  0x10   :  { %910 = vrot.lane.b32.xlu0 %v909_v22, %s1084_s28  ;;  %783 = vmatpush3.bf16.msra.mxu0 %v987_v37  ;;  %v992_v56 = vld [vmem:[%s1681_s1 + $0x60] sm:$0xff]   ;;  %v994_v62 = vld [vmem:[%s1681_s1 + $0x68] sm:$0xff]   ;;  %v959_v63 = vpack.i.bf16 %v78_v55, %v77_v54  ;;  %v964_v0 = vpack.i.bf16 %v1301_v60, %v1293_v58  ;;  %v996_v7 = vld [vmem:[%s1681_s1 + $0x70] sm:$0xff]  }
  0x11   :  { %915 = vrot.lane.b32.xlu1 %v914_v23, %s1084_s28  ;;  %784 = vmatprep.subr.bf16.mxu0 %v988_v40  ;;  %v993_v61 = vld [vmem:[%s1681_s1 + $0x20] sm:$0xff]   ;;  %v995_v5 = vld [vmem:[%s1681_s1 + $0x28] sm:$0xff]   ;;  %v997_v16 = vld [vmem:[%s1681_s1 + $0x30] sm:$0xff]  }
  0x12   :  { %871 = vmatpush3.bf16.msra.mxu1 %v987_v37  ;;  %v69_v1 = vld [vmem:[%s1680_s0 + $0x5a] sm:$0xff]  ;;  %v70_v2 = vld [vmem:[%s1680_s0 + $0x62] sm:$0xff]  ;;  %v79_v12 = vld [vmem:[%s1680_s0 + $0xaa] sm:$0x3] }
  0x13   :  { %864 = vmatprep.subr.bf16.mxu1 %v988_v40  ;;  %v1327_v4 = vld [vmem:[%s1680_s0 + $0x59] sm:$0xff]  ;;  %v969_v10 = vpack.i.bf16 %v70_v2, %v69_v1  ;;  %v56_v11 = vld [vmem:[%s1680_s0 + $0xa1] sm:$0x3]  ;;  %v16_v37 = vld [vmem:[%s1680_s0 + $0x8] sm:$0xff] }
  0x14   :  { %920 = vrot.lane.b32.xlu0 %v919_v31, %s1084_s28  ;;  %785 = vmatpush3.bf16.msra.mxu0 %v989_v45  ;;  %v974_v13 = vpack.i.bf16 %v1327_v4, %v1322_v3  ;;  %v998_v17 = vld [vmem:[%s1681_s1 + $0x78] sm:$0xff]   ;;  %v979_v18 = vpack.i.bf16 %v56_v11, %v79_v12  ;;  %v15_v36 = vld [vmem:[%s1680_s0] sm:$0xff]  ;;  %v17_v55 = vld [vmem:[%s1680_s0 + $0x10] sm:$0xff] }
  0x15   :  { %925 = vrot.lane.b32.xlu1 %v924_v35, %s1084_s28  ;;  %786 = vmatprep.subr.bf16.mxu0 %v990_v48  ;;  %v999_v19 = vld [vmem:[%s1681_s1 + $0x38] sm:$0xff]  }
  0x16   :  { %872 = vmatpush3.bf16.msra.mxu1 %v989_v45 }
  0x17   :  { %865 = vmatprep.subr.bf16.mxu1 %v990_v48 }
  0x18   :  { %930 = vrot.lane.b32.xlu0 %v929_v41, %s1084_s28  ;;  %787 = vmatpush3.bf16.msra.mxu0 %v991_v53 }
  0x19   :  { %935 = vrot.lane.b32.xlu1 %v934_v43, %s1084_s28  ;;  %788 = vmatprep.subr.bf16.mxu0 %v992_v56 }
  0x1a   :  { %873 = vmatpush3.bf16.msra.mxu1 %v991_v53 }
  0x1b   :  { %866 = vmatprep.subr.bf16.mxu1 %v992_v56 }
  0x1c   :  { %940 = vrot.lane.b32.xlu0 %v939_v49, %s1084_s28  ;;  %789 = vmatpush3.bf16.msra.mxu0 %v993_v61 }
  0x1d   :  { %945 = vrot.lane.b32.xlu1 %v944_v51, %s1084_s28  ;;  %790 = vmatprep.subr.bf16.mxu0 %v994_v62 }
  0x1e   :  { %874 = vmatpush3.bf16.msra.mxu1 %v993_v61 }
  0x1f   :  { %867 = vmatprep.subr.bf16.mxu1 %v994_v62 }
  0x20   :  { %950 = vrot.lane.b32.xlu0 %v949_v57, %s1084_s28  ;;  %791 = vmatpush3.bf16.msra.mxu0 %v995_v5 }
  0x21   :  { %955 = vrot.lane.b32.xlu1 %v954_v59, %s1084_s28  ;;  %792 = vmatprep.subr.bf16.mxu0 %v996_v7  ;;  %v18_v59 = vld [vmem:[%s1680_s0 + $0x18] sm:$0xff] }
  0x22   :  { %875 = vmatpush3.bf16.msra.mxu1 %v995_v5 }
  0x23   :  { %868 = vmatprep.subr.bf16.mxu1 %v996_v7 }
  0x24   :  { %960 = vrot.lane.b32.xlu0 %v959_v63, %s1084_s28  ;;  %793 = vmatpush3.bf16.msra.mxu0 %v997_v16 }
  0x25   :  { %965 = vrot.lane.b32.xlu1 %v964_v0, %s1084_s28  ;;  %794 = vmatprep.subr.bf16.mxu0 %v998_v17 }
  0x26   :  { %876 = vmatpush3.bf16.msra.mxu1 %v997_v16 }
  0x27   :  { %869 = vmatprep.subr.bf16.mxu1 %v998_v17 }
  0x28   :  { %970 = vrot.lane.b32.xlu0 %v969_v10, %s1084_s28  ;;  %795 = vmatpush3.bf16.msra.mxu0 %v999_v19 }
  0x29   :  { %975 = vrot.lane.b32.xlu1 %v974_v13, %s1084_s28 }
  0x2a   :  { %877 = vmatpush3.bf16.msra.mxu1 %v999_v19 }
  0x2c   :  { %980 = vrot.lane.b32.xlu0 %v979_v18, %s1084_s28 }
  0x76   :  { %v881_v22 = vpop.permute.xlu0 %880 }
  0x77   :  { %v883_v23 = vunpack.i.h.bf16 %v881_v22  ;;  %v882_v24 = vunpack.i.l.bf16 %v881_v22  ;;  %v891_v25 = vpop.permute.xlu1 %890 }
  0x78   :  { %v893_v28 = vunpack.i.h.bf16 %v891_v25  ;;  %v892_v29 = vunpack.i.l.bf16 %v891_v25 }
  0x79   :  { %v270_v30 = vsel %vm248_vm0, %v1123_v6, %v882_v24  ;;  %v271_v31 = vsel %vm248_vm0, %v1128_v8, %v883_v23 }
  0x7a   :  { %v886_v34 = vpop.permute.xlu0 %885  ;;  %v292_v35 = vpack.c.bf16 %v271_v31, %v270_v30  ;;  %v272_v38 = vsel %vm248_vm0, %v1133_v9, %v892_v29  ;;  %v273_v39 = vsel %vm248_vm0, %v1169_v20, %v893_v28  ;;  %v27_v9 = vld [vmem:[%s1680_s0 + $0x60] sm:$0xff]  ;;  %v28_v20 = vld [vmem:[%s1680_s0 + $0x68] sm:$0xff]  ;;  %v29_v28 = vld [vmem:[%s1680_s0 + $0x70] sm:$0xff] }
  0x7b   :  { %v888_v6 = vunpack.i.h.bf16 %v886_v34  ;;  %v887_v40 = vunpack.i.l.bf16 %v886_v34  ;;  %v896_v41 = vpop.permute.xlu1 %895  ;;  %v294_v45 = vpack.c.bf16 %v273_v39, %v272_v38  ;;  %v30_v29 = vld [vmem:[%s1680_s0 + $0x78] sm:$0xff]  ;;  %v20_v31 = vld [vmem:[%s1680_s0 + $0x28] sm:$0xff] }
  0x7c   :  { %480 = vmatprep.mubr.bf16.mxu0 %v292_v35  ;;  %v897_v46 = vunpack.i.l.bf16 %v896_v41  ;;  %v898_v49 = vunpack.i.h.bf16 %v896_v41 }
  0x7d   :  { %v249_v8 = vsel %vm248_vm0, %v15_v36, %v887_v40  ;;  %v250_v43 = vsel %vm248_vm0, %v16_v37, %v888_v6 }
  0x7e   :  { %v901_v47 = vpop.permute.xlu0 %900  ;;  %v291_v48 = vpack.c.bf16 %v250_v43, %v249_v8  ;;  %v251_v5 = vsel %vm248_vm0, %v17_v55, %v897_v46  ;;  %v252_v13 = vsel %vm248_vm0, %v18_v59, %v898_v49  ;;  %v32_v55 = vld [vmem:[%s1680_s0 + $0x88] sm:$0xff] }
  0x7f   :  { %v903_v51 = vunpack.i.h.bf16 %v901_v47  ;;  %v902_v53 = vunpack.i.l.bf16 %v901_v47  ;;  %v906_v54 = vpop.permute.xlu1 %905  ;;  %v293_v18 = vpack.c.bf16 %v252_v13, %v251_v5 }
  0x80   :  { %v908_v56 = vunpack.i.h.bf16 %v906_v54  ;;  %v907_v57 = vunpack.i.l.bf16 %v906_v54  ;;  %481 = vmatmul.mubr.bf16.vlgmr.msra.gmra.mrb[0].mxu0 %v291_v48 }
  0x81   :  { %488 = vmatprep.mubr.bf16.mxu0 %v294_v45  ;;  %v282_v61 = vsel %vm248_vm0, %v1154_v15, %v902_v53  ;;  %v283_v62 = vsel %vm248_vm0, %v1189_v26, %v903_v51 }
  0x82   :  { %v911_v63 = vpop.permute.xlu0 %910  ;;  %v304_v0 = vpack.c.bf16 %v283_v62, %v282_v61  ;;  %v261_v1 = vsel %vm248_vm0, %v27_v9, %v907_v57  ;;  %v262_v2 = vsel %vm248_vm0, %v28_v20, %v908_v56  ;;  %v31_v20 = vld [vmem:[%s1680_s0 + $0x80] sm:$0xff]  ;;  %v22_v57 = vld [vmem:[%s1680_s0 + $0x38] sm:$0xff] }
  0x83   :  { %v913_v7 = vunpack.i.h.bf16 %v911_v63  ;;  %v912_v10 = vunpack.i.l.bf16 %v911_v63  ;;  %v916_v11 = vpop.permute.xlu1 %915  ;;  %v303_v12 = vpack.c.bf16 %v262_v2, %v261_v1 }
  0x84   :  { %528 = vmatprep.mubr.bf16.mxu1 %v304_v0  ;;  %v917_v16 = vunpack.i.l.bf16 %v916_v11  ;;  %v918_v22 = vunpack.i.h.bf16 %v916_v11 }
  0x85   :  { %529 = vmatmul.mubr.bf16.vlgmr.msra.gmra.mrb[0].mxu1 %v303_v12  ;;  %v274_v15 = vsel %vm248_vm0, %v1174_v21, %v912_v10  ;;  %v275_v26 = vsel %vm248_vm0, %v1209_v32, %v913_v7  ;;  %v19_v21 = vld [vmem:[%s1680_s0 + $0x20] sm:$0xff] }
  0x86   :  { %v921_v17 = vpop.permute.xlu0 %920  ;;  %v296_v19 = vpack.c.bf16 %v275_v26, %v274_v15  ;;  %v253_v6 = vsel %vm248_vm0, %v19_v21, %v917_v16  ;;  %v254_v45 = vsel %vm248_vm0, %v20_v31, %v918_v22  ;;  %v57_v16 = vld [vmem:[%s1680_s0 + $0xa1] sm:$0xff] }
  0x87   :  { %v923_v23 = vunpack.i.h.bf16 %v921_v17  ;;  %v922_v24 = vunpack.i.l.bf16 %v921_v17  ;;  %v926_v25 = vpop.permute.xlu1 %925  ;;  %v295_v48 = vpack.c.bf16 %v254_v45, %v253_v6 }
  0x88   :  { %v928_v32 = vunpack.i.h.bf16 %v926_v25  ;;  %v927_v30 = vunpack.i.l.bf16 %v926_v25  ;;  %489 = vmatmul.mubr.bf16.gmra.mrb[4].mxu0 %v293_v18 }
  0x89   :  { %v284_v34 = vsel %vm248_vm0, %v1194_v27, %v922_v24  ;;  %v285_v35 = vsel %vm248_vm0, %v1241_v42, %v923_v23  ;;  %496 = vmatprep.mubr.bf16.mxu0 %v296_v19  ;;  %v33_v24 = vld [vmem:[%s1680_s0 + $0x90] sm:$0xff] }
  0x8a   :  { %v931_v36 = vpop.permute.xlu0 %930  ;;  %v306_v37 = vpack.c.bf16 %v285_v35, %v284_v34  ;;  %v263_v38 = vsel %vm248_vm0, %v29_v28, %v927_v30  ;;  %v264_v39 = vsel %vm248_vm0, %v30_v29, %v928_v32  ;;  %v24_v29 = vld [vmem:[%s1680_s0 + $0x48] sm:$0xff] }
  0x8b   :  { %v933_v40 = vunpack.i.h.bf16 %v931_v36  ;;  %v932_v41 = vunpack.i.l.bf16 %v931_v36  ;;  %v936_v8 = vpop.permute.xlu1 %935  ;;  %v305_v43 = vpack.c.bf16 %v264_v39, %v263_v38 }
  0x8c   :  { %536 = vmatprep.mubr.bf16.mxu1 %v306_v37  ;;  %v937_v46 = vunpack.i.l.bf16 %v936_v8  ;;  %v938_v51 = vunpack.i.h.bf16 %v936_v8  ;;  %v58_v8 = vld [vmem:[%s1680_s0 + $0xa9] sm:$0x3] }
  0x8d   :  { %537 = vmatmul.mubr.bf16.gmra.mrb[4].mxu1 %v305_v43  ;;  %v276_v27 = vsel %vm248_vm0, %v1214_v33, %v932_v41  ;;  %v277_v42 = vsel %vm248_vm0, %v1267_v50, %v933_v40  ;;  %v21_v33 = vld [vmem:[%s1680_s0 + $0x30] sm:$0xff] }
  0x8e   :  { %v941_v47 = vpop.permute.xlu0 %940  ;;  %v298_v49 = vpack.c.bf16 %v277_v42, %v276_v27  ;;  %v255_v2 = vsel %vm248_vm0, %v21_v33, %v937_v46  ;;  %v256_v12 = vsel %vm248_vm0, %v22_v57, %v938_v51 }
  0x8f   :  { %v943_v53 = vunpack.i.h.bf16 %v941_v47  ;;  %v942_v54 = vunpack.i.l.bf16 %v941_v47  ;;  %v946_v9 = vpop.permute.xlu1 %945  ;;  %v297_v26 = vpack.c.bf16 %v256_v12, %v255_v2  ;;  %v35_v47 = vld [vmem:[%s1680_s0 + $0xa0] sm:$0x3] }
  0x90   :  { %v948_v50 = vunpack.i.h.bf16 %v946_v9  ;;  %v947_v56 = vunpack.i.l.bf16 %v946_v9  ;;  %497 = vmatmul.mubr.bf16.gmra.mrb[8].mxu0 %v295_v48  ;;  %v25_v48 = vld [vmem:[%s1680_s0 + $0x50] sm:$0xff] }
  0x91   :  { %v286_v59 = vsel %vm248_vm0, %v1249_v44, %v942_v54  ;;  %v287_v61 = vsel %vm248_vm0, %v1293_v58, %v943_v53  ;;  %504 = vmatprep.mubr.bf16.mxu0 %v298_v49  ;;  %v26_v49 = vld [vmem:[%s1680_s0 + $0x58] sm:$0xff] }
  0x92   :  { %v951_v62 = vpop.permute.xlu0 %950  ;;  %v308_v63 = vpack.c.bf16 %v287_v61, %v286_v59  ;;  %v265_v0 = vsel %vm248_vm0, %v31_v20, %v947_v56  ;;  %v266_v1 = vsel %vm248_vm0, %v32_v55, %v948_v50  ;;  %v1490_v56 = vld [vmem:[%s1682_s2] ss:$0 sm:$0xff] }
  0x93   :  { %v953_v5 = vunpack.i.h.bf16 %v951_v62  ;;  %v952_v7 = vunpack.i.l.bf16 %v951_v62  ;;  %v956_v10 = vpop.permute.xlu1 %955  ;;  %v307_v11 = vpack.c.bf16 %v266_v1, %v265_v0 }
  0x94   :  { %544 = vmatprep.mubr.bf16.mxu1 %v308_v63  ;;  %v957_v13 = vunpack.i.l.bf16 %v956_v10  ;;  %v958_v18 = vunpack.i.h.bf16 %v956_v10 }
  0x95   :  { %545 = vmatmul.mubr.bf16.gmra.mrb[8].mxu1 %v307_v11  ;;  %v278_v44 = vsel %vm248_vm0, %v1275_v52, %v952_v7  ;;  %v279_v58 = vsel %vm248_vm0, %v1322_v3, %v953_v5  ;;  %v34_v52 = vld [vmem:[%s1680_s0 + $0x98] sm:$0xff]  ;;  %v23_v3 = vld [vmem:[%s1680_s0 + $0x40] sm:$0xff] }
  0x96   :  { %v961_v15 = vpop.permute.xlu0 %960  ;;  %v300_v17 = vpack.c.bf16 %v279_v58, %v278_v44  ;;  %v257_v36 = vsel %vm248_vm0, %v23_v3, %v957_v13  ;;  %v258_v6 = vsel %vm248_vm0, %v24_v29, %v958_v18 }
  0x97   :  { %v963_v19 = vunpack.i.h.bf16 %v961_v15  ;;  %v962_v22 = vunpack.i.l.bf16 %v961_v15  ;;  %v966_v23 = vpop.permute.xlu1 %965  ;;  %v299_v42 = vpack.c.bf16 %v258_v6, %v257_v36 }
  0x98   :  { %v968_v25 = vunpack.i.h.bf16 %v966_v23  ;;  %v967_v28 = vunpack.i.l.bf16 %v966_v23  ;;  %505 = vmatmul.mubr.bf16.gmra.mrb[12].mxu0 %v297_v26 }
  0x99   :  { %v288_v21 = vsel %vm248_vm0, %v1301_v60, %v962_v22  ;;  %v289_v32 = vsel %vm248_vm0, %v57_v16, %v963_v19  ;;  %512 = vmatprep.mubr.bf16.mxu0 %v300_v17 }
  0x9a   :  { %v971_v30 = vpop.permute.xlu0 %970  ;;  %v310_v31 = vpack.c.bf16 %v289_v32, %v288_v21  ;;  %v267_v34 = vsel %vm248_vm0, %v33_v24, %v967_v28  ;;  %v268_v35 = vsel %vm248_vm0, %v34_v52, %v968_v25 }
  0x9b   :  { %v973_v37 = vunpack.i.h.bf16 %v971_v30  ;;  %v972_v38 = vunpack.i.l.bf16 %v971_v30  ;;  %v309_v39 = vpack.c.bf16 %v268_v35, %v267_v34  ;;  %v976_v40 = vpop.permute.xlu1 %975 }
  0x9c   :  { %552 = vmatprep.mubr.bf16.mxu1 %v310_v31  ;;  %v978_v60 = vunpack.i.h.bf16 %v976_v40  ;;  %v977_v41 = vunpack.i.l.bf16 %v976_v40 }
  0x9d   :  { %553 = vmatmul.mubr.bf16.gmra.mrb[12].mxu1 %v309_v39  ;;  %v280_v43 = vsel %vm248_vm0, %v1327_v4, %v972_v38  ;;  %v281_v45 = vsel %vm248_vm0, %v1149_v14, %v973_v37 }
  0x9e   :  { %v981_v27 = vpop.permute.xlu0 %980  ;;  %v302_v46 = vpack.c.bf16 %v281_v45, %v280_v43  ;;  %v259_v54 = vsel %vm248_vm0, %v25_v48, %v977_v41  ;;  %v260_v9 = vsel %vm248_vm0, %v26_v49, %v978_v60 }
  0x9f   :  { %v983_v51 = vunpack.i.h.bf16 %v981_v27  ;;  %v982_v4 = vunpack.i.l.bf16 %v981_v27  ;;  %v301_v33 = vpack.c.bf16 %v260_v9, %v259_v54 }
  0xa0   :  { %513 = vmatmul.mubr.bf16.gmra.mrb[16].mxu0 %v299_v42 }
  0xa1   :  { %v290_v14 = vsel %vm248_vm0, %v58_v8, %v982_v4  ;;  %520 = vmatprep.mubr.bf16.mxu0 %v302_v46  ;;  %v269_v53 = vsel %vm248_vm0, %v35_v47, %v983_v51 }
  0xa2   :  { %v312_v20 = vpack.c.bf16 %v290_v14, %v290_v14  ;;  %v311_v55 = vpack.c.bf16 %v269_v53, %v269_v53 }
  0xa4   :  { %560 = vmatprep.mubr.bf16.mxu1 %v312_v20 }
  0xa5   :  { %561 = vmatmul.mubr.bf16.gmra.mrb[16].mxu1 %v311_v55 }
  0xa8   :  { %521 = vmatmul.mubr.bf16.gmra.mrb[20].mxu0 %v301_v33 }
 0x153   :  { %v796_v50 = vpop.f32.mrb[0].mxu0 }
 0x154   :  { %v797_v57 = vpop.f32.mrb[1].mxu0 }
 0x155   :  { %v798_v59 = vadd.f32 %v797_v57, %v796_v50  ;;  %v799_v61 = vpop.f32.mrb[2].mxu0 }
 0x156   :  { %v800_v62 = vpop.f32.mrb[3].mxu0 }
 0x157   :  { %v1493_v63 = vadd.f32 %v798_v59, %v1490_v56  ;;  %v801_v0 = vadd.f32 %v800_v62, %v799_v61 }
 0x158   :  { %v832_v1 = vpop.f32.mrb[0].mxu1 }
 0x159   :  { %v759_v2 = vmul.f32 -1.442695, %v1493_v63  ;;  %v1497_v5 = vadd.f32 %v801_v0, %v1490_v56  ;;  %v833_v7 = vpop.f32.mrb[1].mxu1 }
 0x15a   :  { %v834_v10 = vadd.f32 %v833_v7, %v832_v1  ;;  %v835_v11 = vpop.f32.mrb[2].mxu1 }
 0x15b   :  { %1000 = vpow2.f32 %v759_v2  ;;  %v760_v12 = vmul.f32 -1.442695, %v1497_v5  ;;  %v802_v44 = vpop.f32.mrb[4].mxu0  ;;  %v836_v58 = vpop.f32.mrb[3].mxu1 }
 0x15c   :  { %v1501_v13 = vadd.f32 %v834_v10, %v1490_v56  ;;  %v837_v15 = vadd.f32 %v836_v58, %v835_v11  ;;  %v803_v26 = vpop.f32.mrb[5].mxu0 }
 0x15d   :  { %1002 = vpow2.f32 %v760_v12  ;;  %v804_v16 = vadd.f32 %v803_v26, %v802_v44  ;;  %v805_v17 = vpop.f32.mrb[6].mxu0 }
 0x15e   :  { %v771_v18 = vmul.f32 -1.442695, %v1501_v13  ;;  %v1505_v19 = vadd.f32 %v837_v15, %v1490_v56  ;;  %v806_v22 = vpop.f32.mrb[7].mxu0 }
 0x15f   :  { %v1508_v23 = vadd.f32 %v804_v16, %v1490_v56  ;;  %v807_v24 = vadd.f32 %v806_v22, %v805_v17 }
 0x160   :  { %1004 = vpow2.f32 %v771_v18  ;;  %v772_v52 = vmul.f32 -1.442695, %v1505_v19  ;;  %v838_v3 = vpop.f32.mrb[4].mxu1 }
 0x161   :  { %v761_v25 = vmul.f32 -1.442695, %v1508_v23  ;;  %v1513_v28 = vadd.f32 %v807_v24, %v1490_v56  ;;  %v839_v29 = vpop.f32.mrb[5].mxu1 }
 0x162   :  { %1006 = vpow2.f32 %v772_v52  ;;  %v840_v21 = vadd.f32 %v839_v29, %v838_v3  ;;  %v841_v32 = vpop.f32.mrb[6].mxu1 }
 0x163   :  { %1008 = vpow2.f32 %v761_v25  ;;  %v762_v30 = vmul.f32 -1.442695, %v1513_v28  ;;  %v808_v31 = vpop.f32.mrb[8].mxu0  ;;  %v842_v34 = vpop.f32.mrb[7].mxu1 }
 0x164   :  { %v1517_v35 = vadd.f32 %v840_v21, %v1490_v56  ;;  %v843_v36 = vadd.f32 %v842_v34, %v841_v32  ;;  %v809_v37 = vpop.f32.mrb[9].mxu0 }
 0x165   :  { %v1001_v38 = vpop.eup %1000  ;;  %1010 = vpow2.f32 %v762_v30  ;;  %v810_v39 = vadd.f32 %v809_v37, %v808_v31  ;;  %v811_v6 = vpop.f32.mrb[10].mxu0 }
 0x166   :  { %v631_v40 = vadd.f32 1.0, %v1001_v38  ;;  %v773_v60 = vmul.f32 -1.442695, %v1517_v35  ;;  %v1521_v41 = vadd.f32 %v843_v36, %v1490_v56  ;;  %v812_v8 = vpop.f32.mrb[11].mxu0 }
 0x167   :  { %v1003_v43 = vpop.eup %1002  ;;  %v1524_v45 = vadd.f32 %v810_v39, %v1490_v56  ;;  %v813_v27 = vadd.f32 %v812_v8, %v811_v6 }
 0x168   :  { %1012 = vrcp.f32 %v631_v40  ;;  %v632_v42 = vadd.f32 1.0, %v1003_v43  ;;  %v774_v46 = vmul.f32 -1.442695, %v1521_v41  ;;  %v844_v47 = vpop.f32.mrb[8].mxu1 }
 0x169   :  { %1014 = vpow2.f32 %v773_v60  ;;  %v763_v48 = vmul.f32 -1.442695, %v1524_v45  ;;  %v1529_v49 = vadd.f32 %v813_v27, %v1490_v56  ;;  %v845_v51 = vpop.f32.mrb[9].mxu1 }
 0x16a   :  { %v1005_v4 = vpop.eup %1004  ;;  %1016 = vrcp.f32 %v632_v42  ;;  %v846_v14 = vadd.f32 %v845_v51, %v844_v47  ;;  %v847_v53 = vpop.f32.mrb[10].mxu1 }
 0x16b   :  { %v643_v54 = vadd.f32 1.0, %v1005_v4  ;;  %1018 = vpow2.f32 %v774_v46  ;;  %v764_v9 = vmul.f32 -1.442695, %v1529_v49  ;;  %v814_v20 = vpop.f32.mrb[12].mxu0  ;;  %v848_v55 = vpop.f32.mrb[11].mxu1 }
 0x16c   :  { %v1007_v33 = vpop.eup %1006  ;;  %1020 = vpow2.f32 %v763_v48  ;;  %v1533_v50 = vadd.f32 %v846_v14, %v1490_v56  ;;  %v849_v57 = vadd.f32 %v848_v55, %v847_v53  ;;  %v815_v59 = vpop.f32.mrb[13].mxu0 }
 0x16d   :  { %v1009_v61 = vpop.eup %1008  ;;  %1022 = vrcp.f32 %v643_v54  ;;  %v644_v62 = vadd.f32 1.0, %v1007_v33  ;;  %v816_v0 = vadd.f32 %v815_v59, %v814_v20  ;;  %v817_v1 = vpop.f32.mrb[14].mxu0 }
 0x16e   :  { %v633_v2 = vadd.f32 1.0, %v1009_v61  ;;  %1024 = vpow2.f32 %v764_v9  ;;  %v775_v7 = vmul.f32 -1.442695, %v1533_v50  ;;  %v1537_v10 = vadd.f32 %v849_v57, %v1490_v56  ;;  %v818_v11 = vpop.f32.mrb[15].mxu0 }
 0x16f   :  { %v1011_v12 = vpop.eup %1010  ;;  %1026 = vrcp.f32 %v644_v62  ;;  %v1540_v44 = vadd.f32 %v816_v0, %v1490_v56  ;;  %v819_v58 = vadd.f32 %v818_v11, %v817_v1 }
 0x170   :  { %1028 = vrcp.f32 %v633_v2  ;;  %v634_v15 = vadd.f32 1.0, %v1011_v12  ;;  %v776_v26 = vmul.f32 -1.442695, %v1537_v10  ;;  %v850_v16 = vpop.f32.mrb[12].mxu1 }
 0x171   :  { %1030 = vpow2.f32 %v775_v7  ;;  %v765_v17 = vmul.f32 -1.442695, %v1540_v44  ;;  %v1545_v18 = vadd.f32 %v819_v58, %v1490_v56  ;;  %v851_v22 = vpop.f32.mrb[13].mxu1 }
 0x172   :  { %v1013_v24 = vpop.eup %1012  ;;  %1032 = vrcp.f32 %v634_v15  ;;  %v852_v52 = vadd.f32 %v851_v22, %v850_v16  ;;  %v853_v3 = vpop.f32.mrb[14].mxu1 }
 0x173   :  { %v1015_v25 = vpop.eup %1014  ;;  %v694_v29 = vmul.f32 %v1013_v24, %v1493_v63  ;;  %1034 = vpow2.f32 %v776_v26  ;;  %v766_v21 = vmul.f32 -1.442695, %v1545_v18  ;;  %v820_v32 = vpop.f32.mrb[16].mxu0 }
 0x174   :  { %v854_v30 = vpop.f32.mrb[15].mxu1  ;;  %v1017_v31 = vpop.eup %1016  ;;  %v645_v34 = vadd.f32 1.0, %v1015_v25  ;;  %1036 = vpow2.f32 %v765_v17  ;;  %v1550_v36 = vadd.f32 %v852_v52, %v1490_v56 }
 0x175   :  { %v855_v37 = vadd.f32 %v854_v30, %v853_v3  ;;  %v821_v38 = vpop.f32.mrb[17].mxu0  ;;  %v1019_v39 = vpop.eup %1018  ;;  %716 = vst.msk [vmem:[%s1683_s3] sm:$0xff] %vm715_vm1, %v694_v29  ;;  %v695_v63 = vmul.f32 %v1017_v31, %v1497_v5  ;;  %1038 = vpow2.f32 %v766_v21 }
 0x176   :  { %v822_v6 = vadd.f32 %v821_v38, %v820_v32  ;;  %v823_v40 = vpop.f32.mrb[18].mxu0  ;;  %v1021_v60 = vpop.eup %1020  ;;  %1040 = vrcp.f32 %v645_v34  ;;  %v646_v8 = vadd.f32 1.0, %v1019_v39  ;;  %v777_v43 = vmul.f32 -1.442695, %v1550_v36 }
 0x177   :  { %v1559_v27 = vadd.f32 %v855_v37, %v1490_v56  ;;  %v824_v42 = vpop.f32.mrb[19].mxu0  ;;  %v1023_v46 = vpop.eup %1022  ;;  %717 = vst.msk [vmem:[%s1683_s3 + $0x8] sm:$0xff] %vm715_vm1, %v695_v63  ;;  %v635_v47 = vadd.f32 1.0, %v1021_v60 }
 0x178   :  { %v1566_v5 = vadd.f32 %v822_v6, %v1490_v56  ;;  %v825_v48 = vadd.f32 %v824_v42, %v823_v40  ;;  %v1025_v51 = vpop.eup %1024  ;;  %v706_v4 = vmul.f32 %v1023_v46, %v1501_v13  ;;  %1042 = vrcp.f32 %v646_v8  ;;  %v856_v53 = vpop.f32.mrb[16].mxu1 }
 0x179   :  { %v778_v14 = vmul.f32 -1.442695, %v1559_v27  ;;  %v1027_v54 = vpop.eup %1026  ;;  %1044 = vrcp.f32 %v635_v47  ;;  %v636_v9 = vadd.f32 1.0, %v1025_v51  ;;  %v857_v33 = vpop.f32.mrb[17].mxu1 }
 0x17a   :  { %v767_v20 = vmul.f32 -1.442695, %v1566_v5  ;;  %v1572_v55 = vadd.f32 %v825_v48, %v1490_v56  ;;  %v1029_v57 = vpop.eup %1028  ;;  %728 = vst.msk [vmem:[%s1683_s3 + $0x60] sm:$0xff] %vm715_vm1, %v706_v4  ;;  %v707_v13 = vmul.f32 %v1027_v54, %v1505_v19  ;;  %1046 = vpow2.f32 %v777_v43  ;;  %v859_v61 = vpop.f32.mrb[18].mxu1 }
 0x17b   :  { %v858_v59 = vadd.f32 %v857_v33, %v856_v53  ;;  %v1031_v62 = vpop.eup %1030  ;;  %v696_v0 = vmul.f32 %v1029_v57, %v1508_v23  ;;  %1048 = vrcp.f32 %v636_v9  ;;  %v826_v2 = vpop.f32.mrb[20].mxu0 }
 0x17c   :  { %v768_v1 = vmul.f32 -1.442695, %v1572_v55  ;;  %v860_v7 = vpop.f32.mrb[19].mxu1  ;;  %v1033_v11 = vpop.eup %1032  ;;  %729 = vst.msk [vmem:[%s1683_s3 + $0x68] sm:$0xff] %vm715_vm1, %v707_v13  ;;  %v647_v12 = vadd.f32 1.0, %v1031_v62  ;;  %1050 = vpow2.f32 %v778_v14 }
 0x17d   :  { %v1586_v19 = vadd.f32 %v858_v59, %v1490_v56  ;;  %v827_v58 = vpop.f32.mrb[21].mxu0  ;;  %v1035_v15 = vpop.eup %1034  ;;  %718 = vst.msk [vmem:[%s1683_s3 + $0x10] sm:$0xff] %vm715_vm1, %v696_v0  ;;  %v697_v23 = vmul.f32 %v1033_v11, %v1513_v28  ;;  %1052 = vpow2.f32 %v767_v20 }
 0x17e   :  { %v828_v26 = vadd.f32 %v827_v58, %v826_v2  ;;  %v829_v16 = vpop.f32.mrb[22].mxu0  ;;  %v1037_v17 = vpop.eup %1036  ;;  %1054 = vrcp.f32 %v647_v12  ;;  %v648_v22 = vadd.f32 1.0, %v1035_v15 }
 0x17f   :  { %v779_v24 = vmul.f32 -1.442695, %v1586_v19  ;;  %v830_v52 = vpop.f32.mrb[23].mxu0  ;;  %v1039_v3 = vpop.eup %1038  ;;  %719 = vst.msk [vmem:[%s1683_s3 + $0x18] sm:$0xff] %vm715_vm1, %v697_v23  ;;  %v637_v25 = vadd.f32 1.0, %v1037_v17  ;;  %1056 = vpow2.f32 %v768_v1 }
 0x180   :  { %v1599_v29 = vadd.f32 %v828_v26, %v1490_v56  ;;  %v831_v28 = vadd.f32 %v830_v52, %v829_v16  ;;  %v1041_v21 = vpop.eup %1040  ;;  %1058 = vrcp.f32 %v648_v22  ;;  %v638_v32 = vadd.f32 1.0, %v1039_v3 }
 0x181   :  { %v708_v30 = vmul.f32 %v1041_v21, %v1517_v35  ;;  %1060 = vrcp.f32 %v637_v25 }
 0x182   :  { %v769_v31 = vmul.f32 -1.442695, %v1599_v29  ;;  %v1604_v34 = vadd.f32 %v831_v28, %v1490_v56  ;;  %v1043_v37 = vpop.eup %1042  ;;  %1062 = vrcp.f32 %v638_v32 }
 0x183   :  { %v1045_v38 = vpop.eup %1044  ;;  %730 = vst.msk [vmem:[%s1683_s3 + $0x70] sm:$0xff] %vm715_vm1, %v708_v30  ;;  %v709_v39 = vmul.f32 %v1043_v37, %v1521_v41  ;;  %1064 = vpow2.f32 %v779_v24 }
 0x184   :  { %v770_v63 = vmul.f32 -1.442695, %v1604_v34  ;;  %v1047_v35 = vpop.eup %1046  ;;  %v698_v6 = vmul.f32 %v1045_v38, %v1524_v45  ;;  %1066 = vpow2.f32 %v769_v31 }
 0x185   :  { %v1049_v40 = vpop.eup %1048  ;;  %731 = vst.msk [vmem:[%s1683_s3 + $0x78] sm:$0xff] %vm715_vm1, %v709_v39  ;;  %v649_v56 = vadd.f32 1.0, %v1047_v35 }
 0x186   :  { %1068 = vpow2.f32 %v770_v63  ;;  %v1051_v60 = vpop.eup %1050  ;;  %720 = vst.msk [vmem:[%s1683_s3 + $0x20] sm:$0xff] %vm715_vm1, %v698_v6  ;;  %v699_v41 = vmul.f32 %v1049_v40, %v1529_v49 }
 0x187   :  { %v1053_v8 = vpop.eup %1052  ;;  %1070 = vrcp.f32 %v649_v56  ;;  %v650_v45 = vadd.f32 1.0, %v1051_v60 }
 0x188   :  { %v1055_v43 = vpop.eup %1054  ;;  %721 = vst.msk [vmem:[%s1683_s3 + $0x28] sm:$0xff] %vm715_vm1, %v699_v41  ;;  %v639_v42 = vadd.f32 1.0, %v1053_v8 }
 0x189   :  { %v1057_v46 = vpop.eup %1056  ;;  %v710_v47 = vmul.f32 %v1055_v43, %v1533_v50  ;;  %1072 = vrcp.f32 %v650_v45 }
 0x18a   :  { %v1059_v48 = vpop.eup %1058  ;;  %1074 = vrcp.f32 %v639_v42  ;;  %v640_v51 = vadd.f32 1.0, %v1057_v46 }
 0x18b   :  { %v1061_v4 = vpop.eup %1060  ;;  %732 = vst.msk [vmem:[%s1683_s3 + $0x80] sm:$0xff] %vm715_vm1, %v710_v47  ;;  %v711_v49 = vmul.f32 %v1059_v48, %v1537_v10 }
 0x18c   :  { %v1063_v14 = vpop.eup %1062  ;;  %v700_v53 = vmul.f32 %v1061_v4, %v1540_v44  ;;  %1076 = vrcp.f32 %v640_v51 }
 0x18d   :  { %v1065_v54 = vpop.eup %1064  ;;  %733 = vst.msk [vmem:[%s1683_s3 + $0x88] sm:$0xff] %vm715_vm1, %v711_v49  ;;  %v701_v50 = vmul.f32 %v1063_v14, %v1545_v18 }
 0x18e   :  { %v1067_v9 = vpop.eup %1066  ;;  %722 = vst.msk [vmem:[%s1683_s3 + $0x30] sm:$0xff] %vm715_vm1, %v700_v53  ;;  %v651_v20 = vadd.f32 1.0, %v1065_v54 }
 0x18f   :  { %723 = vst.msk [vmem:[%s1683_s3 + $0x38] sm:$0xff] %vm715_vm1, %v701_v50  ;;  %v641_v44 = vadd.f32 1.0, %v1067_v9 }
 0x190   :  { %v1069_v10 = vpop.eup %1068  ;;  %1078 = vrcp.f32 %v651_v20 }
 0x191   :  { %v642_v33 = vadd.f32 1.0, %v1069_v10  ;;  %v1071_v57 = vpop.eup %1070  ;;  %1080 = vrcp.f32 %v641_v44 }
 0x192   :  { %v712_v18 = vmul.f32 %v1071_v57, %v1550_v36 }
 0x193   :  { %1082 = vrcp.f32 %v642_v33  ;;  %v1073_v13 = vpop.eup %1072 }
 0x194   :  { %v1075_v59 = vpop.eup %1074  ;;  %734 = vst.msk [vmem:[%s1683_s3 + $0x90] sm:$0xff] %vm715_vm1, %v712_v18  ;;  %v713_v61 = vmul.f32 %v1073_v13, %v1559_v27 }
 0x195   :  { %v702_v62 = vmul.f32 %v1075_v59, %v1566_v5 }
 0x196   :  { %v1077_v0 = vpop.eup %1076  ;;  %735 = vst.msk [vmem:[%s1683_s3 + $0x98] sm:$0xff] %vm715_vm1, %v713_v61 }
 0x197   :  { %724 = vst.msk [vmem:[%s1683_s3 + $0x40] sm:$0xff] %vm715_vm1, %v702_v62  ;;  %v703_v36 = vmul.f32 %v1077_v0, %v1572_v55 }
 0x199   :  { %725 = vst.msk [vmem:[%s1683_s3 + $0x48] sm:$0xff] %vm715_vm1, %v703_v36 }
 0x19a   :  { %v1079_v27 = vpop.eup %1078 }
 0x19b   :  { %v1081_v5 = vpop.eup %1080  ;;  %v714_v1 = vmul.f32 %v1079_v27, %v1586_v19 }
 0x19c   :  { %v704_v7 = vmul.f32 %v1081_v5, %v1599_v29 }
 0x19d   :  { %v1083_v2 = vpop.eup %1082  ;;  %737 = vst.msk [vmem:[%s1683_s3 + $0xa0] sm:$0x3] %vm736_vm2, %v714_v1 }
 0x19e   :  { %v705_v11 = vmul.f32 %v1083_v2, %v1604_v34  ;;  %726 = vst.msk [vmem:[%s1683_s3 + $0x50] sm:$0xff] %vm715_vm1, %v704_v7 }
 0x1a0   :  { %727 = vst.msk [vmem:[%s1683_s3 + $0x58] sm:$0xff] %vm715_vm1, %v705_v11 }

// kernel: yolox_forward.7
= control target key start
LH: loop header
LB: loop body
LE: loop exit
PB: predicated region body
PF: predicated region fallthrough
CT: control target
= control target key end

     0   :  { %vm499_vm0 = vcmask 523264   ;;  %vm506_vm1 = vcmask 517120   ;;  %s947_s1 = inlined_call_operand.vmem [shape: bf16[512,64], index: 1, kind: input, shape index: {}]   ;;  %s948_s0 = inlined_call_operand.vmem [shape: f32[56,128], index: 0, kind: input, shape index: {}]   ;;  %s949_s2 = inlined_call_operand.vmem [shape: f32[1,64], index: 2, kind: input, shape index: {}]   ;;  %s950_s3 = inlined_call_operand.vmem [shape: f32[50,64], index: 3, kind: output, shape index: {}]  }
   0x1   :  { %v632_v0 = vld [vmem:[%s947_s1 + $0x40] sm:$0xff]   ;;  %v636_v4 = vld [vmem:[%s947_s1 + $0x48] sm:$0xff]   ;;  %v640_v8 = vld [vmem:[%s947_s1 + $0x50] sm:$0xff]  }
   0x2   :  { %v633_v1 = vld [vmem:[%s947_s1 + $0xc0] sm:$0xff]   ;;  %552 = vmatprep.subr.bf16.mxu0 %v632_v0  ;;  %v637_v5 = vld [vmem:[%s947_s1 + $0xc8] sm:$0xff]   ;;  %v641_v9 = vld [vmem:[%s947_s1 + $0xd0] sm:$0xff]  }
   0x3   :  { %v634_v2 = vld [vmem:[%s947_s1] sm:$0xff]   ;;  %592 = vmatprep.subr.bf16.mxu1 %v633_v1  ;;  %v638_v6 = vld [vmem:[%s947_s1 + $0x8] sm:$0xff]   ;;  %v642_v10 = vld [vmem:[%s947_s1 + $0x10] sm:$0xff]  }
   0x4   :  { %v635_v3 = vld [vmem:[%s947_s1 + $0x80] sm:$0xff]   ;;  %553 = vmatpush3.bf16.msra.mxu0 %v634_v2  ;;  %v639_v7 = vld [vmem:[%s947_s1 + $0x88] sm:$0xff]   ;;  %v643_v11 = vld [vmem:[%s947_s1 + $0x90] sm:$0xff]  }
   0x5   :  { %593 = vmatpush3.bf16.msra.mxu1 %v635_v3  ;;  %554 = vmatprep.subr.bf16.mxu0 %v636_v4  ;;  %v644_v12 = vld [vmem:[%s947_s1 + $0x58] sm:$0xff]   ;;  %v648_v16 = vld [vmem:[%s947_s1 + $0x60] sm:$0xff]   ;;  %v652_v20 = vld [vmem:[%s947_s1 + $0x68] sm:$0xff]  }
   0x6   :  { %594 = vmatprep.subr.bf16.mxu1 %v637_v5  ;;  %v645_v13 = vld [vmem:[%s947_s1 + $0xd8] sm:$0xff]   ;;  %v649_v17 = vld [vmem:[%s947_s1 + $0xe0] sm:$0xff]   ;;  %v653_v21 = vld [vmem:[%s947_s1 + $0xe8] sm:$0xff]  }
   0x7   :  { %v646_v14 = vld [vmem:[%s947_s1 + $0x18] sm:$0xff]   ;;  %v650_v18 = vld [vmem:[%s947_s1 + $0x20] sm:$0xff]   ;;  %v654_v22 = vld [vmem:[%s947_s1 + $0x28] sm:$0xff]  }
   0x8   :  { %555 = vmatpush3.bf16.msra.mxu0 %v638_v6  ;;  %v647_v15 = vld [vmem:[%s947_s1 + $0x98] sm:$0xff]   ;;  %v651_v19 = vld [vmem:[%s947_s1 + $0xa0] sm:$0xff]   ;;  %v655_v23 = vld [vmem:[%s947_s1 + $0xa8] sm:$0xff]  }
   0x9   :  { %595 = vmatpush3.bf16.msra.mxu1 %v639_v7  ;;  %556 = vmatprep.subr.bf16.mxu0 %v640_v8  ;;  %v656_v24 = vld [vmem:[%s947_s1 + $0x70] sm:$0xff]   ;;  %v660_v28 = vld [vmem:[%s947_s1 + $0x78] sm:$0xff]   ;;  %v22_v32 = vld [vmem:[%s948_s0 + $0x1] sm:$0xff] }
   0xa   :  { %596 = vmatprep.subr.bf16.mxu1 %v641_v9  ;;  %v657_v25 = vld [vmem:[%s947_s1 + $0xf0] sm:$0xff]   ;;  %v661_v29 = vld [vmem:[%s947_s1 + $0xf8] sm:$0xff]   ;;  %v36_v34 = vld [vmem:[%s948_s0 + $0x6] sm:$0xff] }
   0xb   :  { %v658_v26 = vld [vmem:[%s947_s1 + $0x30] sm:$0xff]   ;;  %v662_v30 = vld [vmem:[%s947_s1 + $0x38] sm:$0xff]   ;;  %v15_v37 = vld [vmem:[%s948_s0] sm:$0xff] }
   0xc   :  { %557 = vmatpush3.bf16.msra.mxu0 %v642_v10  ;;  %v659_v27 = vld [vmem:[%s947_s1 + $0xb0] sm:$0xff]   ;;  %v663_v31 = vld [vmem:[%s947_s1 + $0xb8] sm:$0xff]   ;;  %v16_v38 = vld [vmem:[%s948_s0 + $0x8] sm:$0xff] }
   0xd   :  { %597 = vmatpush3.bf16.msra.mxu1 %v643_v11  ;;  %558 = vmatprep.subr.bf16.mxu0 %v644_v12  ;;  %v23_v33 = vld [vmem:[%s948_s0 + $0x9] sm:$0xff]  ;;  %v43_v40 = vpack.c.bf16 %v16_v38, %v15_v37  ;;  %v24_v43 = vld [vmem:[%s948_s0 + $0x11] sm:$0xff]  ;;  %v25_v45 = vld [vmem:[%s948_s0 + $0x19] sm:$0xff] }
   0xe   :  { %598 = vmatprep.subr.bf16.mxu1 %v645_v13  ;;  %v44_v35 = vpack.c.bf16 %v23_v33, %v22_v32  ;;  %v37_v36 = vld [vmem:[%s948_s0 + $0xe] sm:$0xff]  ;;  %v29_v41 = vld [vmem:[%s948_s0 + $0x5] sm:$0xff]  ;;  %v38_v46 = vld [vmem:[%s948_s0 + $0x16] sm:$0xff]  ;;  %v48_v48 = vpack.c.bf16 %v25_v45, %v24_v43 }
   0xf   :  { %v46_v39 = vpack.c.bf16 %v37_v36, %v36_v34  ;;  %v30_v42 = vld [vmem:[%s948_s0 + $0xd] sm:$0xff]  ;;  %v39_v47 = vld [vmem:[%s948_s0 + $0x1e] sm:$0xff]  ;;  %v31_v52 = vld [vmem:[%s948_s0 + $0x15] sm:$0xff] }
  0x10   :  { %559 = vmatpush3.bf16.msra.mxu0 %v646_v14  ;;  %354 = vmatprep.mubr.bf16.mxu0 %v44_v35  ;;  %v45_v44 = vpack.c.bf16 %v30_v42, %v29_v41  ;;  %v50_v49 = vpack.c.bf16 %v39_v47, %v38_v46  ;;  %v17_v50 = vld [vmem:[%s948_s0 + $0x10] sm:$0xff]  ;;  %v18_v51 = vld [vmem:[%s948_s0 + $0x18] sm:$0xff]  ;;  %v26_v54 = vld [vmem:[%s948_s0 + $0x21] sm:$0xff] }
  0x11   :  { %599 = vmatpush3.bf16.msra.mxu1 %v647_v15  ;;  %560 = vmatprep.subr.bf16.mxu0 %v648_v16  ;;  %v32_v53 = vld [vmem:[%s948_s0 + $0x1d] sm:$0xff]  ;;  %v27_v55 = vld [vmem:[%s948_s0 + $0x29] sm:$0xff]  ;;  %v47_v58 = vpack.c.bf16 %v18_v51, %v17_v50  ;;  %v28_v2 = vld [vmem:[%s948_s0 + $0x31] sm:$0x3] }
  0x12   :  { %600 = vmatprep.subr.bf16.mxu1 %v649_v17  ;;  %418 = vmatprep.mubr.bf16.mxu1 %v46_v39  ;;  %v40_v56 = vld [vmem:[%s948_s0 + $0x26] sm:$0xff]  ;;  %v41_v57 = vld [vmem:[%s948_s0 + $0x2e] sm:$0xff]  ;;  %v49_v59 = vpack.c.bf16 %v32_v53, %v31_v52  ;;  %v52_v60 = vpack.c.bf16 %v27_v55, %v26_v54  ;;  %v42_v3 = vld [vmem:[%s948_s0 + $0x36] sm:$0x3]  ;;  %v56_v6 = vpack.c.bf16 %v28_v2, %v28_v2 }
  0x13   :  { %v54_v61 = vpack.c.bf16 %v41_v57, %v40_v56  ;;  %v19_v62 = vld [vmem:[%s948_s0 + $0x20] sm:$0xff]  ;;  %v20_v63 = vld [vmem:[%s948_s0 + $0x28] sm:$0xff]  ;;  %v58_v7 = vpack.c.bf16 %v42_v3, %v42_v3  ;;  %v21_v8 = vld [vmem:[%s948_s0 + $0x30] sm:$0x3] }
  0x14   :  { %561 = vmatpush3.bf16.msra.mxu0 %v650_v18  ;;  %v33_v0 = vld [vmem:[%s948_s0 + $0x25] sm:$0xff]  ;;  %v34_v1 = vld [vmem:[%s948_s0 + $0x2d] sm:$0xff]  ;;  %v51_v4 = vpack.c.bf16 %v20_v63, %v19_v62  ;;  %v35_v9 = vld [vmem:[%s948_s0 + $0x35] sm:$0x3]  ;;  %v55_v10 = vpack.c.bf16 %v21_v8, %v21_v8 }
  0x15   :  { %601 = vmatpush3.bf16.msra.mxu1 %v651_v19  ;;  %562 = vmatprep.subr.bf16.mxu0 %v652_v20  ;;  %v53_v5 = vpack.c.bf16 %v34_v1, %v33_v0  ;;  %v57_v11 = vpack.c.bf16 %v35_v9, %v35_v9  ;;  %v895_v14 = vld [vmem:[%s949_s2] ss:$0 sm:$0xff] }
  0x16   :  { %602 = vmatprep.subr.bf16.mxu1 %v653_v21 }
  0x18   :  { %563 = vmatpush3.bf16.msra.mxu0 %v654_v22 }
  0x19   :  { %603 = vmatpush3.bf16.msra.mxu1 %v655_v23  ;;  %564 = vmatprep.subr.bf16.mxu0 %v656_v24 }
  0x1a   :  { %604 = vmatprep.subr.bf16.mxu1 %v657_v25 }
  0x1c   :  { %565 = vmatpush3.bf16.msra.mxu0 %v658_v26 }
  0x1d   :  { %605 = vmatpush3.bf16.msra.mxu1 %v659_v27  ;;  %566 = vmatprep.subr.bf16.mxu0 %v660_v28 }
  0x1e   :  { %606 = vmatprep.subr.bf16.mxu1 %v661_v29 }
  0x20   :  { %567 = vmatpush3.bf16.msra.mxu0 %v662_v30 }
  0x21   :  { %607 = vmatpush3.bf16.msra.mxu1 %v663_v31 }
  0x23   :  { %355 = vmatmul.mubr.bf16.vlgmr.msra.gmra.mrb[0].mxu0 %v43_v40 }
  0x24   :  { %419 = vmatmul.mubr.bf16.vlgmr.msra.gmra.mrb[0].mxu1 %v45_v44  ;;  %362 = vmatprep.mubr.bf16.mxu0 %v48_v48 }
  0x25   :  { %426 = vmatprep.mubr.bf16.mxu1 %v50_v49 }
  0x2b   :  { %363 = vmatmul.mubr.bf16.gmra.mrb[4].mxu0 %v47_v58 }
  0x2c   :  { %427 = vmatmul.mubr.bf16.gmra.mrb[4].mxu1 %v49_v59  ;;  %370 = vmatprep.mubr.bf16.mxu0 %v52_v60 }
  0x2d   :  { %434 = vmatprep.mubr.bf16.mxu1 %v54_v61 }
  0x33   :  { %371 = vmatmul.mubr.bf16.gmra.mrb[8].mxu0 %v51_v4 }
  0x34   :  { %435 = vmatmul.mubr.bf16.gmra.mrb[8].mxu1 %v53_v5  ;;  %378 = vmatprep.mubr.bf16.mxu0 %v56_v6 }
  0x35   :  { %442 = vmatprep.mubr.bf16.mxu1 %v58_v7 }
  0x3b   :  { %379 = vmatmul.mubr.bf16.gmra.mrb[12].mxu0 %v55_v10 }
  0x3c   :  { %443 = vmatmul.mubr.bf16.gmra.mrb[12].mxu1 %v57_v11 }
  0xf6   :  { %v568_v12 = vpop.f32.mrb[0].mxu0 }
  0xf7   :  { %v608_v13 = vpop.f32.mrb[0].mxu1  ;;  %v569_v15 = vpop.f32.mrb[1].mxu0 }
  0xf8   :  { %v570_v16 = vadd.f32 %v569_v15, %v568_v12  ;;  %v609_v17 = vpop.f32.mrb[1].mxu1  ;;  %v571_v18 = vpop.f32.mrb[2].mxu0 }
  0xf9   :  { %v610_v19 = vadd.f32 %v609_v17, %v608_v13  ;;  %v611_v20 = vpop.f32.mrb[2].mxu1  ;;  %v572_v21 = vpop.f32.mrb[3].mxu0 }
  0xfa   :  { %v357_v22 = vadd.f32 %v570_v16, %v895_v14  ;;  %v573_v23 = vadd.f32 %v572_v21, %v571_v18  ;;  %v612_v24 = vpop.f32.mrb[3].mxu1 }
  0xfb   :  { %v613_v25 = vadd.f32 %v612_v24, %v611_v20 }
  0xfc   :  { %v898_v26 = vadd.f32 %v610_v19, %v357_v22  ;;  %v360_v27 = vadd.f32 %v573_v23, %v895_v14 }
  0xfe   :  { %v545_v28 = vmul.f32 -1.442695, %v898_v26  ;;  %v902_v29 = vadd.f32 %v613_v25, %v360_v27  ;;  %v574_v30 = vpop.f32.mrb[4].mxu0 }
  0xff   :  { %v614_v31 = vpop.f32.mrb[4].mxu1  ;;  %v575_v32 = vpop.f32.mrb[5].mxu0 }
 0x100   :  { %664 = vpow2.f32 %v545_v28  ;;  %v546_v33 = vmul.f32 -1.442695, %v902_v29  ;;  %v576_v34 = vadd.f32 %v575_v32, %v574_v30  ;;  %v615_v35 = vpop.f32.mrb[5].mxu1  ;;  %v577_v36 = vpop.f32.mrb[6].mxu0 }
 0x101   :  { %v616_v37 = vadd.f32 %v615_v35, %v614_v31  ;;  %v617_v38 = vpop.f32.mrb[6].mxu1  ;;  %v578_v39 = vpop.f32.mrb[7].mxu0 }
 0x102   :  { %666 = vpow2.f32 %v546_v33  ;;  %v365_v40 = vadd.f32 %v576_v34, %v895_v14  ;;  %v579_v41 = vadd.f32 %v578_v39, %v577_v36  ;;  %v618_v42 = vpop.f32.mrb[7].mxu1 }
 0x103   :  { %v619_v43 = vadd.f32 %v618_v42, %v617_v38 }
 0x104   :  { %v906_v44 = vadd.f32 %v616_v37, %v365_v40  ;;  %v368_v45 = vadd.f32 %v579_v41, %v895_v14 }
 0x106   :  { %v547_v46 = vmul.f32 -1.442695, %v906_v44  ;;  %v910_v47 = vadd.f32 %v619_v43, %v368_v45  ;;  %v580_v48 = vpop.f32.mrb[8].mxu0 }
 0x107   :  { %v620_v49 = vpop.f32.mrb[8].mxu1  ;;  %v581_v50 = vpop.f32.mrb[9].mxu0 }
 0x108   :  { %668 = vpow2.f32 %v547_v46  ;;  %v548_v51 = vmul.f32 -1.442695, %v910_v47  ;;  %v582_v52 = vadd.f32 %v581_v50, %v580_v48  ;;  %v621_v53 = vpop.f32.mrb[9].mxu1  ;;  %v583_v54 = vpop.f32.mrb[10].mxu0 }
 0x109   :  { %v622_v55 = vadd.f32 %v621_v53, %v620_v49  ;;  %v623_v56 = vpop.f32.mrb[10].mxu1  ;;  %v584_v57 = vpop.f32.mrb[11].mxu0 }
 0x10a   :  { %v665_v58 = vpop.eup %664  ;;  %670 = vpow2.f32 %v548_v51  ;;  %v373_v59 = vadd.f32 %v582_v52, %v895_v14  ;;  %v585_v60 = vadd.f32 %v584_v57, %v583_v54  ;;  %v624_v61 = vpop.f32.mrb[11].mxu1 }
 0x10b   :  { %v471_v62 = vadd.f32 1.0, %v665_v58  ;;  %v625_v63 = vadd.f32 %v624_v61, %v623_v56 }
 0x10c   :  { %v667_v0 = vpop.eup %666  ;;  %v437_v1 = vadd.f32 %v622_v55, %v373_v59  ;;  %v376_v2 = vadd.f32 %v585_v60, %v895_v14 }
 0x10d   :  { %672 = vrcp.f32 %v471_v62  ;;  %v472_v3 = vadd.f32 1.0, %v667_v0 }
 0x10e   :  { %v549_v4 = vmul.f32 -1.442695, %v437_v1  ;;  %v440_v5 = vadd.f32 %v625_v63, %v376_v2  ;;  %v586_v6 = vpop.f32.mrb[12].mxu0 }
 0x10f   :  { %674 = vrcp.f32 %v472_v3  ;;  %v626_v7 = vpop.f32.mrb[12].mxu1  ;;  %v587_v8 = vpop.f32.mrb[13].mxu0 }
 0x110   :  { %676 = vpow2.f32 %v549_v4  ;;  %v550_v9 = vmul.f32 -1.442695, %v440_v5  ;;  %v588_v10 = vadd.f32 %v587_v8, %v586_v6  ;;  %v627_v11 = vpop.f32.mrb[13].mxu1  ;;  %v589_v12 = vpop.f32.mrb[14].mxu0 }
 0x111   :  { %v628_v13 = vadd.f32 %v627_v11, %v626_v7  ;;  %v629_v15 = vpop.f32.mrb[14].mxu1  ;;  %v590_v16 = vpop.f32.mrb[15].mxu0 }
 0x112   :  { %v669_v17 = vpop.eup %668  ;;  %678 = vpow2.f32 %v550_v9  ;;  %v381_v18 = vadd.f32 %v588_v10, %v895_v14  ;;  %v630_v19 = vpop.f32.mrb[15].mxu1 }
 0x113   :  { %v473_v20 = vadd.f32 1.0, %v669_v17 }
 0x114   :  { %v671_v21 = vpop.eup %670  ;;  %v445_v22 = vadd.f32 %v628_v13, %v381_v18 }
 0x115   :  { %680 = vrcp.f32 %v473_v20  ;;  %v474_v23 = vadd.f32 1.0, %v671_v21 }
 0x116   :  { %v551_v24 = vmul.f32 -1.442695, %v445_v22 }
 0x117   :  { %v673_v25 = vpop.eup %672  ;;  %682 = vrcp.f32 %v474_v23 }
 0x118   :  { %v492_v27 = vmul.f32 %v673_v25, %v898_v26  ;;  %684 = vpow2.f32 %v551_v24 }
 0x119   :  { %v675_v28 = vpop.eup %674 }
 0x11a   :  { %v677_v30 = vpop.eup %676  ;;  %500 = vst.msk [vmem:[%s950_s3] sm:$0xff] %vm499_vm0, %v492_v27  ;;  %v493_v14 = vmul.f32 %v675_v28, %v902_v29 }
 0x11b   :  { %v475_v31 = vadd.f32 1.0, %v677_v30 }
 0x11c   :  { %v679_v32 = vpop.eup %678  ;;  %501 = vst.msk [vmem:[%s950_s3 + $0x8] sm:$0xff] %vm499_vm0, %v493_v14 }
 0x11d   :  { %686 = vrcp.f32 %v475_v31  ;;  %v476_v33 = vadd.f32 1.0, %v679_v32 }
 0x11f   :  { %v681_v26 = vpop.eup %680  ;;  %688 = vrcp.f32 %v476_v33 }
 0x120   :  { %v494_v34 = vmul.f32 %v681_v26, %v906_v44 }
 0x121   :  { %v683_v35 = vpop.eup %682 }
 0x122   :  { %v685_v36 = vpop.eup %684  ;;  %502 = vst.msk [vmem:[%s950_s3 + $0x10] sm:$0xff] %vm499_vm0, %v494_v34  ;;  %v495_v29 = vmul.f32 %v683_v35, %v910_v47 }
 0x123   :  { %v477_v37 = vadd.f32 1.0, %v685_v36 }
 0x124   :  { %503 = vst.msk [vmem:[%s950_s3 + $0x18] sm:$0xff] %vm499_vm0, %v495_v29 }
 0x125   :  { %690 = vrcp.f32 %v477_v37 }
 0x127   :  { %v687_v38 = vpop.eup %686 }
 0x128   :  { %v496_v39 = vmul.f32 %v687_v38, %v437_v1 }
 0x129   :  { %v689_v40 = vpop.eup %688 }
 0x12a   :  { %504 = vst.msk [vmem:[%s950_s3 + $0x20] sm:$0xff] %vm499_vm0, %v496_v39  ;;  %v497_v41 = vmul.f32 %v689_v40, %v440_v5 }
 0x12c   :  { %505 = vst.msk [vmem:[%s950_s3 + $0x28] sm:$0xff] %vm499_vm0, %v497_v41 }
 0x12f   :  { %v691_v42 = vpop.eup %690 }
 0x130   :  { %v498_v43 = vmul.f32 %v691_v42, %v445_v22 }
 0x132   :  { %507 = vst.msk [vmem:[%s950_s3 + $0x30] sm:$0x3] %vm506_vm1, %v498_v43 }

// kernel: yolox_forward.8
= control target key start
LH: loop header
LB: loop body
LE: loop exit
PB: predicated region body
PF: predicated region fallthrough
CT: control target
= control target key end

     0   :  { %vm39_vm0 = vcmask 1046528   ;;  %vm60_vm1 = vcmask 1044480   ;;  %vm81_vm2 = vcmask 1043456   ;;  %s1411_s1 = inlined_call_operand.vmem [shape: bf16[1024,128], index: 1, kind: input, shape index: {}]   ;;  %s1412_s0 = inlined_call_operand.vmem [shape: f32[22,256], index: 0, kind: input, shape index: {}]   ;;  %s1413_s2 = inlined_call_operand.vmem [shape: f32[1,128], index: 2, kind: input, shape index: {}]   ;;  %s1414_s3 = inlined_call_operand.vmem [shape: f32[18,128], index: 3, kind: output, shape index: {}]  }
   0x1   :  { %v1033_v0 = vld [vmem:[%s1411_s1 + $0x40] sm:$0xff]   ;;  %v1037_v4 = vld [vmem:[%s1411_s1 + $0x48] sm:$0xff]   ;;  %v1041_v8 = vld [vmem:[%s1411_s1 + $0x50] sm:$0xff]  }
   0x2   :  { %v1034_v1 = vld [vmem:[%s1411_s1 + $0xc0] sm:$0xff]   ;;  %921 = vmatprep.subr.bf16.mxu0 %v1033_v0  ;;  %v1038_v5 = vld [vmem:[%s1411_s1 + $0xc8] sm:$0xff]   ;;  %v1042_v9 = vld [vmem:[%s1411_s1 + $0xd0] sm:$0xff]  }
   0x3   :  { %v1035_v2 = vld [vmem:[%s1411_s1] sm:$0xff]   ;;  %949 = vmatprep.subr.bf16.mxu1 %v1034_v1  ;;  %v1039_v6 = vld [vmem:[%s1411_s1 + $0x8] sm:$0xff]   ;;  %v1043_v10 = vld [vmem:[%s1411_s1 + $0x10] sm:$0xff]  }
   0x4   :  { %v1036_v3 = vld [vmem:[%s1411_s1 + $0x80] sm:$0xff]   ;;  %922 = vmatpush3.bf16.msra.mxu0 %v1035_v2  ;;  %v1040_v7 = vld [vmem:[%s1411_s1 + $0x88] sm:$0xff]   ;;  %v1044_v11 = vld [vmem:[%s1411_s1 + $0x90] sm:$0xff]  }
   0x5   :  { %950 = vmatpush3.bf16.msra.mxu1 %v1036_v3  ;;  %923 = vmatprep.subr.bf16.mxu0 %v1037_v4  ;;  %v1045_v12 = vld [vmem:[%s1411_s1 + $0x58] sm:$0xff]   ;;  %v1049_v16 = vld [vmem:[%s1411_s1 + $0x60] sm:$0xff]   ;;  %v1053_v20 = vld [vmem:[%s1411_s1 + $0x68] sm:$0xff]  }
   0x6   :  { %951 = vmatprep.subr.bf16.mxu1 %v1038_v5  ;;  %v1046_v13 = vld [vmem:[%s1411_s1 + $0xd8] sm:$0xff]   ;;  %v1050_v17 = vld [vmem:[%s1411_s1 + $0xe0] sm:$0xff]   ;;  %v1054_v21 = vld [vmem:[%s1411_s1 + $0xe8] sm:$0xff]  }
   0x7   :  { %v1047_v14 = vld [vmem:[%s1411_s1 + $0x18] sm:$0xff]   ;;  %v1051_v18 = vld [vmem:[%s1411_s1 + $0x20] sm:$0xff]   ;;  %v1055_v22 = vld [vmem:[%s1411_s1 + $0x28] sm:$0xff]  }
   0x8   :  { %924 = vmatpush3.bf16.msra.mxu0 %v1039_v6  ;;  %v1048_v15 = vld [vmem:[%s1411_s1 + $0x98] sm:$0xff]   ;;  %v1052_v19 = vld [vmem:[%s1411_s1 + $0xa0] sm:$0xff]   ;;  %v1056_v23 = vld [vmem:[%s1411_s1 + $0xa8] sm:$0xff]  }
   0x9   :  { %952 = vmatpush3.bf16.msra.mxu1 %v1040_v7  ;;  %925 = vmatprep.subr.bf16.mxu0 %v1041_v8  ;;  %v1057_v24 = vld [vmem:[%s1411_s1 + $0x70] sm:$0xff]   ;;  %v1061_v28 = vld [vmem:[%s1411_s1 + $0x78] sm:$0xff]   ;;  %v16_v32 = vld [vmem:[%s1412_s0 + $0x8] sm:$0xff] }
   0xa   :  { %953 = vmatprep.subr.bf16.mxu1 %v1042_v9  ;;  %v1058_v25 = vld [vmem:[%s1411_s1 + $0xf0] sm:$0xff]   ;;  %v1062_v29 = vld [vmem:[%s1411_s1 + $0xf8] sm:$0xff]   ;;  %v22_v34 = vld [vmem:[%s1412_s0 + $0x8] sm:$0xfe] }
   0xb   :  { %v1059_v26 = vld [vmem:[%s1411_s1 + $0x30] sm:$0xff]   ;;  %v1063_v30 = vld [vmem:[%s1411_s1 + $0x38] sm:$0xff]   ;;  %v24_v36 = vld [vmem:[%s1412_s0 + $0x28] sm:$0x7]  ;;  %v43_v37 = vrot.slane %v22_v34, 1 }
   0xc   :  { %926 = vmatpush3.bf16.msra.mxu0 %v1043_v10  ;;  %v1060_v27 = vld [vmem:[%s1411_s1 + $0xb0] sm:$0xff]   ;;  %v1064_v31 = vld [vmem:[%s1411_s1 + $0xb8] sm:$0xff]   ;;  %v15_v38 = vld [vmem:[%s1412_s0] sm:$0xff]  ;;  %v48_v40 = vrot.slane %v24_v36, 1 }
   0xd   :  { %954 = vmatpush3.bf16.msra.mxu1 %v1044_v11  ;;  %927 = vmatprep.subr.bf16.mxu0 %v1045_v12  ;;  %v1231_v33 = vld [vmem:[%s1412_s0 + $0x18] sm:$0xff]  ;;  %v1247_v41 = vld [vmem:[%s1412_s0 + $0x10] sm:$0xff]  ;;  %v21_v42 = vld [vmem:[%s1412_s0] sm:$0xfe] }
   0xe   :  { %955 = vmatprep.subr.bf16.mxu1 %v1046_v13  ;;  %v99_v35 = vpack.c.bf16 %v1231_v33, %v16_v32  ;;  %v44_v39 = vrot.slane %v1231_v33, 1  ;;  %v1065_v43 = vld [vmem:[%s1411_s1 + $0x140] sm:$0xff]   ;;  %v98_v44 = vpack.c.bf16 %v1247_v41, %v15_v38  ;;  %v40_v46 = vrot.slane %v21_v42, 1  ;;  %v1069_v59 = vld [vmem:[%s1411_s1 + $0x148] sm:$0xff]   ;;  %v1073_v63 = vld [vmem:[%s1411_s1 + $0x150] sm:$0xff]  }
   0xf   :  { %v23_v45 = vld [vmem:[%s1412_s0 + $0x20] sm:$0x7]  ;;  %v41_v50 = vrot.slane %v1247_v41, 1  ;;  %v109_v58 = vpack.c.bf16 %v48_v40, %v48_v40  ;;  %v1070_v60 = vld [vmem:[%s1411_s1 + $0x1c8] sm:$0xff]   ;;  %v1074_v0 = vld [vmem:[%s1411_s1 + $0x1d0] sm:$0xff]  }
  0x10   :  { %928 = vmatpush3.bf16.msra.mxu0 %v1047_v14  ;;  %665 = vmatprep.mubr.bf16.mxu0 %v99_v35  ;;  %v1066_v47 = vld [vmem:[%s1411_s1 + $0x1c0] sm:$0xff]   ;;  %v45_v48 = vsel %vm39_vm0, %v43_v37, %v44_v39  ;;  %v49_v49 = vsel %vm39_vm0, %v44_v39, %v48_v40  ;;  %v46_v51 = vrot.slane %v23_v45, 1  ;;  %v1071_v61 = vld [vmem:[%s1411_s1 + $0x108] sm:$0xff]   ;;  %v1075_v2 = vld [vmem:[%s1411_s1 + $0x110] sm:$0xff]  }
  0x11   :  { %956 = vmatpush3.bf16.msra.mxu1 %v1048_v15  ;;  %929 = vmatprep.subr.bf16.mxu0 %v1049_v16  ;;  %v101_v52 = vpack.c.bf16 %v49_v49, %v45_v48  ;;  %v42_v53 = vsel %vm39_vm0, %v40_v46, %v41_v50  ;;  %v1067_v55 = vld [vmem:[%s1411_s1 + $0x100] sm:$0xff]   ;;  %v1072_v62 = vld [vmem:[%s1411_s1 + $0x188] sm:$0xff]   ;;  %v1076_v3 = vld [vmem:[%s1411_s1 + $0x190] sm:$0xff]  }
  0x12   :  { %957 = vmatprep.subr.bf16.mxu1 %v1050_v17  ;;  %v47_v54 = vsel %vm39_vm0, %v41_v50, %v46_v51  ;;  %v1068_v57 = vld [vmem:[%s1411_s1 + $0x180] sm:$0xff]   ;;  %v108_v1 = vpack.c.bf16 %v46_v51, %v46_v51  ;;  %v1077_v4 = vld [vmem:[%s1411_s1 + $0x158] sm:$0xff]   ;;  %v20_v12 = vld [vmem:[%s1412_s0 + $0x28] sm:$0x3] }
  0x13   :  { %713 = vmatprep.mubr.bf16.mxu1 %v101_v52  ;;  %v100_v56 = vpack.c.bf16 %v47_v54, %v42_v53  ;;  %v1078_v5 = vld [vmem:[%s1411_s1 + $0x1d8] sm:$0xff]   ;;  %v1081_v8 = vld [vmem:[%s1411_s1 + $0x160] sm:$0xff]   ;;  %v107_v13 = vpack.c.bf16 %v20_v12, %v20_v12  ;;  %v1085_v14 = vld [vmem:[%s1411_s1 + $0x168] sm:$0xff]  }
  0x14   :  { %930 = vmatpush3.bf16.msra.mxu0 %v1051_v18  ;;  %v1079_v6 = vld [vmem:[%s1411_s1 + $0x118] sm:$0xff]   ;;  %v1082_v9 = vld [vmem:[%s1411_s1 + $0x1e0] sm:$0xff]   ;;  %v1086_v15 = vld [vmem:[%s1411_s1 + $0x1e8] sm:$0xff]  }
  0x15   :  { %958 = vmatpush3.bf16.msra.mxu1 %v1052_v19  ;;  %931 = vmatprep.subr.bf16.mxu0 %v1053_v20  ;;  %v1080_v7 = vld [vmem:[%s1411_s1 + $0x198] sm:$0xff]   ;;  %v1083_v10 = vld [vmem:[%s1411_s1 + $0x120] sm:$0xff]   ;;  %v1087_v18 = vld [vmem:[%s1411_s1 + $0x128] sm:$0xff]  }
  0x16   :  { %959 = vmatprep.subr.bf16.mxu1 %v1054_v21  ;;  %v1084_v11 = vld [vmem:[%s1411_s1 + $0x1a0] sm:$0xff]   ;;  %v1088_v19 = vld [vmem:[%s1411_s1 + $0x1a8] sm:$0xff]   ;;  %v1089_v20 = vld [vmem:[%s1411_s1 + $0x170] sm:$0xff]  }
  0x17   :  { %v19_v16 = vld [vmem:[%s1412_s0 + $0x20] sm:$0x3]  ;;  %v1090_v21 = vld [vmem:[%s1411_s1 + $0x1f0] sm:$0xff]   ;;  %v26_v32 = vld [vmem:[%s1412_s0 + $0x8] sm:$0xf8] }
  0x18   :  { %932 = vmatpush3.bf16.msra.mxu0 %v1055_v22  ;;  %v106_v17 = vpack.c.bf16 %v19_v16, %v19_v16  ;;  %v1091_v22 = vld [vmem:[%s1411_s1 + $0x130] sm:$0xff]   ;;  %v64_v34 = vrot.slane %v26_v32, 3  ;;  %v30_v36 = vld [vmem:[%s1412_s0 + $0x8] sm:$0xf0]  ;;  %v25_v40 = vld [vmem:[%s1412_s0] sm:$0xf8] }
  0x19   :  { %960 = vmatpush3.bf16.msra.mxu1 %v1056_v23  ;;  %933 = vmatprep.subr.bf16.mxu0 %v1057_v24  ;;  %v1092_v23 = vld [vmem:[%s1411_s1 + $0x1b0] sm:$0xff]   ;;  %v65_v24 = vrot.slane %v1231_v33, 3  ;;  %v32_v37 = vld [vmem:[%s1412_s0 + $0x28] sm:$0x3f]  ;;  %v85_v38 = vrot.slane %v30_v36, 4 }
  0x1a   :  { %961 = vmatprep.subr.bf16.mxu1 %v1058_v25  ;;  %v1093_v25 = vld [vmem:[%s1411_s1 + $0x178] sm:$0xff]   ;;  %v90_v39 = vrot.slane %v32_v37, 4  ;;  %v29_v46 = vld [vmem:[%s1412_s0] sm:$0xf0] }
  0x1b   :  { %v66_v42 = vsel %vm60_vm1, %v64_v34, %v65_v24  ;;  %v82_v51 = vrot.slane %v29_v46, 4 }
  0x1c   :  { %934 = vmatpush3.bf16.msra.mxu0 %v1059_v26  ;;  %v86_v26 = vrot.slane %v1231_v33, 4  ;;  %v28_v33 = vld [vmem:[%s1412_s0 + $0x28] sm:$0x1f] }
  0x1d   :  { %962 = vmatpush3.bf16.msra.mxu1 %v1060_v27  ;;  %935 = vmatprep.subr.bf16.mxu0 %v1061_v28  ;;  %v1094_v27 = vld [vmem:[%s1411_s1 + $0x1f8] sm:$0xff]   ;;  %v62_v28 = vrot.slane %v1247_v41, 3  ;;  %v69_v35 = vrot.slane %v28_v33, 3 }
  0x1e   :  { %963 = vmatprep.subr.bf16.mxu1 %v1062_v29  ;;  %v1095_v29 = vld [vmem:[%s1411_s1 + $0x138] sm:$0xff]   ;;  %v87_v49 = vsel %vm81_vm2, %v85_v38, %v86_v26  ;;  %v91_v50 = vsel %vm81_vm2, %v86_v26, %v90_v39 }
  0x1f   :  { %v105_v52 = vpack.c.bf16 %v91_v50, %v87_v49 }
  0x20   :  { %936 = vmatpush3.bf16.msra.mxu0 %v1063_v30  ;;  %v83_v30 = vrot.slane %v1247_v41, 4  ;;  %v27_v41 = vld [vmem:[%s1412_s0 + $0x20] sm:$0x1f] }
  0x21   :  { %964 = vmatpush3.bf16.msra.mxu1 %v1064_v31  ;;  %977 = vmatprep.subr.bf16.mxu0 %v1065_v43  ;;  %v1096_v31 = vld [vmem:[%s1411_s1 + $0x1b8] sm:$0xff]   ;;  %v70_v43 = vsel %vm60_vm1, %v65_v24, %v69_v35  ;;  %v67_v45 = vrot.slane %v27_v41, 3 }
  0x22   :  { %1005 = vmatprep.subr.bf16.mxu1 %v1066_v47  ;;  %v31_v47 = vld [vmem:[%s1412_s0 + $0x20] sm:$0x3f]  ;;  %v103_v48 = vpack.c.bf16 %v70_v43, %v66_v42 }
  0x23   :  { %666 = vmatmul.mubr.bf16.vlgmr.msra.gmra.mrb[0].mxu0 %v98_v44  ;;  %v61_v44 = vrot.slane %v25_v40, 3  ;;  %v68_v54 = vsel %vm60_vm1, %v62_v28, %v67_v45 }
  0x24   :  { %978 = vmatpush3.bf16.msra.mxu0 %v1067_v55  ;;  %714 = vmatmul.mubr.bf16.vlgmr.msra.gmra.mrb[0].mxu1 %v100_v56  ;;  %v88_v55 = vrot.slane %v31_v47, 4 }
  0x25   :  { %1006 = vmatpush3.bf16.msra.mxu1 %v1068_v57  ;;  %979 = vmatprep.subr.bf16.mxu0 %v1069_v59  ;;  %v63_v53 = vsel %vm60_vm1, %v61_v44, %v62_v28  ;;  %v84_v57 = vsel %vm81_vm2, %v82_v51, %v83_v30 }
  0x26   :  { %1007 = vmatprep.subr.bf16.mxu1 %v1070_v60  ;;  %721 = vmatprep.mubr.bf16.mxu1 %v109_v58  ;;  %v102_v56 = vpack.c.bf16 %v68_v54, %v63_v53  ;;  %v111_v58 = vpack.c.bf16 %v69_v35, %v69_v35  ;;  %v89_v59 = vsel %vm81_vm2, %v83_v30, %v88_v55 }
  0x27   :  { %673 = vmatprep.mubr.bf16.mxu0 %v107_v13  ;;  %v113_v60 = vpack.c.bf16 %v90_v39, %v90_v39 }
  0x28   :  { %980 = vmatpush3.bf16.msra.mxu0 %v1071_v61  ;;  %v104_v61 = vpack.c.bf16 %v89_v59, %v84_v57 }
  0x29   :  { %1008 = vmatpush3.bf16.msra.mxu1 %v1072_v62  ;;  %981 = vmatprep.subr.bf16.mxu0 %v1073_v63  ;;  %v110_v62 = vpack.c.bf16 %v67_v45, %v67_v45  ;;  %v112_v63 = vpack.c.bf16 %v88_v55, %v88_v55 }
  0x2a   :  { %1009 = vmatprep.subr.bf16.mxu1 %v1074_v0 }
  0x2b   :  { %674 = vmatmul.mubr.bf16.gmra.mrb[4].mxu0 %v106_v17 }
  0x2c   :  { %982 = vmatpush3.bf16.msra.mxu0 %v1075_v2  ;;  %722 = vmatmul.mubr.bf16.gmra.mrb[4].mxu1 %v108_v1  ;;  %v853_v1 = vld [vmem:[%s1413_s2] ss:$0 sm:$0xff] }
  0x2d   :  { %1010 = vmatpush3.bf16.msra.mxu1 %v1076_v3  ;;  %983 = vmatprep.subr.bf16.mxu0 %v1077_v4 }
  0x2e   :  { %1011 = vmatprep.subr.bf16.mxu1 %v1078_v5  ;;  %761 = vmatprep.mubr.bf16.mxu0 %v103_v48 }
  0x2f   :  { %809 = vmatprep.mubr.bf16.mxu1 %v105_v52 }
  0x30   :  { %984 = vmatpush3.bf16.msra.mxu0 %v1079_v6 }
  0x31   :  { %1012 = vmatpush3.bf16.msra.mxu1 %v1080_v7  ;;  %985 = vmatprep.subr.bf16.mxu0 %v1081_v8 }
  0x32   :  { %1013 = vmatprep.subr.bf16.mxu1 %v1082_v9 }
  0x34   :  { %986 = vmatpush3.bf16.msra.mxu0 %v1083_v10 }
  0x35   :  { %1014 = vmatpush3.bf16.msra.mxu1 %v1084_v11  ;;  %987 = vmatprep.subr.bf16.mxu0 %v1085_v14 }
  0x36   :  { %1015 = vmatprep.subr.bf16.mxu1 %v1086_v15 }
  0x38   :  { %988 = vmatpush3.bf16.msra.mxu0 %v1087_v18 }
  0x39   :  { %1016 = vmatpush3.bf16.msra.mxu1 %v1088_v19  ;;  %989 = vmatprep.subr.bf16.mxu0 %v1089_v20 }
  0x3a   :  { %1017 = vmatprep.subr.bf16.mxu1 %v1090_v21 }
  0x3c   :  { %990 = vmatpush3.bf16.msra.mxu0 %v1091_v22 }
  0x3d   :  { %1018 = vmatpush3.bf16.msra.mxu1 %v1092_v23  ;;  %991 = vmatprep.subr.bf16.mxu0 %v1093_v25 }
  0x3e   :  { %1019 = vmatprep.subr.bf16.mxu1 %v1094_v27 }
  0x40   :  { %992 = vmatpush3.bf16.msra.mxu0 %v1095_v29 }
  0x41   :  { %1020 = vmatpush3.bf16.msra.mxu1 %v1096_v31 }
  0x43   :  { %762 = vmatmul.mubr.bf16.vlgmr.msra.gmra.mrb[8].mxu0 %v102_v56 }
  0x44   :  { %769 = vmatprep.mubr.bf16.mxu0 %v111_v58  ;;  %810 = vmatmul.mubr.bf16.vlgmr.msra.gmra.mrb[8].mxu1 %v104_v61 }
  0x45   :  { %817 = vmatprep.mubr.bf16.mxu1 %v113_v60 }
  0x4b   :  { %770 = vmatmul.mubr.bf16.gmra.mrb[12].mxu0 %v110_v62 }
  0x4c   :  { %818 = vmatmul.mubr.bf16.gmra.mrb[12].mxu1 %v112_v63 }
  0xf6   :  { %v937_v0 = vpop.f32.mrb[0].mxu0 }
  0xf7   :  { %v938_v2 = vpop.f32.mrb[1].mxu0  ;;  %v965_v6 = vpop.f32.mrb[0].mxu1 }
  0xf8   :  { %v939_v3 = vadd.f32 %v938_v2, %v937_v0  ;;  %v940_v4 = vpop.f32.mrb[2].mxu0  ;;  %v966_v9 = vpop.f32.mrb[1].mxu1 }
  0xf9   :  { %v941_v5 = vpop.f32.mrb[3].mxu0  ;;  %v967_v10 = vadd.f32 %v966_v9, %v965_v6  ;;  %v968_v11 = vpop.f32.mrb[2].mxu1 }
  0xfa   :  { %v668_v7 = vadd.f32 %v939_v3, %v853_v1  ;;  %v942_v8 = vadd.f32 %v941_v5, %v940_v4  ;;  %v969_v13 = vpop.f32.mrb[3].mxu1 }
  0xfb   :  { %v970_v15 = vadd.f32 %v969_v13, %v968_v11 }
  0xfc   :  { %v671_v12 = vadd.f32 %v942_v8, %v853_v1  ;;  %v716_v14 = vadd.f32 %v967_v10, %v668_v7 }
  0xfe   :  { %v719_v16 = vadd.f32 %v970_v15, %v671_v12  ;;  %v943_v22 = vpop.f32.mrb[4].mxu0 }
  0xff   :  { %v971_v17 = vpop.f32.mrb[4].mxu1  ;;  %v944_v23 = vpop.f32.mrb[5].mxu0 }
 0x100   :  { %v972_v18 = vpop.f32.mrb[5].mxu1  ;;  %v945_v24 = vadd.f32 %v944_v23, %v943_v22  ;;  %v946_v25 = vpop.f32.mrb[6].mxu0 }
 0x101   :  { %v973_v19 = vadd.f32 %v972_v18, %v971_v17  ;;  %v974_v20 = vpop.f32.mrb[6].mxu1  ;;  %v947_v26 = vpop.f32.mrb[7].mxu0 }
 0x102   :  { %v975_v21 = vpop.f32.mrb[7].mxu1  ;;  %v676_v27 = vadd.f32 %v945_v24, %v853_v1 }
 0x104   :  { %v724_v28 = vadd.f32 %v973_v19, %v676_v27 }
 0x116   :  { %v993_v29 = vpop.f32.mrb[8].mxu0 }
 0x117   :  { %v994_v30 = vpop.f32.mrb[9].mxu0  ;;  %v1021_v31 = vpop.f32.mrb[8].mxu1 }
 0x118   :  { %v995_v32 = vadd.f32 %v994_v30, %v993_v29  ;;  %v996_v33 = vpop.f32.mrb[10].mxu0  ;;  %v1022_v34 = vpop.f32.mrb[9].mxu1 }
 0x119   :  { %v997_v35 = vpop.f32.mrb[11].mxu0  ;;  %v1023_v37 = vadd.f32 %v1022_v34, %v1021_v31  ;;  %v1024_v38 = vpop.f32.mrb[10].mxu1 }
 0x11a   :  { %v764_v36 = vadd.f32 %v995_v32, %v716_v14  ;;  %v998_v39 = vadd.f32 %v997_v35, %v996_v33  ;;  %v1025_v40 = vpop.f32.mrb[11].mxu1 }
 0x11b   :  { %v1026_v43 = vadd.f32 %v1025_v40, %v1024_v38 }
 0x11c   :  { %v812_v41 = vadd.f32 %v1023_v37, %v764_v36  ;;  %v767_v42 = vadd.f32 %v998_v39, %v719_v16 }
 0x11e   :  { %v918_v44 = vmul.f32 -1.442695, %v812_v41  ;;  %v815_v45 = vadd.f32 %v1026_v43, %v767_v42  ;;  %v999_v46 = vpop.f32.mrb[12].mxu0 }
 0x11f   :  { %v1000_v47 = vpop.f32.mrb[13].mxu0  ;;  %v1027_v49 = vpop.f32.mrb[12].mxu1 }
 0x120   :  { %1097 = vpow2.f32 %v918_v44  ;;  %v919_v48 = vmul.f32 -1.442695, %v815_v45  ;;  %v1001_v50 = vadd.f32 %v1000_v47, %v999_v46  ;;  %v1002_v51 = vpop.f32.mrb[14].mxu0  ;;  %v1028_v52 = vpop.f32.mrb[13].mxu1 }
 0x121   :  { %v1003_v53 = vpop.f32.mrb[15].mxu0  ;;  %v1029_v55 = vadd.f32 %v1028_v52, %v1027_v49  ;;  %v1030_v56 = vpop.f32.mrb[14].mxu1 }
 0x122   :  { %1099 = vpow2.f32 %v919_v48  ;;  %v772_v54 = vadd.f32 %v1001_v50, %v724_v28  ;;  %v1031_v57 = vpop.f32.mrb[15].mxu1 }
 0x124   :  { %v820_v58 = vadd.f32 %v1029_v55, %v772_v54 }
 0x126   :  { %v920_v59 = vmul.f32 -1.442695, %v820_v58 }
 0x128   :  { %1101 = vpow2.f32 %v920_v59 }
 0x12a   :  { %v1098_v60 = vpop.eup %1097 }
 0x12b   :  { %v834_v61 = vadd.f32 1.0, %v1098_v60 }
 0x12c   :  { %v1100_v62 = vpop.eup %1099 }
 0x12d   :  { %1103 = vrcp.f32 %v834_v61  ;;  %v835_v63 = vadd.f32 1.0, %v1100_v62 }
 0x12f   :  { %1105 = vrcp.f32 %v835_v63 }
 0x132   :  { %v1102_v0 = vpop.eup %1101 }
 0x133   :  { %v836_v1 = vadd.f32 1.0, %v1102_v0 }
 0x135   :  { %1107 = vrcp.f32 %v836_v1 }
 0x137   :  { %v1104_v2 = vpop.eup %1103 }
 0x138   :  { %v843_v3 = vmul.f32 %v1104_v2, %v812_v41 }
 0x139   :  { %v1106_v4 = vpop.eup %1105 }
 0x13a   :  { %846 = vst [vmem:[%s1414_s3] sm:$0xff] %v843_v3  ;;  %v844_v5 = vmul.f32 %v1106_v4, %v815_v45 }
 0x13c   :  { %847 = vst [vmem:[%s1414_s3 + $0x8] sm:$0xff] %v844_v5 }
 0x13f   :  { %v1108_v6 = vpop.eup %1107 }
 0x140   :  { %v845_v7 = vmul.f32 %v1108_v6, %v820_v58 }
 0x142   :  { %848 = vst [vmem:[%s1414_s3 + $0x10] sm:$0x3] %v845_v7 }

// kernel: yolox_forward.9
= control target key start
LH: loop header
LB: loop body
LE: loop exit
PB: predicated region body
PF: predicated region fallthrough
CT: control target
= control target key end

     0   :  { %v1585_v0 = vmov 0   ;;  %vm774_vm0 = vcmask 785408   ;;  %vm1314_vm12 = vcmask 64512   ;;  %s2485_s1 = inlined_call_operand.vmem [shape: bf16[224,8], index: 1, kind: input, shape index: {}]   ;;  %s2486_s0 = inlined_call_operand.vmem [shape: f32[168,224], index: 0, kind: input, shape index: {}]   ;;  %s2487_s2 = inlined_call_operand.vmem [shape: f32[3,8], index: 2, kind: input, shape index: {}]   ;;  %s2488_s3 = inlined_call_operand.vmem [shape: f32[168,8], index: 3, kind: output, shape index: {}]  }
   0x1   :  { %808 = vmatprep.subr.bf16.mxu0 %v1585_v0  ;;  %1413 = vmatprep.subr.bf16.mxu1 %v1585_v0  ;;  %v1445_v1 = vld [vmem:[%s2485_s1] sm:$0xff]   ;;  %v1446_v2 = vld [vmem:[%s2485_s1 + $0x8] sm:$0xff]   ;;  %v1447_v3 = vld [vmem:[%s2485_s1 + $0x10] sm:$0xff]  }
   0x2   :  { %809 = vmatpush1.bf16.msra.mxu0 %v1445_v1  ;;  %1427 = vmatpush1.bf16.msra.mxu1 %v1445_v1  ;;  %v1448_v4 = vld [vmem:[%s2485_s1 + $0x18] sm:$0xff]   ;;  %v1449_v5 = vld [vmem:[%s2485_s1 + $0x20] sm:$0xff]   ;;  %v16_v6 = vld [vmem:[%s2486_s0 + $0x8] sm:$0xff] }
   0x3   :  { %810 = vmatprep.subr.bf16.mxu0 %v1585_v0  ;;  %1414 = vmatprep.subr.bf16.mxu1 %v1585_v0  ;;  %v18_v7 = vld [vmem:[%s2486_s0 + $0x18] sm:$0xff]  ;;  %v40_v8 = vld [vmem:[%s2486_s0 + $0xc8] sm:$0xff]  ;;  %v1451_v13 = vld [vmem:[%s2485_s1 + $0x30] sm:$0xff]  }
   0x4   :  { %v58_v9 = vpack.c.bf16 %v18_v7, %v16_v6  ;;  %v42_v10 = vld [vmem:[%s2486_s0 + $0xd8] sm:$0xff]  ;;  %v1450_v12 = vld [vmem:[%s2485_s1 + $0x28] sm:$0xff]   ;;  %v1453_v15 = vld [vmem:[%s2485_s1 + $0x40] sm:$0xff]  }
   0x5   :  { %v70_v11 = vpack.c.bf16 %v42_v10, %v40_v8  ;;  %v1452_v14 = vld [vmem:[%s2485_s1 + $0x38] sm:$0xff]   ;;  %v1454_v16 = vld [vmem:[%s2485_s1 + $0x48] sm:$0xff]   ;;  %v1455_v17 = vld [vmem:[%s2485_s1 + $0x50] sm:$0xff]  }
   0x6   :  { %811 = vmatpush1.bf16.msra.mxu0 %v1446_v2  ;;  %1428 = vmatpush1.bf16.msra.mxu1 %v1446_v2  ;;  %v1456_v18 = vld [vmem:[%s2485_s1 + $0x58] sm:$0xff]   ;;  %v1457_v19 = vld [vmem:[%s2485_s1 + $0x60] sm:$0xff]   ;;  %v1458_v20 = vld [vmem:[%s2485_s1 + $0x68] sm:$0xff]  }
   0x7   :  { %812 = vmatprep.subr.bf16.mxu0 %v1585_v0  ;;  %1415 = vmatprep.subr.bf16.mxu1 %v1585_v0  ;;  %v15_v21 = vld [vmem:[%s2486_s0] sm:$0xff]  ;;  %v17_v22 = vld [vmem:[%s2486_s0 + $0x10] sm:$0xff]  ;;  %v20_v25 = vld [vmem:[%s2486_s0 + $0x28] sm:$0xff] }
   0x8   :  { %1381 = vmatprep.mubr.msk.bf16.mxu0 %vm774_vm0, %v58_v9  ;;  %1387 = vmatprep.mubr.msk.bf16.mxu1 %vm774_vm0, %v70_v11  ;;  %v39_v23 = vld [vmem:[%s2486_s0 + $0xc0] sm:$0xff]  ;;  %v41_v24 = vld [vmem:[%s2486_s0 + $0xd0] sm:$0xff]  ;;  %v22_v26 = vld [vmem:[%s2486_s0 + $0x38] sm:$0xff]  ;;  %v57_v29 = vpack.c.bf16 %v17_v22, %v15_v21 }
   0x9   :  { %v44_v27 = vld [vmem:[%s2486_s0 + $0xe8] sm:$0xff]  ;;  %v46_v28 = vld [vmem:[%s2486_s0 + $0xf8] sm:$0xff]  ;;  %v69_v30 = vpack.c.bf16 %v41_v24, %v39_v23  ;;  %v60_v31 = vpack.c.bf16 %v22_v26, %v20_v25  ;;  %v19_v33 = vld [vmem:[%s2486_s0 + $0x20] sm:$0xff] }
   0xa   :  { %813 = vmatpush1.bf16.msra.mxu0 %v1447_v3  ;;  %1429 = vmatpush1.bf16.msra.mxu1 %v1447_v3  ;;  %v72_v32 = vpack.c.bf16 %v46_v28, %v44_v27  ;;  %v21_v34 = vld [vmem:[%s2486_s0 + $0x30] sm:$0xff]  ;;  %v43_v35 = vld [vmem:[%s2486_s0 + $0xe0] sm:$0xff]  ;;  %v24_v37 = vld [vmem:[%s2486_s0 + $0x48] sm:$0xff] }
   0xb   :  { %814 = vmatprep.subr.bf16.mxu0 %v1585_v0  ;;  %1416 = vmatprep.subr.bf16.mxu1 %v1585_v0  ;;  %v45_v36 = vld [vmem:[%s2486_s0 + $0xf0] sm:$0xff]  ;;  %v26_v38 = vld [vmem:[%s2486_s0 + $0x58] sm:$0xff]  ;;  %v48_v39 = vld [vmem:[%s2486_s0 + $0x108] sm:$0xff]  ;;  %v59_v41 = vpack.c.bf16 %v21_v34, %v19_v33 }
   0xc   :  { %v50_v40 = vld [vmem:[%s2486_s0 + $0x118] sm:$0xff]  ;;  %v71_v42 = vpack.c.bf16 %v45_v36, %v43_v35  ;;  %v62_v43 = vpack.c.bf16 %v26_v38, %v24_v37  ;;  %v23_v45 = vld [vmem:[%s2486_s0 + $0x40] sm:$0xff]  ;;  %v25_v46 = vld [vmem:[%s2486_s0 + $0x50] sm:$0xff] }
   0xd   :  { %v74_v44 = vpack.c.bf16 %v50_v40, %v48_v39  ;;  %v47_v47 = vld [vmem:[%s2486_s0 + $0x100] sm:$0xff]  ;;  %v49_v48 = vld [vmem:[%s2486_s0 + $0x110] sm:$0xff]  ;;  %v28_v49 = vld [vmem:[%s2486_s0 + $0x68] sm:$0xff]  ;;  %v61_v53 = vpack.c.bf16 %v25_v46, %v23_v45 }
   0xe   :  { %815 = vmatpush1.bf16.msra.mxu0 %v1448_v4  ;;  %1430 = vmatpush1.bf16.msra.mxu1 %v1448_v4  ;;  %v30_v50 = vld [vmem:[%s2486_s0 + $0x78] sm:$0xff]  ;;  %v52_v51 = vld [vmem:[%s2486_s0 + $0x128] sm:$0xff]  ;;  %v73_v54 = vpack.c.bf16 %v49_v48, %v47_v47  ;;  %v27_v57 = vld [vmem:[%s2486_s0 + $0x60] sm:$0xff] }
   0xf   :  { %816 = vmatprep.subr.bf16.mxu0 %v1585_v0  ;;  %1417 = vmatprep.subr.bf16.mxu1 %v1585_v0  ;;  %v54_v52 = vld [vmem:[%s2486_s0 + $0x138] sm:$0xff]  ;;  %v64_v55 = vpack.c.bf16 %v30_v50, %v28_v49  ;;  %v29_v58 = vld [vmem:[%s2486_s0 + $0x70] sm:$0xff]  ;;  %v51_v59 = vld [vmem:[%s2486_s0 + $0x120] sm:$0xff] }
  0x10   :  { %v76_v56 = vpack.c.bf16 %v54_v52, %v52_v51  ;;  %v53_v60 = vld [vmem:[%s2486_s0 + $0x130] sm:$0xff]  ;;  %v32_v61 = vld [vmem:[%s2486_s0 + $0x88] sm:$0xff]  ;;  %v34_v62 = vld [vmem:[%s2486_s0 + $0x98] sm:$0xff]  ;;  %v63_v1 = vpack.c.bf16 %v29_v58, %v27_v57 }
  0x11   :  { %v56_v63 = vld [vmem:[%s2486_s0 + $0x148] sm:$0xff]  ;;  %v75_v2 = vpack.c.bf16 %v53_v60, %v51_v59  ;;  %v66_v3 = vpack.c.bf16 %v34_v62, %v32_v61  ;;  %v33_v6 = vld [vmem:[%s2486_s0 + $0x90] sm:$0xff]  ;;  %v55_v7 = vld [vmem:[%s2486_s0 + $0x140] sm:$0xff] }
  0x12   :  { %817 = vmatpush1.bf16.msra.mxu0 %v1449_v5  ;;  %1431 = vmatpush1.bf16.msra.mxu1 %v1449_v5  ;;  %v78_v4 = vpack.c.bf16 %v56_v63, %v56_v63  ;;  %v31_v5 = vld [vmem:[%s2486_s0 + $0x80] sm:$0xff]  ;;  %v36_v8 = vld [vmem:[%s2486_s0 + $0xa8] sm:$0xff]  ;;  %v38_v9 = vld [vmem:[%s2486_s0 + $0xb8] sm:$0xff]  ;;  %v77_v11 = vpack.c.bf16 %v55_v7, %v55_v7 }
  0x13   :  { %818 = vmatprep.subr.bf16.mxu0 %v1585_v0  ;;  %1418 = vmatprep.subr.bf16.mxu1 %v1585_v0  ;;  %v65_v10 = vpack.c.bf16 %v33_v6, %v31_v5 }
  0x16   :  { %819 = vmatpush1.bf16.msra.mxu0 %v1450_v12  ;;  %1432 = vmatpush1.bf16.msra.mxu1 %v1450_v12  ;;  %v68_v12 = vpack.c.bf16 %v38_v9, %v36_v8 }
  0x17   :  { %820 = vmatprep.subr.bf16.mxu0 %v1585_v0  ;;  %1419 = vmatprep.subr.bf16.mxu1 %v1585_v0 }
  0x1a   :  { %821 = vmatpush1.bf16.msra.mxu0 %v1451_v13  ;;  %1433 = vmatpush1.bf16.msra.mxu1 %v1451_v13  ;;  %v35_v13 = vld [vmem:[%s2486_s0 + $0xa0] sm:$0xff] }
  0x1b   :  { %822 = vmatprep.subr.bf16.mxu0 %v1585_v0  ;;  %1420 = vmatprep.subr.bf16.mxu1 %v1585_v0 }
  0x1e   :  { %823 = vmatpush1.bf16.msra.mxu0 %v1452_v14  ;;  %1434 = vmatpush1.bf16.msra.mxu1 %v1452_v14  ;;  %v37_v14 = vld [vmem:[%s2486_s0 + $0xb0] sm:$0xff] }
  0x1f   :  { %824 = vmatprep.subr.bf16.mxu0 %v1585_v0  ;;  %1421 = vmatprep.subr.bf16.mxu1 %v1585_v0 }
  0x22   :  { %825 = vmatpush1.bf16.msra.mxu0 %v1453_v15  ;;  %1435 = vmatpush1.bf16.msra.mxu1 %v1453_v15  ;;  %v67_v15 = vpack.c.bf16 %v37_v14, %v35_v13 }
  0x23   :  { %826 = vmatprep.subr.bf16.mxu0 %v1585_v0  ;;  %1422 = vmatprep.subr.bf16.mxu1 %v1585_v0 }
  0x26   :  { %827 = vmatpush1.bf16.msra.mxu0 %v1454_v16  ;;  %1436 = vmatpush1.bf16.msra.mxu1 %v1454_v16  ;;  %v107_v16 = vlaneseq }
  0x27   :  { %828 = vmatprep.subr.bf16.mxu0 %v1585_v0  ;;  %1423 = vmatprep.subr.bf16.mxu1 %v1585_v0 }
  0x28   :  { %v1821_v22 = vand.u32 127, %v107_v16 }
  0x2a   :  { %829 = vmatpush1.bf16.msra.mxu0 %v1455_v17  ;;  %1437 = vmatpush1.bf16.msra.mxu1 %v1455_v17  ;;  %v1816_v17 = vshrl.u32 %v107_v16, 7  ;;  %vm952_vm1 = vcmp.eq.s32.totalorder %v1821_v22, 1  ;;  %vm930_vm2 = vcmp.eq.s32.totalorder %v1821_v22, 0  ;;  %vm1017_vm4 = vcmp.ge.s32.totalorder %v1821_v22, 2 }
  0x2b   :  { %830 = vmatprep.subr.bf16.mxu0 %v1585_v0  ;;  %1424 = vmatprep.subr.bf16.mxu1 %v1585_v0  ;;  %vm1018_vm5 = vcmp.lt.s32.totalorder %v1821_v22, 4  ;;  %vm1016_vm11 = vcmp.lt.s32.totalorder %v1821_v22, 2 }
  0x2c   :  { %v486_v21 = vshra.s32 %v1816_v17, 3  ;;  %v121_v25 = vadd.s32 104, %v1816_v17  ;;  %v110_v26 = vadd.s32 16, %v1816_v17  ;;  %v381_v27 = vand.u32 7, %v1816_v17  ;;  %vm1966_vm8 = vmand %vm1017_vm4, %vm1018_vm5 }
  0x2d   :  { %v122_v28 = vadd.s32 112, %v1816_v17  ;;  %v111_v39 = vadd.s32 24, %v1816_v17  ;;  %v112_v47 = vadd.s32 32, %v1816_v17  ;;  %v124_v61 = vadd.s32 128, %v1816_v17 }
  0x2e   :  { %831 = vmatpush1.bf16.msra.mxu0 %v1456_v18  ;;  %1438 = vmatpush1.bf16.msra.mxu1 %v1456_v18  ;;  %v120_v18 = vadd.s32 96, %v1816_v17  ;;  %v1353_v35 = vadd.s32 4294967212, %v121_v25  ;;  %v488_v36 = vshra.s32 %v110_v26, 3  ;;  %v931_v37 = vcvt.s32.f32 %v381_v27 }
  0x2f   :  { %832 = vmatprep.subr.bf16.mxu0 %v1585_v0  ;;  %1425 = vmatprep.subr.bf16.mxu1 %v1585_v0  ;;  %v1354_v38 = vadd.s32 4294967212, %v122_v28  ;;  %v383_v46 = vand.u32 7, %v110_v26  ;;  %v490_v60 = vshra.s32 %v112_v47, 3  ;;  %v385_v9 = vand.u32 7, %v112_v47 }
  0x30   :  { %v499_v49 = vshra.s32 %v1353_v35, 3  ;;  %v955_v50 = vcvt.s32.f32 %v488_v36 }
  0x31   :  { %v500_v52 = vshra.s32 %v1354_v38, 3  ;;  %v933_v59 = vcvt.s32.f32 %v383_v46  ;;  %v935_v25 = vcvt.s32.f32 %v385_v9 }
  0x32   :  { %833 = vmatpush1.bf16.msra.mxu0 %v1457_v19  ;;  %1439 = vmatpush1.bf16.msra.mxu1 %v1457_v19  ;;  %v109_v19 = vadd.s32 8, %v1816_v17  ;;  %v966_v62 = vcvt.s32.f32 %v499_v49  ;;  %v976_v63 = vsel %vm952_vm1, %v955_v50, 0.0 }
  0x33   :  { %834 = vmatprep.subr.bf16.mxu0 %v1585_v0  ;;  %1426 = vmatprep.subr.bf16.mxu1 %v1585_v0 }
  0x34   :  { %v487_v23 = vshra.s32 %v109_v19, 3  ;;  %v987_v14 = vsel %vm952_vm1, %v966_v62, 0.0  ;;  %v128_v62 = vadd.s32 160, %v1816_v17 }
  0x36   :  { %835 = vmatpush1.bf16.msra.mxu0 %v1458_v20  ;;  %1440 = vmatpush1.bf16.msra.mxu1 %v1458_v20  ;;  %v1352_v20 = vadd.s32 4294967212, %v120_v18  ;;  %v954_v33 = vcvt.s32.f32 %v487_v23 }
  0x38   :  { %v498_v24 = vshra.s32 %v1352_v20, 3  ;;  %v975_v45 = vsel %vm952_vm1, %v954_v33, 0.0 }
  0x39   :  { %841 = vmatmul.mubr.bf16.vlgmr.msra.gmra.mrb[0].mxu0 %v57_v29  ;;  %889 = vmatmul.mubr.bf16.vlgmr.msra.gmra.mrb[0].mxu1 %v69_v30  ;;  %v953_v29 = vcvt.s32.f32 %v486_v21  ;;  %v382_v30 = vand.u32 7, %v109_v19 }
  0x3a   :  { %1382 = vmatprep.mubr.msk.bf16.mxu0 %vm774_vm0, %v60_v31  ;;  %1388 = vmatprep.mubr.msk.bf16.mxu1 %vm774_vm0, %v72_v32  ;;  %v123_v31 = vadd.s32 120, %v1816_v17  ;;  %v393_v32 = vand.u32 7, %v1352_v20  ;;  %v965_v34 = vcvt.s32.f32 %v498_v24 }
  0x3b   :  { %v974_v40 = vsel %vm952_vm1, %v953_v29, 0.0 }
  0x3c   :  { %v986_v48 = vsel %vm952_vm1, %v965_v34, 0.0  ;;  %v1841_v51 = vsel %vm930_vm2, %v931_v37, %v974_v40  ;;  %v114_v34 = vadd.s32 48, %v1816_v17 }
  0x3e   :  { %v492_v50 = vshra.s32 %v114_v34, 3 }
  0x41   :  { %849 = vmatmul.mubr.bf16.gmra.mrb[4].mxu0 %v59_v41  ;;  %897 = vmatmul.mubr.bf16.gmra.mrb[4].mxu1 %v71_v42  ;;  %v932_v41 = vcvt.s32.f32 %v382_v30  ;;  %v1355_v42 = vadd.s32 4294967212, %v123_v31  ;;  %v127_v31 = vadd.s32 152, %v1816_v17 }
  0x42   :  { %1383 = vmatprep.mubr.msk.bf16.mxu0 %vm774_vm0, %v62_v43  ;;  %1389 = vmatprep.mubr.msk.bf16.mxu1 %vm774_vm0, %v74_v44  ;;  %v126_v43 = vadd.s32 144, %v1816_v17  ;;  %v943_v44 = vcvt.s32.f32 %v393_v32 }
  0x43   :  { %v396_v6 = vand.u32 7, %v1355_v42  ;;  %v1359_v47 = vadd.s32 4294967212, %v127_v31  ;;  %v117_v31 = vadd.s32 72, %v1816_v17 }
  0x44   :  { %v1847_v57 = vadd.s32 4294967212, %v126_v43  ;;  %v1851_v58 = vsel %vm930_vm2, %v943_v44, %v986_v48 }
  0x45   :  { %v946_v23 = vcvt.s32.f32 %v396_v6 }
  0x46   :  { %vm210_vm3 = vcmp.ge.s32.totalorder %v1847_v57, 64 }
  0x47   :  { %v294_v13 = vsel %vm210_vm3, 64, %v1585_v0 }
  0x48   :  { %v336_v27 = vsub.s32 %v1847_v57, %v294_v13 }
  0x49   :  { %857 = vmatmul.mubr.bf16.gmra.mrb[8].mxu0 %v61_v53  ;;  %905 = vmatmul.mubr.bf16.gmra.mrb[8].mxu1 %v73_v54  ;;  %v489_v53 = vshra.s32 %v111_v39, 3  ;;  %v1845_v54 = vsel %vm930_vm2, %v932_v41, %v975_v45 }
  0x4a   :  { %1384 = vmatprep.mubr.msk.bf16.mxu0 %vm774_vm0, %v64_v55  ;;  %1390 = vmatprep.mubr.msk.bf16.mxu1 %vm774_vm0, %v76_v56  ;;  %v394_v55 = vand.u32 7, %v1353_v35  ;;  %v501_v56 = vshra.s32 %v1355_v42, 3  ;;  %v116_v35 = vadd.s32 64, %v1816_v17  ;;  %v483_v42 = vshra.s32 %v336_v27, 2 }
  0x4b   :  { %v956_v5 = vcvt.s32.f32 %v489_v53  ;;  %v504_v43 = vshra.s32 %v336_v27, 3  ;;  %v387_v53 = vand.u32 7, %v114_v34 }
  0x4c   :  { %v944_v7 = vcvt.s32.f32 %v394_v55  ;;  %v968_v8 = vcvt.s32.f32 %v501_v56  ;;  %v378_v55 = vand.u32 3, %v336_v27  ;;  %v399_v56 = vand.u32 7, %v336_v27 }
  0x4d   :  { %v977_v21 = vsel %vm952_vm1, %v956_v5, 0.0  ;;  %v1363_v5 = vadd.s32 4294967232, %v1359_v47 }
  0x4e   :  { %v989_v24 = vsel %vm952_vm1, %v968_v8, 0.0  ;;  %v1880_v32 = vsel %vm930_vm2, %v944_v7, %v987_v14  ;;  %v959_v7 = vcvt.s32.f32 %v492_v50 }
  0x4f   :  { %v379_v34 = vand.u32 3, %v1363_v5 }
  0x51   :  { %865 = vmatmul.mubr.bf16.gmra.mrb[12].mxu0 %v63_v1  ;;  %913 = vmatmul.mubr.bf16.gmra.mrb[12].mxu1 %v75_v2  ;;  %v384_v1 = vand.u32 7, %v111_v39  ;;  %v113_v2 = vadd.s32 40, %v1816_v17  ;;  %v115_v39 = vadd.s32 56, %v1816_v17 }
  0x52   :  { %1385 = vmatprep.mubr.msk.bf16.mxu0 %vm774_vm0, %v66_v3  ;;  %1391 = vmatprep.mubr.msk.bf16.mxu1 %vm774_vm0, %v78_v4  ;;  %v395_v3 = vand.u32 7, %v1354_v38  ;;  %v967_v4 = vcvt.s32.f32 %v500_v52  ;;  %v1894_v38 = vsel %vm930_vm2, %v946_v23, %v989_v24  ;;  %v1361_v52 = vadd.s32 4294967232, %v116_v35 }
  0x53   :  { %v934_v16 = vcvt.s32.f32 %v384_v1  ;;  %v491_v18 = vshra.s32 %v113_v2, 3  ;;  %v386_v26 = vand.u32 7, %v113_v2  ;;  %v388_v8 = vand.u32 7, %v115_v39 }
  0x54   :  { %v945_v19 = vcvt.s32.f32 %v395_v3  ;;  %v988_v20 = vsel %vm952_vm1, %v967_v4, 0.0  ;;  %v1918_v4 = vld [vmem:[%s2487_s2 + $0x1] ss:$0 sm:$0xff]  ;;  %v473_v9 = vshra.s32 %v1361_v52, 2  ;;  %v484_v23 = vshra.s32 %v1363_v5, 2 }
  0x55   :  { %v958_v33 = vcvt.s32.f32 %v491_v18  ;;  %v1890_v37 = vsel %vm930_vm2, %v934_v16, %v977_v21  ;;  %v936_v45 = vcvt.s32.f32 %v386_v26  ;;  %v368_v24 = vand.u32 3, %v1361_v52 }
  0x56   :  { %v1886_v36 = vsel %vm930_vm2, %v945_v19, %v988_v20  ;;  %v1937_v19 = vadd.s32 4294967212, %v128_v62  ;;  %v938_v26 = vcvt.s32.f32 %v388_v8  ;;  %v961_v27 = vcvt.s32.f32 %v473_v9 }
  0x57   :  { %v979_v48 = vsel %vm952_vm1, %v958_v33, 0.0 }
  0x58   :  { %v1913_v2 = vsel %vm930_vm2, %v936_v45, %v979_v48  ;;  %2491 = vst [vmem:[#allocation2_spill] sm:$0xff] %v1937_v19  ;;  %vm233_vm7 = vcmp.ge.s32.totalorder %v1937_v19, 80  ;;  %v982_v52 = vsel %vm952_vm1, %v961_v27, 0.0 }
  0x59   :  { %873 = vmatmul.mubr.bf16.gmra.mrb[16].mxu0 %v65_v10  ;;  %921 = vmatmul.mubr.bf16.gmra.mrb[16].mxu1 %v77_v11  ;;  %v957_v10 = vcvt.s32.f32 %v490_v60  ;;  %v1356_v11 = vadd.s32 4294967212, %v124_v61  ;;  %v525_v61 = vsel %vm210_vm3, %v483_v42, %v504_v43  ;;  %v1586_v42 = vmov 64  }
  0x5a   :  { %1386 = vmatprep.mubr.msk.bf16.mxu0 %vm774_vm0, %v68_v12  ;;  %v125_v12 = vadd.s32 136, %v1816_v17  ;;  %v971_v13 = vcvt.s32.f32 %v525_v61  ;;  %v317_v43 = vsel %vm233_vm7, 80, %v1586_v42 }
  0x5b   :  { %v978_v28 = vsel %vm952_vm1, %v957_v10, 0.0  ;;  %v502_v29 = vshra.s32 %v1356_v11, 3  ;;  %v397_v41 = vand.u32 7, %v1356_v11  ;;  %v1923_v10 = vld [vmem:[%s2487_s2] ss:$0 sm:$0xff]  ;;  %v937_v11 = vcvt.s32.f32 %v387_v53 }
  0x5c   :  { %v1357_v30 = vadd.s32 4294967212, %v125_v12  ;;  %v1899_v40 = vsel %vm930_vm2, %v935_v25, %v978_v28  ;;  %v420_v12 = vsel %vm210_vm3, %v378_v55, %v399_v56  ;;  %v1935_v18 = vsel %vm210_vm3, %v1918_v4, %v1923_v10 }
  0x5d   :  { %v969_v44 = vcvt.s32.f32 %v502_v29  ;;  %v947_v60 = vcvt.s32.f32 %v397_v41  ;;  %v949_v25 = vcvt.s32.f32 %v420_v12  ;;  %v980_v28 = vsel %vm952_vm1, %v959_v7, 0.0 }
  0x5e   :  { %v503_v46 = vshra.s32 %v1357_v30, 3  ;;  %v398_v49 = vand.u32 7, %v1357_v30  ;;  %v992_v29 = vsel %vm952_vm1, %v971_v13, 0.0  ;;  %v939_v41 = vcvt.s32.f32 %v368_v24 }
  0x5f   :  { %v990_v1 = vsel %vm952_vm1, %v969_v44, 0.0  ;;  %v1960_v44 = vld [vmem:[%s2487_s2 + $0x2] ss:$0 sm:$0xff]  ;;  %v1972_v48 = vsel %vm930_vm2, %v937_v11, %v980_v28  ;;  %v338_v5 = vsub.s32 %v1937_v19, %v317_v43 }
  0x60   :  { %v970_v3 = vcvt.s32.f32 %v503_v46  ;;  %v948_v6 = vcvt.s32.f32 %v398_v49  ;;  %v1929_v16 = vsel %vm930_vm2, %v947_v60, %v990_v1  ;;  %v1976_v49 = vsel %vm930_vm2, %v949_v25, %v992_v29 }
  0x61   :  { %881 = vmatmul.mubr.bf16.gmra.mrb[20].mxu0 %v67_v15  ;;  %v1866_v15 = vsel %vm930_vm2, %v933_v59, %v976_v63  ;;  %v493_v59 = vshra.s32 %v115_v39, 3  ;;  %v118_v63 = vadd.s32 80, %v1816_v17  ;;  %v972_v39 = vcvt.s32.f32 %v484_v23 }
  0x62   :  { %v991_v21 = vsel %vm952_vm1, %v970_v3, 0.0  ;;  %v1362_v60 = vadd.s32 4294967232, %v117_v31  ;;  %v950_v3 = vcvt.s32.f32 %v379_v34  ;;  %v2011_v12 = vsel %vm930_vm2, %v939_v41, %v982_v52 }
  0x63   :  { %v960_v14 = vcvt.s32.f32 %v493_v59  ;;  %v1350_v20 = vadd.s32 4294967212, %v118_v63  ;;  %vm139_vm6 = vcmp.ge.s32.totalorder %v118_v63, 84  ;;  %v1950_v33 = vsel %vm930_vm2, %v948_v6, %v991_v21  ;;  %2494 = vst [vmem:[#allocation3_spill] sm:$0xff] %v2011_v12 }
  0x64   :  { %v2001_v6 = vsel %vm233_vm7, %v1960_v44, %v1918_v4  ;;  %v993_v57 = vsel %vm952_vm1, %v972_v39, 0.0  ;;  %v369_v24 = vand.u32 3, %v1362_v60  ;;  %v464_v27 = vshra.s32 %v338_v5, 1 }
  0x65   :  { %v981_v30 = vsel %vm952_vm1, %v960_v14, 0.0  ;;  %v1953_v35 = vsel %vm139_vm6, %v1350_v20, %v118_v63  ;;  %v2489_v63 = vmov 4.0   ;;  %v474_v28 = vshra.s32 %v1362_v60, 2 }
  0x66   :  { %v1980_v50 = vsel %vm930_vm2, %v938_v26, %v981_v30  ;;  %vm202_vm9 = vcmp.ge.s32.totalorder %v1953_v35, 64  ;;  %v1994_v1 = vsel %vm210_vm3, 8.0, %v2489_v63  ;;  %vm223_vm10 = vcmp.ge.s32.totalorder %v1953_v35, 80 }
  0x67   :  { %v286_v20 = vsel %vm202_vm9, 64, %v1585_v0  ;;  %v485_v30 = vshra.s32 %v338_v5, 2  ;;  %v119_v31 = vadd.s32 88, %v1816_v17  ;;  %v2036_v43 = vsel %vm930_vm2, %v950_v3, %v993_v57 }
  0x68   :  { %v307_v0 = vsel %vm223_vm10, 80, %v286_v20  ;;  %v380_v3 = vand.u32 3, %v338_v5  ;;  %v2051_v57 = vcvt.s32.f32 %v369_v24 }
  0x6a   :  { %2495 = vst [vmem:[#allocation4_spill] sm:$0xff] %v2051_v57 }
 0x10c   :  { %v842_v45 = vpop.f32.mrb[0].mxu0  ;;  %v890_v47 = vpop.f32.mrb[0].mxu1 }
 0x10d   :  { %v1985_v53 = vadd.f32 %v1923_v10, %v842_v45  ;;  %v1988_v55 = vadd.f32 %v1923_v10, %v890_v47  ;;  %v844_v56 = vpop.f32.mrb[1].mxu0  ;;  %v892_v59 = vpop.f32.mrb[1].mxu1 }
 0x10e   :  { %v845_v61 = vpop.f32.mrb[2].mxu0  ;;  %v893_v62 = vpop.f32.mrb[2].mxu1  ;;  %v359_v59 = vand.u32 1, %v338_v5 }
 0x10f   :  { %v1062_v7 = vsel %vm1966_vm8, %v1985_v53, 0.0  ;;  %v1392_v8 = vmul.f32 -1.442695, %v1985_v53  ;;  %v847_v9 = vpop.f32.mrb[3].mxu0  ;;  %v895_v11 = vpop.f32.mrb[3].mxu1  ;;  %v2015_v14 = vadd.f32 %v1923_v10, %v845_v61  ;;  %v1074_v23 = vsel %vm1966_vm8, %v1988_v55, 0.0 }
 0x110   :  { %v1404_v13 = vmul.f32 -1.442695, %v1988_v55  ;;  %v1083_v21 = vmul.f32 1.442695, %v1062_v7  ;;  %v2029_v29 = vadd.f32 %v1923_v10, %v893_v62  ;;  %v1107_v34 = vmul.f32 1.442695, %v1074_v23 }
 0x111   :  { %1459 = vpow2.f32 %v1392_v8  ;;  %v1063_v25 = vsel %vm1966_vm8, %v2015_v14, 0.0  ;;  %v1393_v26 = vmul.f32 -1.442695, %v2015_v14  ;;  %v2063_v24 = vsel %vm233_vm7, %v359_v59, %v380_v3 }
 0x112   :  { %1461 = vpow2.f32 %v1404_v13  ;;  %v1085_v39 = vmul.f32 1.442695, %v1063_v25  ;;  %v1075_v45 = vsel %vm1966_vm8, %v2029_v29, 0.0  ;;  %v1405_v47 = vmul.f32 -1.442695, %v2029_v29 }
 0x113   :  { %1463 = vpow2.f32 %v1083_v21  ;;  %v1109_v7 = vmul.f32 1.442695, %v1075_v45  ;;  %v962_v21 = vcvt.s32.f32 %v474_v28 }
 0x114   :  { %v850_v41 = vpop.f32.mrb[4].mxu0  ;;  %v898_v42 = vpop.f32.mrb[4].mxu1  ;;  %1465 = vpow2.f32 %v1393_v26  ;;  %v2067_v26 = vsel %vm233_vm7, %v464_v27, %v485_v30 }
 0x115   :  { %v852_v52 = vpop.f32.mrb[5].mxu0  ;;  %v900_v56 = vpop.f32.mrb[5].mxu1  ;;  %v2043_v17 = vadd.f32 %v1923_v10, %v850_v41  ;;  %v2046_v60 = vadd.f32 %v1923_v10, %v898_v42  ;;  %1467 = vpow2.f32 %v1405_v47  ;;  %v2075_v42 = vadd.s32 4294967212, %v119_v31 }
 0x116   :  { %v853_v61 = vpop.f32.mrb[6].mxu0  ;;  %v901_v62 = vpop.f32.mrb[6].mxu1  ;;  %1469 = vpow2.f32 %v1107_v34  ;;  %v2070_v34 = vsub.s32 %v1953_v35, %v307_v0  ;;  %v2085_v31 = vsel %vm952_vm1, %v962_v21, 0.0 }
 0x117   :  { %v2049_v8 = vadd.f32 %v1923_v10, %v853_v61  ;;  %v855_v9 = vpop.f32.mrb[7].mxu0  ;;  %v903_v11 = vpop.f32.mrb[7].mxu1  ;;  %v1064_v13 = vsel %vm1966_vm8, %v2043_v17, 0.0  ;;  %v1394_v20 = vmul.f32 -1.442695, %v2043_v17  ;;  %1471 = vpow2.f32 %v1085_v39  ;;  %2496 = vst [vmem:[#allocation5_spill] sm:$0xff] %v2085_v31 }
 0x118   :  { %v1087_v23 = vmul.f32 1.442695, %v1064_v13  ;;  %v1076_v5 = vsel %vm1966_vm8, %v2046_v60, 0.0  ;;  %v1406_v25 = vmul.f32 -1.442695, %v2046_v60  ;;  %v2079_v52 = vadd.f32 %v1923_v10, %v901_v62 }
 0x119   :  { %1473 = vpow2.f32 %v1394_v20  ;;  %v1111_v39 = vmul.f32 1.442695, %v1076_v5  ;;  %v1065_v41 = vsel %vm1966_vm8, %v2049_v8, 0.0  ;;  %v1395_v47 = vmul.f32 -1.442695, %v2049_v8 }
 0x11a   :  { %1475 = vpow2.f32 %v1109_v7  ;;  %v1089_v7 = vmul.f32 1.442695, %v1065_v41  ;;  %v1077_v62 = vsel %vm1966_vm8, %v2079_v52, 0.0  ;;  %v1020_v20 = vadd.f32 %v1841_v51, %v1985_v53 }
 0x11b   :  { %v1460_v28 = vpop.eup %1459  ;;  %1477 = vpow2.f32 %v1087_v23  ;;  %v1032_v41 = vadd.f32 %v1851_v58, %v1988_v55 }
 0x11c   :  { %v1209_v45 = vadd.f32 1.0, %v1460_v28  ;;  %v858_v27 = vpop.f32.mrb[8].mxu0  ;;  %v906_v30 = vpop.f32.mrb[8].mxu1  ;;  %1479 = vpow2.f32 %v1406_v25 }
 0x11d   :  { %v860_v0 = vpop.f32.mrb[9].mxu0  ;;  %v908_v56 = vpop.f32.mrb[9].mxu1  ;;  %v2095_v21 = vadd.f32 %v1923_v10, %v858_v27  ;;  %v1113_v27 = vmul.f32 1.442695, %v1077_v62 }
 0x11e   :  { %v1462_v3 = vpop.eup %1461  ;;  %1481 = vrcp.f32 %v1209_v45  ;;  %v861_v9 = vpop.f32.mrb[10].mxu0  ;;  %v1021_v45 = vadd.f32 %v1845_v54, %v2015_v14  ;;  %v1033_v0 = vadd.f32 %v1880_v32, %v2029_v29  ;;  %v1407_v56 = vmul.f32 -1.442695, %v2079_v52 }
 0x11f   :  { %v1464_v13 = vpop.eup %1463  ;;  %v1221_v23 = vadd.f32 1.0, %v1462_v3  ;;  %1483 = vpow2.f32 %v1111_v39  ;;  %v909_v5 = vpop.f32.mrb[10].mxu1  ;;  %v1066_v58 = vsel %vm1966_vm8, %v2095_v21, 0.0  ;;  %v2108_v54 = vadd.f32 %v1923_v10, %v906_v30 }
 0x120   :  { %v863_v25 = vpop.f32.mrb[11].mxu0  ;;  %v1466_v28 = vpop.eup %1465  ;;  %1485 = vpow2.f32 %v1395_v47  ;;  %v1041_v32 = vmul.f32 4.0, %v1020_v20  ;;  %v2115_v29 = vsel %vm202_vm9, %v1918_v4, %v1923_v10  ;;  %v2122_v62 = vadd.f32 %v1923_v10, %v861_v9 }
 0x121   :  { %v911_v51 = vpop.f32.mrb[11].mxu1  ;;  %v1468_v53 = vpop.eup %1467  ;;  %1487 = vrcp.f32 %v1221_v23  ;;  %v1210_v39 = vadd.f32 1.0, %v1466_v28  ;;  %v1078_v30 = vsel %vm1966_vm8, %v2108_v54, 0.0  ;;  %v1125_v14 = vmul.f32 4.0, %v1464_v13 }
 0x122   :  { %v1470_v3 = vpop.eup %1469  ;;  %v1222_v25 = vadd.f32 1.0, %v1468_v53  ;;  %1489 = vpow2.f32 %v1089_v7  ;;  %v1396_v7 = vmul.f32 -1.442695, %v2095_v21  ;;  %v1053_v51 = vmul.f32 4.0, %v1032_v41 }
 0x123   :  { %v1472_v55 = vpop.eup %1471  ;;  %1491 = vrcp.f32 %v1210_v39  ;;  %v1091_v39 = vmul.f32 1.442695, %v1066_v58  ;;  %v1042_v59 = vmul.f32 4.0, %v1021_v45  ;;  %v2126_v61 = vmul.f32 4.0, %v1033_v0 }
 0x124   :  { %v1474_v47 = vpop.eup %1473  ;;  %1493 = vrcp.f32 %v1222_v25  ;;  %v866_v20 = vpop.f32.mrb[12].mxu0  ;;  %v1137_v31 = vmul.f32 4.0, %v1470_v3  ;;  %v1115_v12 = vmul.f32 1.442695, %v1078_v30  ;;  %v1408_v41 = vmul.f32 -1.442695, %v2108_v54 }
 0x125   :  { %v2124_v23 = vpop.f32.mrb[12].mxu1  ;;  %v1476_v28 = vpop.eup %1475  ;;  %v1211_v53 = vadd.f32 1.0, %v1474_v47  ;;  %1495 = vpow2.f32 %v1407_v56  ;;  %v2137_v13 = vadd.f32 %v1923_v10, %v909_v5  ;;  %v1022_v3 = vadd.f32 %v1866_v15, %v2043_v17 }
 0x126   :  { %v868_v63 = vpop.f32.mrb[13].mxu0  ;;  %v916_v11 = vpop.f32.mrb[13].mxu1  ;;  %1497 = vpow2.f32 %v1113_v27  ;;  %v2145_v47 = vadd.f32 %v1886_v36, %v2046_v60  ;;  %v1397_v5 = vmul.f32 -1.442695, %v2122_v62  ;;  %v2151_v30 = vadd.f32 %v1923_v10, %v866_v20 }
 0x127   :  { %v1478_v25 = vpop.eup %1477  ;;  %v2128_v19 = vpop.f32.mrb[14].mxu0  ;;  %1499 = vrcp.f32 %v1211_v53  ;;  %v1067_v11 = vsel %vm1966_vm8, %v2122_v62, 0.0  ;;  %v1126_v15 = vmul.f32 4.0, %v1472_v55  ;;  %v1409_v20 = vmul.f32 -1.442695, %v2137_v13 }
 0x128   :  { %v2130_v9 = vpop.f32.mrb[14].mxu1  ;;  %v1480_v57 = vpop.eup %1479  ;;  %1501 = vpow2.f32 %v1396_v7  ;;  %v1093_v17 = vmul.f32 1.442695, %v1067_v11 }
 0x129   :  { %v871_v56 = vpop.f32.mrb[15].mxu0  ;;  %v1482_v58 = vpop.eup %1481  ;;  %v1223_v63 = vadd.f32 1.0, %v1480_v57  ;;  %1503 = vpow2.f32 %v1091_v39 }
 0x12a   :  { %v919_v45 = vpop.f32.mrb[15].mxu1  ;;  %v1484_v0 = vpop.eup %1483  ;;  %v1272_v27 = vsel %vm1966_vm8, %v1125_v14, %v1482_v58  ;;  %v1079_v14 = vsel %vm1966_vm8, %v2137_v13, 0.0 }
 0x12b   :  { %v1486_v57 = vpop.eup %1485  ;;  %v1293_v7 = vsel %vm1016_vm11, %v1041_v32, %v1272_v27  ;;  %1505 = vrcp.f32 %v1223_v63  ;;  %v1127_v63 = vmul.f32 4.0, %v1478_v25  ;;  %v1398_v27 = vmul.f32 -1.442695, %v2151_v30 }
 0x12c   :  { %v1488_v53 = vpop.eup %1487  ;;  %1315 = vst.msk [vmem:[%s2488_s3] sm:$0xff] %vm1314_vm12, %v1293_v7  ;;  %v1212_v36 = vadd.f32 1.0, %v1486_v57  ;;  %1507 = vpow2.f32 %v1408_v41  ;;  %v2163_v39 = vpop.f32.mrb[16].mxu0  ;;  %v1138_v41 = vmul.f32 4.0, %v1476_v28 }
 0x12d   :  { %v1490_v60 = vpop.eup %1489  ;;  %v1284_v32 = vsel %vm1966_vm8, %v1137_v31, %v1488_v53  ;;  %1509 = vpow2.f32 %v1115_v12  ;;  %v2165_v56 = vpop.f32.mrb[16].mxu1 }
 0x12e   :  { %v1492_v58 = vpop.eup %1491  ;;  %v1305_v55 = vsel %vm1016_vm11, %v1053_v51, %v1284_v32  ;;  %1511 = vrcp.f32 %v1212_v36  ;;  %v876_v11 = vpop.f32.mrb[17].mxu0  ;;  %v2178_v51 = vadd.f32 %v2124_v23, %v1935_v18  ;;  %v1117_v36 = vmul.f32 1.442695, %v1079_v14 }
 0x12f   :  { %v924_v31 = vpop.f32.mrb[17].mxu1  ;;  %v1494_v12 = vpop.eup %1493  ;;  %1327 = vst.msk [vmem:[%s2488_s3 + $0x60] sm:$0xff] %vm1314_vm12, %v1305_v55  ;;  %v1273_v45 = vsel %vm1966_vm8, %v1126_v15, %v1492_v58  ;;  %1513 = vpow2.f32 %v1397_v5  ;;  %v1043_v14 = vmul.f32 4.0, %v1022_v3  ;;  %v1139_v58 = vmul.f32 4.0, %v1484_v0 }
 0x130   :  { %v2180_v28 = vpop.f32.mrb[18].mxu0  ;;  %v925_v25 = vpop.f32.mrb[18].mxu1  ;;  %v1294_v7 = vsel %vm1016_vm11, %v1042_v59, %v1273_v45  ;;  %v1285_v53 = vsel %vm1966_vm8, %v1138_v41, %v1494_v12  ;;  %1515 = vpow2.f32 %v1093_v17  ;;  %v1068_v59 = vsel %vm1966_vm8, %v2151_v30, 0.0 }
 0x131   :  { %v1496_v57 = vpop.eup %1495  ;;  %v879_v15 = vpop.f32.mrb[19].mxu0  ;;  %1316 = vst.msk [vmem:[%s2488_s3 + $0x8] sm:$0xff] %vm1314_vm12, %v1294_v7  ;;  %v1306_v18 = vsel %vm1016_vm11, %v2126_v61, %v1285_v53  ;;  %1517 = vpow2.f32 %v1409_v20  ;;  %v2204_v55 = vadd.f32 %v1923_v10, %v2128_v19  ;;  %v1023_v41 = vadd.f32 %v1890_v37, %v2049_v8 }
 0x132   :  { %v926_v5 = vpop.f32.mrb[19].mxu1  ;;  %v2186_v32 = vpop.eup %1497  ;;  %v1224_v23 = vadd.f32 1.0, %v1496_v57  ;;  %1328 = vst.msk [vmem:[%s2488_s3 + $0x68] sm:$0xff] %vm1314_vm12, %v1306_v18  ;;  %1519 = vpow2.f32 %v1398_v27  ;;  %v1410_v11 = vmul.f32 -1.442695, %v2178_v51  ;;  %v1080_v19 = vsel %vm1966_vm8, %v2178_v51, 0.0 }
 0x133   :  { %v1500_v17 = vpop.eup %1499  ;;  %v1095_v12 = vmul.f32 1.442695, %v1068_v59  ;;  %v1055_v37 = vmul.f32 4.0, %v2145_v47  ;;  %v1035_v8 = vadd.f32 %v1894_v38, %v2079_v52  ;;  %v1128_v7 = vmul.f32 4.0, %v1490_v60 }
 0x134   :  { %v1502_v61 = vpop.eup %1501  ;;  %v1274_v20 = vsel %vm1966_vm8, %v1127_v63, %v1500_v17  ;;  %1521 = vrcp.f32 %v1224_v23  ;;  %v1024_v63 = vadd.f32 %v1899_v40, %v2095_v21  ;;  %v2227_v27 = vpop.f32.mrb[20].mxu0  ;;  %v1399_v53 = vmul.f32 -1.442695, %v2204_v55 }
 0x135   :  { %v2211_v31 = vpop.eup %1503  ;;  %v1295_v0 = vsel %vm1016_vm11, %v1043_v14, %v1274_v20  ;;  %v1213_v3 = vadd.f32 1.0, %v1502_v61  ;;  %1523 = vpow2.f32 %v1117_v36  ;;  %v884_v15 = vpop.f32.mrb[21].mxu0  ;;  %v1119_v52 = vmul.f32 1.442695, %v1080_v19 }
 0x136   :  { %v1506_v45 = vpop.eup %1505  ;;  %1317 = vst.msk [vmem:[%s2488_s3 + $0x10] sm:$0xff] %vm1314_vm12, %v1295_v0  ;;  %v2234_v40 = vpop.f32.mrb[22].mxu0  ;;  %v1044_v60 = vmul.f32 4.0, %v1023_v41  ;;  %v2242_v36 = vadd.f32 %v1918_v4, %v2130_v9  ;;  %v496_v18 = vshra.s32 %v2070_v34, 3  ;;  %v1069_v14 = vsel %vm1966_vm8, %v2204_v55, 0.0 }
 0x137   :  { %v1508_v25 = vpop.eup %1507  ;;  %v1286_v57 = vsel %vm1966_vm8, %v1139_v58, %v1506_v45  ;;  %1525 = vrcp.f32 %v1213_v3  ;;  %v887_v23 = vpop.f32.mrb[23].mxu0  ;;  %v679_v58 = vsel %vm223_vm10, %v1960_v44, %v2115_v29  ;;  %v2258_v41 = vadd.f32 %v1918_v4, %v2163_v39 }
 0x138   :  { %v1510_v5 = vpop.eup %1509  ;;  %v1307_v47 = vsel %vm1016_vm11, %v1055_v37, %v1286_v57  ;;  %v1225_v38 = vadd.f32 1.0, %v1508_v25  ;;  %1527 = vpow2.f32 %v1410_v11  ;;  %v1056_v0 = vmul.f32 4.0, %v1035_v8 }
 0x139   :  { %v1512_v21 = vpop.eup %1511  ;;  %1329 = vst.msk [vmem:[%s2488_s3 + $0x70] sm:$0xff] %vm1314_vm12, %v1307_v47  ;;  %1529 = vpow2.f32 %v1095_v12  ;;  %v1045_v3 = vmul.f32 4.0, %v1024_v63  ;;  %v1411_v44 = vmul.f32 -1.442695, %v2242_v36  ;;  %v1140_v12 = vmul.f32 4.0, %v2186_v32 }
 0x13a   :  { %v1514_v59 = vpop.eup %1513  ;;  %v1275_v17 = vsel %vm1966_vm8, %v1128_v7, %v1512_v21  ;;  %1531 = vrcp.f32 %v1225_v38  ;;  %v1036_v19 = vadd.f32 %v1929_v16, %v2108_v54  ;;  %v1097_v25 = vmul.f32 1.442695, %v1069_v14 }
 0x13b   :  { %v1516_v61 = vpop.eup %1515  ;;  %v1296_v9 = vsel %vm1016_vm11, %v1044_v60, %v1275_v17  ;;  %v1214_v20 = vadd.f32 1.0, %v1514_v59  ;;  %1533 = vpow2.f32 %v1399_v53  ;;  %v2270_v57 = vadd.f32 %v2165_v56, %v2001_v6 }
 0x13c   :  { %v1518_v11 = vpop.eup %1517  ;;  %1318 = vst.msk [vmem:[%s2488_s3 + $0x18] sm:$0xff] %vm1314_vm12, %v1296_v9  ;;  %1535 = vpow2.f32 %v1119_v52  ;;  %v1025_v63 = vadd.f32 %v1913_v2, %v2122_v62  ;;  %v1400_v32 = vmul.f32 -1.442695, %v2258_v41  ;;  %v1129_v7 = vmul.f32 4.0, %v2211_v31 }
 0x13d   :  { %v1520_v29 = vpop.eup %1519  ;;  %1537 = vrcp.f32 %v1214_v20  ;;  %v1226_v39 = vadd.f32 1.0, %v1518_v11  ;;  %v1081_v6 = vsel %vm1966_vm8, %v2242_v36, 0.0  ;;  %v1141_v2 = vmul.f32 4.0, %v1510_v5 }
 0x13e   :  { %v1522_v45 = vpop.eup %1521  ;;  %v1215_v37 = vadd.f32 1.0, %v1520_v29  ;;  %1539 = vpow2.f32 %v1411_v44  ;;  %v1037_v62 = vadd.f32 %v1950_v33, %v2137_v13  ;;  %v1070_v53 = vsel %vm1966_vm8, %v2258_v41, 0.0 }
 0x13f   :  { %v1287_v8 = vsel %vm1966_vm8, %v1140_v12, %v1522_v45  ;;  %1541 = vrcp.f32 %v1226_v39  ;;  %v1524_v16 = vpop.eup %1523  ;;  %v2294_v31 = vadd.f32 %v1918_v4, %v2180_v28  ;;  %v1026_v38 = vadd.f32 %v1972_v48, %v2151_v30 }
 0x140   :  { %v1308_v54 = vsel %vm1016_vm11, %v1056_v0, %v1287_v8  ;;  %1543 = vrcp.f32 %v1215_v37  ;;  %v1412_v5 = vmul.f32 -1.442695, %v2270_v57  ;;  %v1121_v21 = vmul.f32 1.442695, %v1081_v6 }
 0x141   :  { %v1526_v56 = vpop.eup %1525  ;;  %1330 = vst.msk [vmem:[%s2488_s3 + $0x78] sm:$0xff] %vm1314_vm12, %v1308_v54  ;;  %1545 = vpow2.f32 %v1097_v25  ;;  %v1057_v4 = vmul.f32 4.0, %v1036_v19  ;;  %v1046_v28 = vmul.f32 4.0, %v1025_v63  ;;  %v1130_v23 = vmul.f32 4.0, %v1516_v61 }
 0x142   :  { %v1528_v15 = vpop.eup %1527  ;;  %v1276_v47 = vsel %vm1966_vm8, %v1129_v7, %v1526_v56  ;;  %1547 = vpow2.f32 %v1400_v32  ;;  %v1099_v48 = vmul.f32 1.442695, %v1070_v53  ;;  %v1082_v17 = vsel %vm1966_vm8, %v2270_v57, 0.0 }
 0x143   :  { %v1530_v52 = vpop.eup %1529  ;;  %v1297_v33 = vsel %vm1016_vm11, %v1045_v3, %v1276_v47  ;;  %v1227_v13 = vadd.f32 1.0, %v1528_v15  ;;  %v1401_v14 = vmul.f32 -1.442695, %v2294_v31  ;;  %v2316_v61 = vadd.f32 %v2227_v27, %v679_v58 }
 0x144   :  { %v1532_v60 = vpop.eup %1531  ;;  %1319 = vst.msk [vmem:[%s2488_s3 + $0x20] sm:$0xff] %vm1314_vm12, %v1297_v33  ;;  %v1058_v3 = vmul.f32 4.0, %v1037_v62  ;;  %v1142_v44 = vmul.f32 4.0, %v1524_v16  ;;  %v1047_v29 = vmul.f32 4.0, %v1026_v38  ;;  %v1131_v39 = vmul.f32 4.0, %v1530_v52 }
 0x145   :  { %v1534_v30 = vpop.eup %1533  ;;  %v1288_v59 = vsel %vm1966_vm8, %v1141_v2, %v1532_v60  ;;  %1549 = vrcp.f32 %v1227_v13  ;;  %v1123_v45 = vmul.f32 1.442695, %v1082_v17  ;;  %v2328_v25 = vadd.f32 %v1923_v10, %v2234_v40 }
 0x146   :  { %v1536_v9 = vpop.eup %1535  ;;  %v1309_v20 = vsel %vm1016_vm11, %v1057_v4, %v1288_v59  ;;  %v1216_v11 = vadd.f32 1.0, %v1534_v30  ;;  %1551 = vpow2.f32 %v1412_v5  ;;  %v1038_v32 = vadd.f32 %v1976_v49, %v2178_v51 }
 0x147   :  { %v1538_v0 = vpop.eup %1537  ;;  %1331 = vst.msk [vmem:[%s2488_s3 + $0x80] sm:$0xff] %vm1314_vm12, %v1309_v20  ;;  %1553 = vpow2.f32 %v1121_v21  ;;  %v1402_v16 = vmul.f32 -1.442695, %v2316_v61  ;;  %v1071_v40 = vsel %vm1966_vm8, %v2294_v31, 0.0  ;;  %v1143_v51 = vmul.f32 %v1536_v9, %v1994_v1 }
 0x148   :  { %v1540_v12 = vpop.eup %1539  ;;  %v1277_v19 = vsel %vm1966_vm8, %v1130_v23, %v1538_v0  ;;  %1555 = vrcp.f32 %v1216_v11  ;;  %v2497_v6 = vcvt.s32.f32 %v2067_v26  ;;  %v370_v62 = vand.u32 3, %v2070_v34 }
 0x149   :  { %v1542_v37 = vpop.eup %1541  ;;  %v1298_v27 = vsel %vm1016_vm11, %v1046_v28, %v1277_v19  ;;  %v1228_v58 = vadd.f32 1.0, %v1540_v12  ;;  %1557 = vpow2.f32 %v1401_v14  ;;  %v391_v53 = vand.u32 7, %v2070_v34 }
 0x14a   :  { %v1544_v8 = vpop.eup %1543  ;;  %1320 = vst.msk [vmem:[%s2488_s3 + $0x28] sm:$0xff] %vm1314_vm12, %v1298_v27  ;;  %v1289_v63 = vsel %vm1966_vm8, %v1142_v44, %v1542_v37  ;;  %1559 = vpow2.f32 %v1099_v48  ;;  %v994_v56 = vsel %vm952_vm1, %v2497_v6, 0.0  ;;  %v1403_v15 = vmul.f32 -1.442695, %v2328_v25 }
 0x14b   :  { %v1310_v54 = vsel %vm1016_vm11, %v1058_v3, %v1289_v63  ;;  %v1278_v10 = vsel %vm1966_vm8, %v1131_v39, %v1544_v8  ;;  %1561 = vrcp.f32 %v1228_v58  ;;  %v1546_v7 = vpop.eup %1545  ;;  %v1027_v26 = vadd.f32 %v1980_v50, %v2204_v55  ;;  %v2501_v8 = vld [vmem:[#allocation3_spill] sm:$0xff] }
 0x14c   :  { %1332 = vst.msk [vmem:[%s2488_s3 + $0x88] sm:$0xff] %vm1314_vm12, %v1310_v54  ;;  %v1299_v49 = vsel %vm1016_vm11, %v1047_v29, %v1278_v10  ;;  %1563 = vpow2.f32 %v1123_v45  ;;  %v1548_v2 = vpop.eup %1547  ;;  %v1101_v38 = vmul.f32 1.442695, %v1071_v40  ;;  %v1072_v5 = vsel %vm1966_vm8, %v2316_v61, 0.0  ;;  %v2502_v10 = vld [vmem:[#allocation5_spill] sm:$0xff] }
 0x14d   :  { %1321 = vst.msk [vmem:[%s2488_s3 + $0x30] sm:$0xff] %vm1314_vm12, %v1299_v49  ;;  %1565 = vpow2.f32 %v1402_v16  ;;  %v1217_v47 = vadd.f32 1.0, %v1548_v2  ;;  %v1059_v33 = vmul.f32 %v1038_v32, %v1994_v1  ;;  %v2498_v13 = vcvt.s32.f32 %v2063_v24 }
 0x14e   :  { %v454_v60 = vshra.s32 %v2070_v34, 1  ;;  %v2499_v50 = vshra.s32 %v2070_v34, 2  ;;  %v1132_v23 = vmul.f32 4.0, %v1546_v7  ;;  %v1039_v1 = vadd.f32 %v2036_v43, %v2242_v36 }
 0x14f   :  { %v1550_v52 = vpop.eup %1549  ;;  %v1015_v21 = vsel %vm930_vm2, %v2498_v13, %v994_v56  ;;  %1567 = vrcp.f32 %v1217_v47  ;;  %v1103_v59 = vmul.f32 1.442695, %v1072_v5  ;;  %v412_v14 = vsel %vm202_vm9, %v370_v62, %v391_v53 }
 0x150   :  { %v517_v55 = vsel %vm202_vm9, %v2499_v50, %v496_v18  ;;  %v1552_v4 = vpop.eup %1551  ;;  %v1290_v28 = vsel %vm1966_vm8, %v1143_v51, %v1550_v52  ;;  %1569 = vpow2.f32 %v1403_v15  ;;  %v1048_v18 = vmul.f32 4.0, %v1027_v26 }
 0x151   :  { %v1554_v24 = vpop.eup %1553  ;;  %v1311_v48 = vsel %vm1016_vm11, %v1059_v33, %v1290_v28  ;;  %v1229_v30 = vadd.f32 1.0, %v1552_v4  ;;  %1571 = vpow2.f32 %v1101_v38  ;;  %v1073_v43 = vsel %vm1966_vm8, %v2328_v25, 0.0 }
 0x152   :  { %v1556_v17 = vpop.eup %1555  ;;  %1333 = vst.msk [vmem:[%s2488_s3 + $0x90] sm:$0xff] %vm1314_vm12, %v1311_v48  ;;  %v538_v20 = vsel %vm223_vm10, %v454_v60, %v517_v55  ;;  %v1144_v3 = vmul.f32 8.0, %v1554_v24  ;;  %v497_v29 = vshra.s32 %v2075_v42, 3  ;;  %v1060_v19 = vmul.f32 8.0, %v1039_v1 }
 0x153   :  { %v1558_v36 = vpop.eup %1557  ;;  %v1279_v9 = vsel %vm1966_vm8, %v1132_v23, %v1556_v17  ;;  %1573 = vrcp.f32 %v1229_v30  ;;  %v2500_v39 = vand.u32 1, %v2070_v34  ;;  %v1105_v37 = vmul.f32 1.442695, %v1073_v43  ;;  %v2503_v34 = vld [vmem:[#allocation4_spill] sm:$0xff] }
 0x154   :  { %v1560_v11 = vpop.eup %1559  ;;  %v1300_v0 = vsel %vm1016_vm11, %v1048_v18, %v1279_v9  ;;  %v1218_v44 = vadd.f32 1.0, %v1558_v36  ;;  %1575 = vpow2.f32 %v1103_v59  ;;  %v1028_v63 = vadd.f32 %v2501_v8, %v2258_v41 }
 0x155   :  { %v1562_v12 = vpop.eup %1561  ;;  %1322 = vst.msk [vmem:[%s2488_s3 + $0x38] sm:$0xff] %vm1314_vm12, %v1300_v0  ;;  %v433_v45 = vsel %vm223_vm10, %v2500_v39, %v412_v14  ;;  %v963_v32 = vcvt.s32.f32 %v538_v20  ;;  %v1004_v40 = vsel %vm930_vm2, %v2503_v34, %v2502_v10  ;;  %v1588_v7 = vmov 8.0  }
 0x156   :  { %v1564_v27 = vpop.eup %1563  ;;  %v1291_v58 = vsel %vm1966_vm8, %v1144_v3, %v1562_v12  ;;  %1577 = vrcp.f32 %v1218_v44  ;;  %v275_v41 = vsel %vm233_vm7, 16.0, %v1588_v7  ;;  %v941_v51 = vcvt.s32.f32 %v433_v45 }
 0x157   :  { %v1566_v16 = vpop.eup %1565  ;;  %v1312_v54 = vsel %vm1016_vm11, %v1060_v19, %v1291_v58  ;;  %v392_v56 = vand.u32 7, %v2075_v42  ;;  %v1133_v2 = vmul.f32 8.0, %v1560_v11  ;;  %v1040_v62 = vadd.f32 %v1015_v21, %v2270_v57 }
 0x158   :  { %1334 = vst.msk [vmem:[%s2488_s3 + $0x98] sm:$0xff] %vm1314_vm12, %v1312_v54  ;;  %v1219_v6 = vadd.f32 1.0, %v1566_v16  ;;  %v964_v53 = vcvt.s32.f32 %v497_v29  ;;  %1579 = vpow2.f32 %v1105_v37  ;;  %v1049_v26 = vmul.f32 8.0, %v1028_v63 }
 0x159   :  { %v1568_v15 = vpop.eup %1567  ;;  %v1145_v47 = vmul.f32 %v1564_v27, %v275_v41  ;;  %v984_v38 = vsel %vm952_vm1, %v963_v32, 0.0  ;;  %v1029_v13 = vadd.f32 %v1004_v40, %v2294_v31  ;;  %v1061_v60 = vmul.f32 %v1040_v62, %v275_v41 }
 0x15a   :  { %1581 = vrcp.f32 %v1219_v6  ;;  %v1570_v5 = vpop.eup %1569  ;;  %v1280_v52 = vsel %vm1966_vm8, %v1133_v2, %v1568_v15  ;;  %v1005_v50 = vsel %vm930_vm2, %v941_v51, %v984_v38  ;;  %v942_v55 = vcvt.s32.f32 %v392_v56 }
 0x15b   :  { %v1572_v33 = vpop.eup %1571  ;;  %v1301_v42 = vsel %vm1016_vm11, %v1049_v26, %v1280_v52  ;;  %v1220_v57 = vadd.f32 1.0, %v1570_v5  ;;  %v2505_v28 = vmov 4.0   ;;  %v985_v31 = vsel %vm952_vm1, %v964_v53, 0.0 }
 0x15c   :  { %1323 = vst.msk [vmem:[%s2488_s3 + $0x40] sm:$0xff] %vm1314_vm12, %v1301_v42  ;;  %v244_v23 = vsel %vm202_vm9, 8.0, %v2505_v28  ;;  %v1134_v48 = vmul.f32 8.0, %v1572_v33  ;;  %v1050_v59 = vmul.f32 8.0, %v1029_v13  ;;  %v1030_v17 = vadd.f32 %v1005_v50, %v2316_v61 }
 0x15d   :  { %v1574_v21 = vpop.eup %1573  ;;  %1583 = vrcp.f32 %v1220_v57  ;;  %v265_v14 = vsel %vm223_vm10, 16.0, %v244_v23  ;;  %v1006_v43 = vsel %vm930_vm2, %v942_v55, %v985_v31 }
 0x15e   :  { %v1292_v4 = vsel %vm1966_vm8, %v1145_v47, %v1574_v21  ;;  %v1576_v1 = vpop.eup %1575  ;;  %v1051_v11 = vmul.f32 %v1030_v17, %v265_v14  ;;  %v1031_v0 = vadd.f32 %v1006_v43, %v2328_v25 }
 0x15f   :  { %v1313_v24 = vsel %vm1016_vm11, %v1061_v60, %v1292_v4  ;;  %v1135_v20 = vmul.f32 %v1576_v1, %v265_v14 }
 0x160   :  { %v1578_v30 = vpop.eup %1577  ;;  %1335 = vst.msk [vmem:[%s2488_s3 + $0xa0] sm:$0xff] %vm1314_vm12, %v1313_v24  ;;  %v1052_v12 = vmul.f32 4.0, %v1031_v0 }
 0x161   :  { %v1281_v18 = vsel %vm1966_vm8, %v1134_v48, %v1578_v30 }
 0x162   :  { %v1302_v36 = vsel %vm1016_vm11, %v1050_v59, %v1281_v18  ;;  %v1580_v9 = vpop.eup %1579 }
 0x163   :  { %1324 = vst.msk [vmem:[%s2488_s3 + $0x48] sm:$0xff] %vm1314_vm12, %v1302_v36  ;;  %v1136_v44 = vmul.f32 4.0, %v1580_v9 }
 0x164   :  { %v1582_v61 = vpop.eup %1581 }
 0x165   :  { %v1282_v35 = vsel %vm1966_vm8, %v1135_v20, %v1582_v61 }
 0x166   :  { %v1303_v3 = vsel %vm1016_vm11, %v1051_v11, %v1282_v35 }
 0x167   :  { %1325 = vst.msk [vmem:[%s2488_s3 + $0x50] sm:$0xff] %vm1314_vm12, %v1303_v3  ;;  %v1584_v29 = vpop.eup %1583 }
 0x168   :  { %v1283_v19 = vsel %vm1966_vm8, %v1136_v44, %v1584_v29 }
 0x169   :  { %v1304_v25 = vsel %vm1016_vm11, %v1052_v12, %v1283_v19 }
 0x16a   :  { %1326 = vst.msk [vmem:[%s2488_s3 + $0x58] sm:$0xff] %vm1314_vm12, %v1304_v25 }

</bundles_post_ra>
